<compile_context>
chip_gen: v6e
topology: v6e:2x2x1
jax: 0.10.0
libtpu: 0.0.40
codegen_flags: <defaults>
</compile_context>

<pallas_src>
import functools
import numpy as np

import jax
import jax.numpy as jnp
from jax.experimental import pallas as pl
from jax.experimental.pallas import tpu as pltpu

_INV_LN10 = float(1.0 / np.log(10.0))
_LOG2 = float(np.log(2.0))
_SEG = 128   # lane-tile aligned segment width for fused weights / bias banks


# ----------------------------- in-kernel math helpers -----------------------------
def _leaky(y):                         # F.leaky_relu, negative_slope=0.01
    return jnp.where(y > 0, y, 0.01 * y)


def _relu(y):
    return jnp.maximum(y, 0.0)


def _ssp(y):                           # DGL ShiftedSoftplus: softplus(x) - log(2)
    return jnp.maximum(y, 0.0) + jnp.log(1.0 + jnp.exp(-jnp.abs(y))) - _LOG2


def _sigmoid(y):                       # exp on EUP + approx reciprocal (frees VALU slots)
    return pl.reciprocal(1.0 + jnp.exp(-y), approx=True)


def _log10(x):
    return jnp.log(x) * _INV_LN10


def _mm(a, b):
    # bf16 MXU operands, f32 accumulation.
    return jnp.dot(a.astype(jnp.bfloat16), b.astype(jnp.bfloat16),
                   preferred_element_type=jnp.float32)


def _bias(bank, row, width):
    # Static row/lane slice out of a packed (16, 128) f32 bias bank.
    return bank[row:row + 1, :width]


# ----------------------------- fused forward kernel -----------------------------
def _make_kernel(treedef, n_in, cfg):
    nd_node, nd_net, nd_hanna = cfg['node'], cfg['net'], cfg['hanna']
    nd_pin, nd_edge = cfg['pin'], cfg['edge']

    def kernel(*refs):
        o_pred_ref, o_net_ref = refs[n_in], refs[n_in + 1]
        # Unflatten the input refs back into (graph, fused_params, feats) and load
        # everything into VMEM-resident values (all operands are tiny at toy size).
        g, fp, feats = jax.tree_util.tree_map(
            lambda r: r[...], jax.tree_util.tree_unflatten(treedef, refs[:n_in]))

        gb = fp['bias_bank']                        # global (16, 128) bias bank

        # ---- raw-feature preprocessing (torch.log10 on net/hanna and last 2 node cols)
        raw_node = feats['node']
        col = jax.lax.broadcasted_iota(jnp.int32, raw_node.shape, 1)
        in_node = jnp.where(col >= raw_node.shape[1] - 2,
                            _log10(raw_node + 1e-4), raw_node)
        in_net = _log10(feats['net'] + 1e-4)
        in_hanna = _log10(feats['hanna'] + 1e-4)
        in_pin, in_edge = feats['pin'], feats['edge']

        # ---- input embeddings (leaky_relu) ----
        e = fp['emb_w']
        node = _leaky(_mm(in_node, e['node']) + _bias(gb, 0, nd_node))
        net0 = net = _leaky(_mm(in_net, e['net']) + _bias(gb, 1, nd_net))
        pin = _leaky(_mm(in_pin, e['pin']) + _bias(gb, 2, nd_pin))
        hanna = _leaky(_mm(in_hanna, e['hanna']) + _bias(gb, 3, nd_hanna))
        edge = _leaky(_mm(in_edge, e['edge']) + _bias(gb, 4, nd_edge))

        # ---- NodeNetGNN layers (all intermediates stay in VMEM/vregs) ----
        for l in fp['layers']:
            lb = l['bias_bank']

            # batched matmuls over shared inputs; fused segments are padded to
            # 128-lane boundaries so every slice below starts lane-tile aligned.
            tn = _mm(node, l['wn'])                           # (Nc, 3*128)
            xw_pins = tn[:, 0:nd_net]                         # pins-GraphConv    X@W
            xw_p2 = tn[:, _SEG:_SEG + nd_hanna]               # point-to-GraphConv X@W
            h_self = tn[:, 2 * _SEG:2 * _SEG + nd_node]       # SAGE fc_self(node)

            tnet = _mm(net, l['wnet'])                        # (Nn, 2*128)
            hv = tnet[:, 0:nd_node] + _bias(lb, 2, nd_node)          # CFConv project_node
            h_netlin = tnet[:, _SEG:_SEG + nd_net] + _bias(lb, 1, nd_net)  # net_lin(net)

            th = _mm(hanna, l['wh'])                          # (Ng, 2*128)
            hw_connect = th[:, 0:nd_hanna]                    # connect-GraphConv X@W
            pool = _relu(th[:, _SEG:_SEG + nd_hanna] + _bias(lb, 5, nd_hanna))  # SAGE pool

            # relation 'pins': GraphConv(cell -> net), norms folded into A_pins;
            # NodeNetGNN adds net_lin(net)
            h_net = _mm(g['A_pins'], xw_pins) + _bias(lb, 0, nd_net) + h_netlin

            # relation 'pinned': CFConv(net -> cell) with pin features
            he = _ssp(_mm(pin, l['ce1_w']) + _bias(lb, 6, nd_node))
            he = _ssp(_mm(he, l['ce2_w']) + _bias(lb, 7, nd_node))
            h_sum = _mm(g['S_pinned'], _mm(g['G_pinned'], hv) * he)
            h_cell_pinned = _ssp(_mm(h_sum, l['cout_w']) + _bias(lb, 8, nd_node))

            # relations 'connect' / 'point-to': GraphConvs into gcell (norms folded)
            h_g1 = _mm(g['A_connect'], hw_connect) + _bias(lb, 4, nd_hanna)
            h_g2 = _mm(g['A_p2'], xw_p2) + _bias(lb, 3, nd_hanna)

            # relation 'point-from': SAGEConv('pool') with sigmoid edge weights.
            # Fixed in-degree of 2 -> two one-hot gathers + elementwise max.
            # TODO(synk): general in-degrees need an edge-block running-max loop.
            ew = _sigmoid(_mm(edge, l['gw_w']) + _bias(lb, 9, 1))        # (E_pf, 1)
            msg0 = _mm(g['G0'], pool) * _mm(g['P0'], ew)
            msg1 = _mm(g['G1'], pool) * _mm(g['P1'], ew)
            neigh = jnp.maximum(msg0, msg1)
            h_cell_pf = _mm(neigh, l['sage_neigh_w']) + h_self + _bias(lb, 10, nd_node)

            # HeteroGraphConv aggregate='max' + inter-layer leaky_relu, fused
            node = _leaky(jnp.maximum(h_cell_pinned, h_cell_pf))
            net = _leaky(h_net)
            hanna = jnp.maximum(h_g1, h_g2)

        # ---- readout heads (cat_raw=True via split weights; residuals in-register;
        #      final layers padded to 128 output lanes -> unmasked lane-dense stores)
        h = _leaky(_mm(in_node, fp['out1a_w']) + _mm(node, fp['out1b_w'])
                   + _bias(gb, 5, nd_node))
        h = _leaky(_mm(h, fp['out2_w']) + _bias(gb, 6, nd_node))
        out_pred = _relu(_mm(h, fp['out3_w']) + _bias(gb, 7, _SEG))     # final torch.relu

        net1 = net0 + _relu(_mm(in_net, fp['onet1a_w']) + _mm(net, fp['onet1b_w'])
                            + _bias(gb, 8, nd_net))
        net2 = net1 + _relu(_mm(net1, fp['onet2_w']) + _bias(gb, 9, nd_net))
        net3 = jnp.tanh(_mm(net2, fp['onet3_w']) + _bias(gb, 10, _SEG))
        x = _relu(_mm(in_net, fp['x1_w']) + _bias(gb, 11, 64))
        x = _relu(_mm(x, fp['x2_w']) + _bias(gb, 12, 64))
        x = _mm(x, fp['x3_w']) + _bias(gb, 13, _SEG)
        out_net = x + net3                                              # padded cols stay 0

        o_pred_ref[...] = out_pred
        o_net_ref[...] = out_net

    return kernel


def route_gnn_forward(fused_params, graph, cfg, in_node_feat, in_net_feat,
                      in_pin_feat, in_hanna_feat, in_edge_feat):
    feats = {'node': in_node_feat, 'net': in_net_feat, 'pin': in_pin_feat,
             'hanna': in_hanna_feat, 'edge': in_edge_feat}
    leaves, treedef = jax.tree_util.tree_flatten((graph, fused_params, feats))
    n_in = len(leaves)
    kernel = _make_kernel(treedef, n_in, cfg)
    n_cell, n_net = in_node_feat.shape[0], in_net_feat.shape[0]
    vmem = functools.partial(pl.BlockSpec, memory_space=pltpu.MemorySpace.VMEM)
    out_pad, net_pad = pl.pallas_call(
        kernel,
        out_shape=(jax.ShapeDtypeStruct((n_cell, _SEG), jnp.float32),
                   jax.ShapeDtypeStruct((n_net, _SEG), jnp.float32)),
        in_specs=[vmem() for _ in range(n_in)],
        out_specs=(vmem(), vmem()),
        compiler_params=pltpu.CompilerParams(vmem_limit_bytes=32 * 1024 * 1024),
    )(*leaves)
    # Slice the lane-dense (.., 128) output slabs back to the model's shapes.
    return out_pad[:, :cfg['n_target']], net_pad[:, :1]


# ----------------------------- parameters -----------------------------
def _init_linear(key, fan_in, fan_out):
    kw, kb = jax.random.split(key)
    bound = 1.0 / np.sqrt(fan_in)
    return {'w': jax.random.uniform(kw, (fan_in, fan_out), jnp.float32, -bound, bound),
            'b': jax.random.uniform(kb, (1, fan_out), jnp.float32, -bound, bound)}


def init_params(key, cfg):
    ks = iter(jax.random.split(key, 64))
    p = {}
    p['node_lin'] = _init_linear(next(ks), cfg['in_node'], cfg['node'])
    p['net_lin'] = _init_linear(next(ks), cfg['in_net'], cfg['net'])
    p['pin_lin'] = _init_linear(next(ks), cfg['in_pin'], cfg['pin'])
    p['hanna_lin'] = _init_linear(next(ks), cfg['in_hanna'], cfg['hanna'])
    p['edge_lin'] = _init_linear(next(ks), cfg['in_edge'], cfg['edge'])
    layers = []
    for _ in range(cfg['n_layer']):
        lk = iter(jax.random.split(next(ks), 16))
        l = {}
        l['net_lin'] = _init_linear(next(lk), cfg['net'], cfg['net'])            # NodeNetGNN.net_lin
        l['grid_weight'] = _init_linear(next(lk), cfg['edge'], 1)                # SAGE edge-weight MLP
        l['pins'] = _init_linear(next(lk), cfg['node'], cfg['net'])              # GraphConv cell->net
        l['cf_node'] = _init_linear(next(lk), cfg['net'], cfg['node'])           # CFConv.project_node
        l['cf_edge1'] = _init_linear(next(lk), cfg['pin'], cfg['node'])          # CFConv.project_edge[0]
        l['cf_edge2'] = _init_linear(next(lk), cfg['node'], cfg['node'])         # CFConv.project_edge[2]
        l['cf_out'] = _init_linear(next(lk), cfg['node'], cfg['node'])           # CFConv.project_out
        l['connect'] = _init_linear(next(lk), cfg['hanna'], cfg['hanna'])        # GraphConv gcell->gcell
        l['p2'] = _init_linear(next(lk), cfg['node'], cfg['hanna'])              # GraphConv cell->gcell
        l['sage_pool'] = _init_linear(next(lk), cfg['hanna'], cfg['hanna'])      # SAGE fc_pool
        bn = 1.0 / np.sqrt(cfg['hanna'])
        bs = 1.0 / np.sqrt(cfg['node'])
        l['sage_neigh_w'] = jax.random.uniform(next(lk), (cfg['hanna'], cfg['node']), jnp.float32, -bn, bn)
        l['sage_self_w'] = jax.random.uniform(next(lk), (cfg['node'], cfg['node']), jnp.float32, -bs, bs)
        l['sage_bias'] = jnp.zeros((1, cfg['node']), jnp.float32)                # DGL SAGEConv bias init = 0
        layers.append(l)
    p['layers'] = layers
    p['out1'] = _init_linear(next(ks), cfg['in_node'] + cfg['node'], cfg['node'])
    p['out2'] = _init_linear(next(ks), cfg['node'], cfg['node'])
    p['out3'] = _init_linear(next(ks), cfg['node'], cfg['n_target'])
    p['out_net1'] = _init_linear(next(ks), cfg['in_net'] + cfg['net'], cfg['net'])
    p['out_net2'] = _init_linear(next(ks), cfg['net'], cfg['net'])
    p['out_net3'] = _init_linear(next(ks), cfg['net'], 1)
    p['net_x1'] = _init_linear(next(ks), cfg['in_net'], 64)
    p['net_x2'] = _init_linear(next(ks), 64, 64)
    p['net_x3'] = _init_linear(next(ks), 64, 1)
    return p


def _pad_cols(w, width=_SEG):
    w = np.asarray(w, np.float32)
    out = np.zeros((w.shape[0], width), np.float32)
    out[:, :w.shape[1]] = w
    return out


def _bias_bank(bias_list, rows=16, width=_SEG):
    bank = np.zeros((rows, width), np.float32)
    for i, b in enumerate(bias_list):
        v = np.asarray(b, np.float32).reshape(-1)
        bank[i, :v.shape[0]] = v
    return jnp.asarray(bank)


def fuse_params(params, cfg):
    """One-time host-side weight preparation:
       * batch weights that share an input into wider MXU passes, each fused
         segment padded to a 128-lane boundary (aligned post-matmul slices),
       * split the cat_raw readout weights (no in-kernel concatenation),
       * pad final readout layers to 128 output columns (lane-dense stores),
       * pack all tiny (1,H) biases into per-layer / global (16,128) bias banks,
       * store every matmul weight in bfloat16 (MXU-native, halves VMEM/DMA)."""
    ni, nnet = cfg['in_node'], cfg['in_net']

    def w16(x):
        return jnp.asarray(np.asarray(x, np.float32), jnp.bfloat16)

    f = {'emb_w': {'node': w16(params['node_lin']['w']),
                   'net': w16(params['net_lin']['w']),
                   'pin': w16(params['pin_lin']['w']),
                   'hanna': w16(params['hanna_lin']['w']),
                   'edge': w16(params['edge_lin']['w'])}}
    layers = []
    for l in params['layers']:
        # consumers of `node`: pins-GraphConv W | point-to-GraphConv W | SAGE fc_self
        wn = np.concatenate([_pad_cols(l['pins']['w']),
                             _pad_cols(l['p2']['w']),
                             _pad_cols(l['sage_self_w'])], axis=1)
        # consumers of `net`: CFConv project_node | NodeNetGNN net_lin
        wnet = np.concatenate([_pad_cols(l['cf_node']['w']),
                               _pad_cols(l['net_lin']['w'])], axis=1)
        # consumers of `hanna`: connect-GraphConv W | SAGE fc_pool
        wh = np.concatenate([_pad_cols(l['connect']['w']),
                             _pad_cols(l['sage_pool']['w'])], axis=1)
        layers.append({
            'wn': jnp.asarray(wn, jnp.bfloat16),
            'wnet': jnp.asarray(wnet, jnp.bfloat16),
            'wh': jnp.asarray(wh, jnp.bfloat16),
            'ce1_w': w16(l['cf_edge1']['w']),
            'ce2_w': w16(l['cf_edge2']['w']),
            'cout_w': w16(l['cf_out']['w']),
            'gw_w': w16(l['grid_weight']['w']),
            'sage_neigh_w': w16(l['sage_neigh_w']),
            # bias-bank row layout must match _bias(lb, row, ...) in the kernel:
            # 0 pins, 1 net_lin, 2 cf_node, 3 p2, 4 connect, 5 pool,
            # 6 ce1, 7 ce2, 8 cout, 9 grid_weight, 10 sage_bias
            'bias_bank': _bias_bank([
                l['pins']['b'], l['net_lin']['b'], l['cf_node']['b'],
                l['p2']['b'], l['connect']['b'], l['sage_pool']['b'],
                l['cf_edge1']['b'], l['cf_edge2']['b'], l['cf_out']['b'],
                l['grid_weight']['b'], l['sage_bias']]),
        })
    f['layers'] = layers
    f['out1a_w'] = w16(params['out1']['w'][:ni])          # acts on raw in_node
    f['out1b_w'] = w16(params['out1']['w'][ni:])          # acts on final node embedding
    f['out2_w'] = w16(params['out2']['w'])
    f['out3_w'] = jnp.asarray(_pad_cols(params['out3']['w']), jnp.bfloat16)
    f['onet1a_w'] = w16(params['out_net1']['w'][:nnet])
    f['onet1b_w'] = w16(params['out_net1']['w'][nnet:])
    f['onet2_w'] = w16(params['out_net2']['w'])
    f['onet3_w'] = jnp.asarray(_pad_cols(params['out_net3']['w']), jnp.bfloat16)
    f['x1_w'] = w16(params['net_x1']['w'])
    f['x2_w'] = w16(params['net_x2']['w'])
    f['x3_w'] = jnp.asarray(_pad_cols(params['net_x3']['w']), jnp.bfloat16)
    # global bias-bank row layout must match _bias(gb, row, ...) in the kernel:
    # 0 node_lin, 1 net_lin, 2 pin_lin, 3 hanna_lin, 4 edge_lin, 5 out1, 6 out2,
    # 7 out3(pad), 8 out_net1, 9 out_net2, 10 out_net3(pad), 11 x1, 12 x2, 13 x3(pad)
    f['bias_bank'] = _bias_bank([
        params['node_lin']['b'], params['net_lin']['b'], params['pin_lin']['b'],
        params['hanna_lin']['b'], params['edge_lin']['b'],
        params['out1']['b'], params['out2']['b'], params['out3']['b'],
        params['out_net1']['b'], params['out_net2']['b'], params['out_net3']['b'],
        params['net_x1']['b'], params['net_x2']['b'], params['net_x3']['b']])
    return f


# ----------------------------- synthetic hetero graph -----------------------------
def _fold_norms(A):
    # GraphConv norm='both': A_norm = diag(in_deg^-1/2) @ A @ diag(out_deg^-1/2)
    out_deg = np.clip(A.sum(axis=0), 1.0, None) ** -0.5     # per-src
    in_deg = np.clip(A.sum(axis=1), 1.0, None) ** -0.5      # per-dst
    return (in_deg.reshape(-1, 1) * A * out_deg.reshape(1, -1)).astype(np.float32)


def build_graph(n_cell, n_net, n_gcell):
    # 'pinned' edges (net -> cell): 2 distinct nets per cell
    pinned = []
    for c in range(n_cell):
        a = c % n_net
        b = (c * 5 + 3) % n_net
        if b == a:
            b = (b + 1) % n_net
        pinned += [(a, c), (b, c)]
    # 'point-from' edges (gcell -> cell): exactly 2 distinct gcells per cell
    pf = []
    for c in range(n_cell):
        g0 = c % n_gcell
        g1 = (c * 3 + 5) % n_gcell
        if g1 == g0:
            g1 = (g1 + 1) % n_gcell
        pf += [(g0, c), (g1, c)]
    # 'connect' edges (gcell -> gcell)
    con = []
    for g in range(n_gcell):
        con += [((g + 1) % n_gcell, g), ((g + 5) % n_gcell, g)]

    bf16 = functools.partial(jnp.asarray, dtype=jnp.bfloat16)
    gd = {}
    # 'pins' (cell -> net) = reverse of 'pinned'; norms folded host-side.
    A_pins = np.zeros((n_net, n_cell), np.float32)
    for (nsrc, cdst) in pinned:
        A_pins[nsrc, cdst] = 1.0
    gd['A_pins'] = bf16(_fold_norms(A_pins))

    A_con = np.zeros((n_gcell, n_gcell), np.float32)
    for (s, d) in con:
        A_con[d, s] = 1.0
    gd['A_connect'] = bf16(_fold_norms(A_con))

    # 'point-to' (cell -> gcell) = reverse of 'point-from'
    A_p2 = np.zeros((n_gcell, n_cell), np.float32)
    for (gc, c) in pf:
        A_p2[gc, c] = 1.0
    gd['A_p2'] = bf16(_fold_norms(A_p2))

    # per-edge gather/scatter for CFConv 'pinned' (one-hot: exact in bf16)
    E_pinned = len(pinned)
    Gp = np.zeros((E_pinned, n_net), np.float32)
    Sp = np.zeros((n_cell, E_pinned), np.float32)
    for e_idx, (nsrc, cdst) in enumerate(pinned):
        Gp[e_idx, nsrc] = 1.0
        Sp[cdst, e_idx] = 1.0
    gd['G_pinned'], gd['S_pinned'] = bf16(Gp), bf16(Sp)

    # 'point-from' with a FIXED in-degree of 2 per cell:
    # one-hot src gathers G0/G1 and edge selectors P0/P1 for each cell's two edges.
    E_pf = len(pf)
    G0 = np.zeros((n_cell, n_gcell), np.float32)
    G1 = np.zeros((n_cell, n_gcell), np.float32)
    P0 = np.zeros((n_cell, E_pf), np.float32)
    P1 = np.zeros((n_cell, E_pf), np.float32)
    for c in range(n_cell):
        (gs0, _), (gs1, _) = pf[2 * c], pf[2 * c + 1]
        G0[c, gs0] = 1.0
        G1[c, gs1] = 1.0
        P0[c, 2 * c] = 1.0
        P1[c, 2 * c + 1] = 1.0
    gd['G0'], gd['G1'] = bf16(G0), bf16(G1)
    gd['P0'], gd['P1'] = bf16(P0), bf16(P1)

    sizes = {'E_pinned': E_pinned, 'E_pf': E_pf}
    return gd, sizes


# ----------------------------- main -----------------------------
if __name__ == "__main__":
    cfg = dict(in_node=8, in_net=8, in_pin=8, in_hanna=8, in_edge=8,   # raw feature dims
               node=32, net=32, pin=16, hanna=16, edge=16,             # hidden dims (config)
               n_layer=2, n_target=2)
    n_cell, n_net, n_gcell = 24, 12, 16

    graph, sizes = build_graph(n_cell, n_net, n_gcell)

    key = jax.random.PRNGKey(0)
    kp, k1, k2, k3, k4, k5 = jax.random.split(key, 6)
    params = init_params(kp, cfg)
    fused = fuse_params(params, cfg)       # one-time host-side weight fusion/packing

    in_node_feat = jax.random.uniform(k1, (n_cell, cfg['in_node']), jnp.float32, 0.1, 1.0)
    in_net_feat = jax.random.uniform(k2, (n_net, cfg['in_net']), jnp.float32, 0.1, 1.0)
    in_pin_feat = jax.random.uniform(k3, (sizes['E_pinned'], cfg['in_pin']), jnp.float32, 0.1, 1.0)
    in_hanna_feat = jax.random.uniform(k4, (n_gcell, cfg['in_hanna']), jnp.float32, 0.1, 1.0)
    in_edge_feat = jax.random.uniform(k5, (sizes['E_pf'], cfg['in_edge']), jnp.float32, 0.1, 1.0)

    fwd = jax.jit(functools.partial(route_gnn_forward, fused, graph, cfg))
    out_pred, out_net = fwd(in_node_feat, in_net_feat, in_pin_feat, in_hanna_feat, in_edge_feat)
    jax.block_until_ready((out_pred, out_net))

    assert out_pred.shape == (n_cell, cfg['n_target'])
    assert out_net.shape == (n_net, 1)
    assert bool(jnp.all(jnp.isfinite(out_pred))) and bool(jnp.all(jnp.isfinite(out_net)))
    print("KERNEL_OK")
</pallas_src>

<mosaic_0001>
module attributes {stable_mosaic.version = 11 : i64} {
  func.func @kernel(%arg0: memref<16x16xbf16, #tpu.memory_space<vmem>>, %arg1: memref<16x24xbf16, #tpu.memory_space<vmem>>, %arg2: memref<12x24xbf16, #tpu.memory_space<vmem>>, %arg3: memref<24x16xbf16, #tpu.memory_space<vmem>>, %arg4: memref<24x16xbf16, #tpu.memory_space<vmem>>, %arg5: memref<48x12xbf16, #tpu.memory_space<vmem>>, %arg6: memref<24x48xbf16, #tpu.memory_space<vmem>>, %arg7: memref<24x48xbf16, #tpu.memory_space<vmem>>, %arg8: memref<24x48xbf16, #tpu.memory_space<vmem>>, %arg9: memref<16x128xf32, #tpu.memory_space<vmem>>, %arg10: memref<8x16xbf16, #tpu.memory_space<vmem>>, %arg11: memref<8x16xbf16, #tpu.memory_space<vmem>>, %arg12: memref<8x32xbf16, #tpu.memory_space<vmem>>, %arg13: memref<8x32xbf16, #tpu.memory_space<vmem>>, %arg14: memref<8x16xbf16, #tpu.memory_space<vmem>>, %arg15: memref<16x128xf32, #tpu.memory_space<vmem>>, %arg16: memref<16x32xbf16, #tpu.memory_space<vmem>>, %arg17: memref<32x32xbf16, #tpu.memory_space<vmem>>, %arg18: memref<32x32xbf16, #tpu.memory_space<vmem>>, %arg19: memref<16x1xbf16, #tpu.memory_space<vmem>>, %arg20: memref<16x32xbf16, #tpu.memory_space<vmem>>, %arg21: memref<16x256xbf16, #tpu.memory_space<vmem>>, %arg22: memref<32x384xbf16, #tpu.memory_space<vmem>>, %arg23: memref<32x256xbf16, #tpu.memory_space<vmem>>, %arg24: memref<16x128xf32, #tpu.memory_space<vmem>>, %arg25: memref<16x32xbf16, #tpu.memory_space<vmem>>, %arg26: memref<32x32xbf16, #tpu.memory_space<vmem>>, %arg27: memref<32x32xbf16, #tpu.memory_space<vmem>>, %arg28: memref<16x1xbf16, #tpu.memory_space<vmem>>, %arg29: memref<16x32xbf16, #tpu.memory_space<vmem>>, %arg30: memref<16x256xbf16, #tpu.memory_space<vmem>>, %arg31: memref<32x384xbf16, #tpu.memory_space<vmem>>, %arg32: memref<32x256xbf16, #tpu.memory_space<vmem>>, %arg33: memref<8x32xbf16, #tpu.memory_space<vmem>>, %arg34: memref<32x32xbf16, #tpu.memory_space<vmem>>, %arg35: memref<32x32xbf16, #tpu.memory_space<vmem>>, %arg36: memref<32x128xbf16, #tpu.memory_space<vmem>>, %arg37: memref<8x32xbf16, #tpu.memory_space<vmem>>, %arg38: memref<32x32xbf16, #tpu.memory_space<vmem>>, %arg39: memref<32x32xbf16, #tpu.memory_space<vmem>>, %arg40: memref<32x128xbf16, #tpu.memory_space<vmem>>, %arg41: memref<8x64xbf16, #tpu.memory_space<vmem>>, %arg42: memref<64x64xbf16, #tpu.memory_space<vmem>>, %arg43: memref<64x128xbf16, #tpu.memory_space<vmem>>, %arg44: memref<48x8xf32, #tpu.memory_space<vmem>>, %arg45: memref<16x8xf32, #tpu.memory_space<vmem>>, %arg46: memref<12x8xf32, #tpu.memory_space<vmem>>, %arg47: memref<24x8xf32, #tpu.memory_space<vmem>>, %arg48: memref<48x8xf32, #tpu.memory_space<vmem>>, %arg49: memref<24x128xf32, #tpu.memory_space<vmem>>, %arg50: memref<12x128xf32, #tpu.memory_space<vmem>>) attributes {dimension_semantics = [], scalar_prefetch = 0 : i64, scratch_operands = 0 : i64, tpu.core_type = #tpu.core_type<tc>} {
    %c0 = arith.constant 0 : index
    %c0_0 = arith.constant 0 : index
    %0 = vector.load %arg0[%c0, %c0_0] : memref<16x16xbf16, #tpu.memory_space<vmem>>, vector<16x16xbf16>
    %c0_1 = arith.constant 0 : index
    %c0_2 = arith.constant 0 : index
    %1 = vector.load %arg1[%c0_1, %c0_2] : memref<16x24xbf16, #tpu.memory_space<vmem>>, vector<16x24xbf16>
    %c0_3 = arith.constant 0 : index
    %c0_4 = arith.constant 0 : index
    %2 = vector.load %arg2[%c0_3, %c0_4] : memref<12x24xbf16, #tpu.memory_space<vmem>>, vector<12x24xbf16>
    %c0_5 = arith.constant 0 : index
    %c0_6 = arith.constant 0 : index
    %3 = vector.load %arg3[%c0_5, %c0_6] : memref<24x16xbf16, #tpu.memory_space<vmem>>, vector<24x16xbf16>
    %c0_7 = arith.constant 0 : index
    %c0_8 = arith.constant 0 : index
    %4 = vector.load %arg4[%c0_7, %c0_8] : memref<24x16xbf16, #tpu.memory_space<vmem>>, vector<24x16xbf16>
    %c0_9 = arith.constant 0 : index
    %c0_10 = arith.constant 0 : index
    %5 = vector.load %arg5[%c0_9, %c0_10] : memref<48x12xbf16, #tpu.memory_space<vmem>>, vector<48x12xbf16>
    %c0_11 = arith.constant 0 : index
    %c0_12 = arith.constant 0 : index
    %6 = vector.load %arg6[%c0_11, %c0_12] : memref<24x48xbf16, #tpu.memory_space<vmem>>, vector<24x48xbf16>
    %c0_13 = arith.constant 0 : index
    %c0_14 = arith.constant 0 : index
    %7 = vector.load %arg7[%c0_13, %c0_14] : memref<24x48xbf16, #tpu.memory_space<vmem>>, vector<24x48xbf16>
    %c0_15 = arith.constant 0 : index
    %c0_16 = arith.constant 0 : index
    %8 = vector.load %arg8[%c0_15, %c0_16] : memref<24x48xbf16, #tpu.memory_space<vmem>>, vector<24x48xbf16>
    %c0_17 = arith.constant 0 : index
    %c0_18 = arith.constant 0 : index
    %9 = vector.load %arg9[%c0_17, %c0_18] : memref<16x128xf32, #tpu.memory_space<vmem>>, vector<16x128xf32>
    %c0_19 = arith.constant 0 : index
    %c0_20 = arith.constant 0 : index
    %10 = vector.load %arg10[%c0_19, %c0_20] : memref<8x16xbf16, #tpu.memory_space<vmem>>, vector<8x16xbf16>
    %c0_21 = arith.constant 0 : index
    %c0_22 = arith.constant 0 : index
    %11 = vector.load %arg11[%c0_21, %c0_22] : memref<8x16xbf16, #tpu.memory_space<vmem>>, vector<8x16xbf16>
    %c0_23 = arith.constant 0 : index
    %c0_24 = arith.constant 0 : index
    %12 = vector.load %arg12[%c0_23, %c0_24] : memref<8x32xbf16, #tpu.memory_space<vmem>>, vector<8x32xbf16>
    %c0_25 = arith.constant 0 : index
    %c0_26 = arith.constant 0 : index
    %13 = vector.load %arg13[%c0_25, %c0_26] : memref<8x32xbf16, #tpu.memory_space<vmem>>, vector<8x32xbf16>
    %c0_27 = arith.constant 0 : index
    %c0_28 = arith.constant 0 : index
    %14 = vector.load %arg14[%c0_27, %c0_28] : memref<8x16xbf16, #tpu.memory_space<vmem>>, vector<8x16xbf16>
    %c0_29 = arith.constant 0 : index
    %c0_30 = arith.constant 0 : index
    %15 = vector.load %arg15[%c0_29, %c0_30] : memref<16x128xf32, #tpu.memory_space<vmem>>, vector<16x128xf32>
    %c0_31 = arith.constant 0 : index
    %c0_32 = arith.constant 0 : index
    %16 = vector.load %arg16[%c0_31, %c0_32] : memref<16x32xbf16, #tpu.memory_space<vmem>>, vector<16x32xbf16>
    %c0_33 = arith.constant 0 : index
    %c0_34 = arith.constant 0 : index
    %17 = vector.load %arg17[%c0_33, %c0_34] : memref<32x32xbf16, #tpu.memory_space<vmem>>, vector<32x32xbf16>
    %c0_35 = arith.constant 0 : index
    %c0_36 = arith.constant 0 : index
    %18 = vector.load %arg18[%c0_35, %c0_36] : memref<32x32xbf16, #tpu.memory_space<vmem>>, vector<32x32xbf16>
    %c0_37 = arith.constant 0 : index
    %c0_38 = arith.constant 0 : index
    %19 = vector.load %arg19[%c0_37, %c0_38] : memref<16x1xbf16, #tpu.memory_space<vmem>>, vector<16x1xbf16>
    %c0_39 = arith.constant 0 : index
    %c0_40 = arith.constant 0 : index
    %20 = vector.load %arg20[%c0_39, %c0_40] : memref<16x32xbf16, #tpu.memory_space<vmem>>, vector<16x32xbf16>
    %c0_41 = arith.constant 0 : index
    %c0_42 = arith.constant 0 : index
    %21 = vector.load %arg21[%c0_41, %c0_42] : memref<16x256xbf16, #tpu.memory_space<vmem>>, vector<16x256xbf16>
    %c0_43 = arith.constant 0 : index
    %c0_44 = arith.constant 0 : index
    %22 = vector.load %arg22[%c0_43, %c0_44] : memref<32x384xbf16, #tpu.memory_space<vmem>>, vector<32x384xbf16>
    %c0_45 = arith.constant 0 : index
    %c0_46 = arith.constant 0 : index
    %23 = vector.load %arg23[%c0_45, %c0_46] : memref<32x256xbf16, #tpu.memory_space<vmem>>, vector<32x256xbf16>
    %c0_47 = arith.constant 0 : index
    %c0_48 = arith.constant 0 : index
    %24 = vector.load %arg24[%c0_47, %c0_48] : memref<16x128xf32, #tpu.memory_space<vmem>>, vector<16x128xf32>
    %c0_49 = arith.constant 0 : index
    %c0_50 = arith.constant 0 : index
    %25 = vector.load %arg25[%c0_49, %c0_50] : memref<16x32xbf16, #tpu.memory_space<vmem>>, vector<16x32xbf16>
    %c0_51 = arith.constant 0 : index
    %c0_52 = arith.constant 0 : index
    %26 = vector.load %arg26[%c0_51, %c0_52] : memref<32x32xbf16, #tpu.memory_space<vmem>>, vector<32x32xbf16>
    %c0_53 = arith.constant 0 : index
    %c0_54 = arith.constant 0 : index
    %27 = vector.load %arg27[%c0_53, %c0_54] : memref<32x32xbf16, #tpu.memory_space<vmem>>, vector<32x32xbf16>
    %c0_55 = arith.constant 0 : index
    %c0_56 = arith.constant 0 : index
    %28 = vector.load %arg28[%c0_55, %c0_56] : memref<16x1xbf16, #tpu.memory_space<vmem>>, vector<16x1xbf16>
    %c0_57 = arith.constant 0 : index
    %c0_58 = arith.constant 0 : index
    %29 = vector.load %arg29[%c0_57, %c0_58] : memref<16x32xbf16, #tpu.memory_space<vmem>>, vector<16x32xbf16>
    %c0_59 = arith.constant 0 : index
    %c0_60 = arith.constant 0 : index
    %30 = vector.load %arg30[%c0_59, %c0_60] : memref<16x256xbf16, #tpu.memory_space<vmem>>, vector<16x256xbf16>
    %c0_61 = arith.constant 0 : index
    %c0_62 = arith.constant 0 : index
    %31 = vector.load %arg31[%c0_61, %c0_62] : memref<32x384xbf16, #tpu.memory_space<vmem>>, vector<32x384xbf16>
    %c0_63 = arith.constant 0 : index
    %c0_64 = arith.constant 0 : index
    %32 = vector.load %arg32[%c0_63, %c0_64] : memref<32x256xbf16, #tpu.memory_space<vmem>>, vector<32x256xbf16>
    %c0_65 = arith.constant 0 : index
    %c0_66 = arith.constant 0 : index
    %33 = vector.load %arg33[%c0_65, %c0_66] : memref<8x32xbf16, #tpu.memory_space<vmem>>, vector<8x32xbf16>
    %c0_67 = arith.constant 0 : index
    %c0_68 = arith.constant 0 : index
    %34 = vector.load %arg34[%c0_67, %c0_68] : memref<32x32xbf16, #tpu.memory_space<vmem>>, vector<32x32xbf16>
    %c0_69 = arith.constant 0 : index
    %c0_70 = arith.constant 0 : index
    %35 = vector.load %arg35[%c0_69, %c0_70] : memref<32x32xbf16, #tpu.memory_space<vmem>>, vector<32x32xbf16>
    %c0_71 = arith.constant 0 : index
    %c0_72 = arith.constant 0 : index
    %36 = vector.load %arg36[%c0_71, %c0_72] : memref<32x128xbf16, #tpu.memory_space<vmem>>, vector<32x128xbf16>
    %c0_73 = arith.constant 0 : index
    %c0_74 = arith.constant 0 : index
    %37 = vector.load %arg37[%c0_73, %c0_74] : memref<8x32xbf16, #tpu.memory_space<vmem>>, vector<8x32xbf16>
    %c0_75 = arith.constant 0 : index
    %c0_76 = arith.constant 0 : index
    %38 = vector.load %arg38[%c0_75, %c0_76] : memref<32x32xbf16, #tpu.memory_space<vmem>>, vector<32x32xbf16>
    %c0_77 = arith.constant 0 : index
    %c0_78 = arith.constant 0 : index
    %39 = vector.load %arg39[%c0_77, %c0_78] : memref<32x32xbf16, #tpu.memory_space<vmem>>, vector<32x32xbf16>
    %c0_79 = arith.constant 0 : index
    %c0_80 = arith.constant 0 : index
    %40 = vector.load %arg40[%c0_79, %c0_80] : memref<32x128xbf16, #tpu.memory_space<vmem>>, vector<32x128xbf16>
    %c0_81 = arith.constant 0 : index
    %c0_82 = arith.constant 0 : index
    %41 = vector.load %arg41[%c0_81, %c0_82] : memref<8x64xbf16, #tpu.memory_space<vmem>>, vector<8x64xbf16>
    %c0_83 = arith.constant 0 : index
    %c0_84 = arith.constant 0 : index
    %42 = vector.load %arg42[%c0_83, %c0_84] : memref<64x64xbf16, #tpu.memory_space<vmem>>, vector<64x64xbf16>
    %c0_85 = arith.constant 0 : index
    %c0_86 = arith.constant 0 : index
    %43 = vector.load %arg43[%c0_85, %c0_86] : memref<64x128xbf16, #tpu.memory_space<vmem>>, vector<64x128xbf16>
    %c0_87 = arith.constant 0 : index
    %c0_88 = arith.constant 0 : index
    %44 = vector.load %arg44[%c0_87, %c0_88] : memref<48x8xf32, #tpu.memory_space<vmem>>, vector<48x8xf32>
    %c0_89 = arith.constant 0 : index
    %c0_90 = arith.constant 0 : index
    %45 = vector.load %arg45[%c0_89, %c0_90] : memref<16x8xf32, #tpu.memory_space<vmem>>, vector<16x8xf32>
    %c0_91 = arith.constant 0 : index
    %c0_92 = arith.constant 0 : index
    %46 = vector.load %arg46[%c0_91, %c0_92] : memref<12x8xf32, #tpu.memory_space<vmem>>, vector<12x8xf32>
    %c0_93 = arith.constant 0 : index
    %c0_94 = arith.constant 0 : index
    %47 = vector.load %arg47[%c0_93, %c0_94] : memref<24x8xf32, #tpu.memory_space<vmem>>, vector<24x8xf32>
    %c0_95 = arith.constant 0 : index
    %c0_96 = arith.constant 0 : index
    %48 = vector.load %arg48[%c0_95, %c0_96] : memref<48x8xf32, #tpu.memory_space<vmem>>, vector<48x8xf32>
    %49 = tpu.iota {dimensions = array<i32: 1>} : vector<24x8xi32>
    %c6_i32 = arith.constant 6 : i32
    %50 = vector.broadcast %c6_i32 : i32 to vector<24x8xi32>
    %51 = arith.cmpi sge, %49, %50 : vector<24x8xi32>
    %cst = arith.constant 9.99999974E-5 : f32
    %52 = vector.broadcast %cst : f32 to vector<24x8xf32>
    %53 = arith.addf %47, %52 : vector<24x8xf32>
    %54 = math.log %53 : vector<24x8xf32>
    %cst_97 = arith.constant 0.434294492 : f32
    %55 = vector.broadcast %cst_97 : f32 to vector<24x8xf32>
    %56 = arith.mulf %54, %55 : vector<24x8xf32>
    %57 = arith.select %51, %56, %47 : vector<24x8xi1>, vector<24x8xf32>
    %cst_98 = arith.constant 9.99999974E-5 : f32
    %58 = vector.broadcast %cst_98 : f32 to vector<12x8xf32>
    %59 = arith.addf %46, %58 : vector<12x8xf32>
    %60 = math.log %59 : vector<12x8xf32>
    %cst_99 = arith.constant 0.434294492 : f32
    %61 = vector.broadcast %cst_99 : f32 to vector<12x8xf32>
    %62 = arith.mulf %60, %61 : vector<12x8xf32>
    %cst_100 = arith.constant 9.99999974E-5 : f32
    %63 = vector.broadcast %cst_100 : f32 to vector<16x8xf32>
    %64 = arith.addf %45, %63 : vector<16x8xf32>
    %65 = math.log %64 : vector<16x8xf32>
    %cst_101 = arith.constant 0.434294492 : f32
    %66 = vector.broadcast %cst_101 : f32 to vector<16x8xf32>
    %67 = arith.mulf %65, %66 : vector<16x8xf32>
    %68 = arith.truncf %57 : vector<24x8xf32> to vector<24x8xbf16>
    %cst_102 = arith.constant dense<0.000000e+00> : vector<24x32xf32>
    %69 = tpu.matmul %68, %13, %cst_102 {dimension_numbers = #tpu.dot_dimension_numbers<[1], [0], [0], [1], [0, 0, 1, 1], [], []>} : vector<24x8xbf16>, vector<8x32xbf16>, vector<24x32xf32> -> vector<24x32xf32>
    %70 = vector.extract_strided_slice %9 {offsets = [0, 0], sizes = [1, 32], strides = [1, 1]} : vector<16x128xf32> to vector<1x32xf32>
    %71 = vector.broadcast %70 : vector<1x32xf32> to vector<24x32xf32>
    %72 = arith.addf %69, %71 : vector<24x32xf32>
    %cst_103 = arith.constant 0.000000e+00 : f32
    %73 = vector.broadcast %cst_103 : f32 to vector<24x32xf32>
    %74 = arith.cmpf ogt, %72, %73 : vector<24x32xf32>
    %cst_104 = arith.constant 0.00999999977 : f32
    %75 = vector.broadcast %cst_104 : f32 to vector<24x32xf32>
    %76 = arith.mulf %75, %72 : vector<24x32xf32>
    %77 = arith.select %74, %72, %76 : vector<24x32xi1>, vector<24x32xf32>
    %78 = arith.truncf %62 : vector<12x8xf32> to vector<12x8xbf16>
    %cst_105 = arith.constant dense<0.000000e+00> : vector<12x32xf32>
    %79 = tpu.matmul %78, %12, %cst_105 {dimension_numbers = #tpu.dot_dimension_numbers<[1], [0], [0], [1], [0, 0, 1, 1], [], []>} : vector<12x8xbf16>, vector<8x32xbf16>, vector<12x32xf32> -> vector<12x32xf32>
    %80 = vector.extract_strided_slice %9 {offsets = [1, 0], sizes = [1, 32], strides = [1, 1]} : vector<16x128xf32> to vector<1x32xf32>
    %81 = vector.broadcast %80 : vector<1x32xf32> to vector<12x32xf32>
    %82 = arith.addf %79, %81 : vector<12x32xf32>
    %cst_106 = arith.constant 0.000000e+00 : f32
    %83 = vector.broadcast %cst_106 : f32 to vector<12x32xf32>
    %84 = arith.cmpf ogt, %82, %83 : vector<12x32xf32>
    %cst_107 = arith.constant 0.00999999977 : f32
    %85 = vector.broadcast %cst_107 : f32 to vector<12x32xf32>
    %86 = arith.mulf %85, %82 : vector<12x32xf32>
    %87 = arith.select %84, %82, %86 : vector<12x32xi1>, vector<12x32xf32>
    %88 = arith.truncf %48 : vector<48x8xf32> to vector<48x8xbf16>
    %cst_108 = arith.constant dense<0.000000e+00> : vector<48x16xf32>
    %89 = tpu.matmul %88, %14, %cst_108 {dimension_numbers = #tpu.dot_dimension_numbers<[1], [0], [0], [1], [0, 0, 1, 1], [], []>} : vector<48x8xbf16>, vector<8x16xbf16>, vector<48x16xf32> -> vector<48x16xf32>
    %90 = vector.extract_strided_slice %9 {offsets = [2, 0], sizes = [1, 16], strides = [1, 1]} : vector<16x128xf32> to vector<1x16xf32>
    %91 = vector.broadcast %90 : vector<1x16xf32> to vector<48x16xf32>
    %92 = arith.addf %89, %91 : vector<48x16xf32>
    %cst_109 = arith.constant 0.000000e+00 : f32
    %93 = vector.broadcast %cst_109 : f32 to vector<48x16xf32>
    %94 = arith.cmpf ogt, %92, %93 : vector<48x16xf32>
    %cst_110 = arith.constant 0.00999999977 : f32
    %95 = vector.broadcast %cst_110 : f32 to vector<48x16xf32>
    %96 = arith.mulf %95, %92 : vector<48x16xf32>
    %97 = arith.select %94, %92, %96 : vector<48x16xi1>, vector<48x16xf32>
    %98 = arith.truncf %67 : vector<16x8xf32> to vector<16x8xbf16>
    %cst_111 = arith.constant dense<0.000000e+00> : vector<16x16xf32>
    %99 = tpu.matmul %98, %11, %cst_111 {dimension_numbers = #tpu.dot_dimension_numbers<[1], [0], [0], [1], [0, 0, 1, 1], [], []>} : vector<16x8xbf16>, vector<8x16xbf16>, vector<16x16xf32> -> vector<16x16xf32>
    %100 = vector.extract_strided_slice %9 {offsets = [3, 0], sizes = [1, 16], strides = [1, 1]} : vector<16x128xf32> to vector<1x16xf32>
    %101 = vector.broadcast %100 : vector<1x16xf32> to vector<16x16xf32>
    %102 = arith.addf %99, %101 : vector<16x16xf32>
    %cst_112 = arith.constant 0.000000e+00 : f32
    %103 = vector.broadcast %cst_112 : f32 to vector<16x16xf32>
    %104 = arith.cmpf ogt, %102, %103 : vector<16x16xf32>
    %cst_113 = arith.constant 0.00999999977 : f32
    %105 = vector.broadcast %cst_113 : f32 to vector<16x16xf32>
    %106 = arith.mulf %105, %102 : vector<16x16xf32>
    %107 = arith.select %104, %102, %106 : vector<16x16xi1>, vector<16x16xf32>
    %108 = arith.truncf %44 : vector<48x8xf32> to vector<48x8xbf16>
    %cst_114 = arith.constant dense<0.000000e+00> : vector<48x16xf32>
    %109 = tpu.matmul %108, %10, %cst_114 {dimension_numbers = #tpu.dot_dimension_numbers<[1], [0], [0], [1], [0, 0, 1, 1], [], []>} : vector<48x8xbf16>, vector<8x16xbf16>, vector<48x16xf32> -> vector<48x16xf32>
    %110 = vector.extract_strided_slice %9 {offsets = [4, 0], sizes = [1, 16], strides = [1, 1]} : vector<16x128xf32> to vector<1x16xf32>
    %111 = vector.broadcast %110 : vector<1x16xf32> to vector<48x16xf32>
    %112 = arith.addf %109, %111 : vector<48x16xf32>
    %cst_115 = arith.constant 0.000000e+00 : f32
    %113 = vector.broadcast %cst_115 : f32 to vector<48x16xf32>
    %114 = arith.cmpf ogt, %112, %113 : vector<48x16xf32>
    %cst_116 = arith.constant 0.00999999977 : f32
    %115 = vector.broadcast %cst_116 : f32 to vector<48x16xf32>
    %116 = arith.mulf %115, %112 : vector<48x16xf32>
    %117 = arith.select %114, %112, %116 : vector<48x16xi1>, vector<48x16xf32>
    %118 = arith.truncf %77 : vector<24x32xf32> to vector<24x32xbf16>
    %cst_117 = arith.constant dense<0.000000e+00> : vector<24x384xf32>
    %119 = tpu.matmul %118, %22, %cst_117 {dimension_numbers = #tpu.dot_dimension_numbers<[1], [0], [0], [1], [0, 0, 1, 1], [], []>} : vector<24x32xbf16>, vector<32x384xbf16>, vector<24x384xf32> -> vector<24x384xf32>
    %120 = vector.extract_strided_slice %119 {offsets = [0, 0], sizes = [24, 32], strides = [1, 1]} : vector<24x384xf32> to vector<24x32xf32>
    %121 = vector.extract_strided_slice %119 {offsets = [0, 128], sizes = [24, 16], strides = [1, 1]} : vector<24x384xf32> to vector<24x16xf32>
    %122 = vector.extract_strided_slice %119 {offsets = [0, 256], sizes = [24, 32], strides = [1, 1]} : vector<24x384xf32> to vector<24x32xf32>
    %123 = arith.truncf %87 : vector<12x32xf32> to vector<12x32xbf16>
    %cst_118 = arith.constant dense<0.000000e+00> : vector<12x256xf32>
    %124 = tpu.matmul %123, %23, %cst_118 {dimension_numbers = #tpu.dot_dimension_numbers<[1], [0], [0], [1], [0, 0, 1, 1], [], []>} : vector<12x32xbf16>, vector<32x256xbf16>, vector<12x256xf32> -> vector<12x256xf32>
    %125 = vector.extract_strided_slice %124 {offsets = [0, 0], sizes = [12, 32], strides = [1, 1]} : vector<12x256xf32> to vector<12x32xf32>
    %126 = vector.extract_strided_slice %15 {offsets = [2, 0], sizes = [1, 32], strides = [1, 1]} : vector<16x128xf32> to vector<1x32xf32>
    %127 = vector.broadcast %126 : vector<1x32xf32> to vector<12x32xf32>
    %128 = arith.addf %125, %127 : vector<12x32xf32>
    %129 = vector.extract_strided_slice %124 {offsets = [0, 128], sizes = [12, 32], strides = [1, 1]} : vector<12x256xf32> to vector<12x32xf32>
    %130 = vector.extract_strided_slice %15 {offsets = [1, 0], sizes = [1, 32], strides = [1, 1]} : vector<16x128xf32> to vector<1x32xf32>
    %131 = vector.broadcast %130 : vector<1x32xf32> to vector<12x32xf32>
    %132 = arith.addf %129, %131 : vector<12x32xf32>
    %133 = arith.truncf %107 : vector<16x16xf32> to vector<16x16xbf16>
    %cst_119 = arith.constant dense<0.000000e+00> : vector<16x256xf32>
    %134 = tpu.matmul %133, %21, %cst_119 {dimension_numbers = #tpu.dot_dimension_numbers<[1], [0], [0], [1], [0, 0, 1, 1], [], []>} : vector<16x16xbf16>, vector<16x256xbf16>, vector<16x256xf32> -> vector<16x256xf32>
    %135 = vector.extract_strided_slice %134 {offsets = [0, 0], sizes = [16, 16], strides = [1, 1]} : vector<16x256xf32> to vector<16x16xf32>
    %136 = vector.extract_strided_slice %134 {offsets = [0, 128], sizes = [16, 16], strides = [1, 1]} : vector<16x256xf32> to vector<16x16xf32>
    %137 = vector.extract_strided_slice %15 {offsets = [5, 0], sizes = [1, 16], strides = [1, 1]} : vector<16x128xf32> to vector<1x16xf32>
    %138 = vector.broadcast %137 : vector<1x16xf32> to vector<16x16xf32>
    %139 = arith.addf %136, %138 : vector<16x16xf32>
    %cst_120 = arith.constant 0.000000e+00 : f32
    %140 = vector.broadcast %cst_120 : f32 to vector<16x16xf32>
    %141 = arith.maximumf %139, %140 : vector<16x16xf32>
    %142 = arith.truncf %120 : vector<24x32xf32> to vector<24x32xbf16>
    %cst_121 = arith.constant dense<0.000000e+00> : vector<12x32xf32>
    %143 = tpu.matmul %2, %142, %cst_121 {dimension_numbers = #tpu.dot_dimension_numbers<[1], [0], [0], [1], [0, 0, 1, 1], [], []>} : vector<12x24xbf16>, vector<24x32xbf16>, vector<12x32xf32> -> vector<12x32xf32>
    %144 = vector.extract_strided_slice %15 {offsets = [0, 0], sizes = [1, 32], strides = [1, 1]} : vector<16x128xf32> to vector<1x32xf32>
    %145 = vector.broadcast %144 : vector<1x32xf32> to vector<12x32xf32>
    %146 = arith.addf %143, %145 : vector<12x32xf32>
    %147 = arith.addf %146, %132 : vector<12x32xf32>
    %148 = arith.truncf %97 : vector<48x16xf32> to vector<48x16xbf16>
    %cst_122 = arith.constant dense<0.000000e+00> : vector<48x32xf32>
    %149 = tpu.matmul %148, %16, %cst_122 {dimension_numbers = #tpu.dot_dimension_numbers<[1], [0], [0], [1], [0, 0, 1, 1], [], []>} : vector<48x16xbf16>, vector<16x32xbf16>, vector<48x32xf32> -> vector<48x32xf32>
    %150 = vector.extract_strided_slice %15 {offsets = [6, 0], sizes = [1, 32], strides = [1, 1]} : vector<16x128xf32> to vector<1x32xf32>
    %151 = vector.broadcast %150 : vector<1x32xf32> to vector<48x32xf32>
    %152 = arith.addf %149, %151 : vector<48x32xf32>
    %cst_123 = arith.constant 0.000000e+00 : f32
    %153 = vector.broadcast %cst_123 : f32 to vector<48x32xf32>
    %154 = arith.maximumf %152, %153 : vector<48x32xf32>
    %155 = math.absf %152 : vector<48x32xf32>
    %cst_124 = arith.constant 0.000000e+00 : f32
    %156 = vector.broadcast %cst_124 : f32 to vector<48x32xf32>
    %157 = arith.subf %156, %155 : vector<48x32xf32>
    %158 = math.exp %157 : vector<48x32xf32>
    %cst_125 = arith.constant 1.000000e+00 : f32
    %159 = vector.broadcast %cst_125 : f32 to vector<48x32xf32>
    %160 = arith.addf %159, %158 : vector<48x32xf32>
    %161 = math.log %160 : vector<48x32xf32>
    %162 = arith.addf %154, %161 : vector<48x32xf32>
    %cst_126 = arith.constant 0.693147182 : f32
    %163 = vector.broadcast %cst_126 : f32 to vector<48x32xf32>
    %164 = arith.subf %162, %163 : vector<48x32xf32>
    %165 = arith.truncf %164 : vector<48x32xf32> to vector<48x32xbf16>
    %cst_127 = arith.constant dense<0.000000e+00> : vector<48x32xf32>
    %166 = tpu.matmul %165, %17, %cst_127 {dimension_numbers = #tpu.dot_dimension_numbers<[1], [0], [0], [1], [0, 0, 1, 1], [], []>} : vector<48x32xbf16>, vector<32x32xbf16>, vector<48x32xf32> -> vector<48x32xf32>
    %167 = vector.extract_strided_slice %15 {offsets = [7, 0], sizes = [1, 32], strides = [1, 1]} : vector<16x128xf32> to vector<1x32xf32>
    %168 = vector.broadcast %167 : vector<1x32xf32> to vector<48x32xf32>
    %169 = arith.addf %166, %168 : vector<48x32xf32>
    %cst_128 = arith.constant 0.000000e+00 : f32
    %170 = vector.broadcast %cst_128 : f32 to vector<48x32xf32>
    %171 = arith.maximumf %169, %170 : vector<48x32xf32>
    %172 = math.absf %169 : vector<48x32xf32>
    %cst_129 = arith.constant 0.000000e+00 : f32
    %173 = vector.broadcast %cst_129 : f32 to vector<48x32xf32>
    %174 = arith.subf %173, %172 : vector<48x32xf32>
    %175 = math.exp %174 : vector<48x32xf32>
    %cst_130 = arith.constant 1.000000e+00 : f32
    %176 = vector.broadcast %cst_130 : f32 to vector<48x32xf32>
    %177 = arith.addf %176, %175 : vector<48x32xf32>
    %178 = math.log %177 : vector<48x32xf32>
    %179 = arith.addf %171, %178 : vector<48x32xf32>
    %cst_131 = arith.constant 0.693147182 : f32
    %180 = vector.broadcast %cst_131 : f32 to vector<48x32xf32>
    %181 = arith.subf %179, %180 : vector<48x32xf32>
    %182 = arith.truncf %128 : vector<12x32xf32> to vector<12x32xbf16>
    %cst_132 = arith.constant dense<0.000000e+00> : vector<48x32xf32>
    %183 = tpu.matmul %5, %182, %cst_132 {dimension_numbers = #tpu.dot_dimension_numbers<[1], [0], [0], [1], [0, 0, 1, 1], [], []>} : vector<48x12xbf16>, vector<12x32xbf16>, vector<48x32xf32> -> vector<48x32xf32>
    %184 = arith.mulf %183, %181 : vector<48x32xf32>
    %185 = arith.truncf %184 : vector<48x32xf32> to vector<48x32xbf16>
    %cst_133 = arith.constant dense<0.000000e+00> : vector<24x32xf32>
    %186 = tpu.matmul %8, %185, %cst_133 {dimension_numbers = #tpu.dot_dimension_numbers<[1], [0], [0], [1], [0, 0, 1, 1], [], []>} : vector<24x48xbf16>, vector<48x32xbf16>, vector<24x32xf32> -> vector<24x32xf32>
    %187 = arith.truncf %186 : vector<24x32xf32> to vector<24x32xbf16>
    %cst_134 = arith.constant dense<0.000000e+00> : vector<24x32xf32>
    %188 = tpu.matmul %187, %18, %cst_134 {dimension_numbers = #tpu.dot_dimension_numbers<[1], [0], [0], [1], [0, 0, 1, 1], [], []>} : vector<24x32xbf16>, vector<32x32xbf16>, vector<24x32xf32> -> vector<24x32xf32>
    %189 = vector.extract_strided_slice %15 {offsets = [8, 0], sizes = [1, 32], strides = [1, 1]} : vector<16x128xf32> to vector<1x32xf32>
    %190 = vector.broadcast %189 : vector<1x32xf32> to vector<24x32xf32>
    %191 = arith.addf %188, %190 : vector<24x32xf32>
    %cst_135 = arith.constant 0.000000e+00 : f32
    %192 = vector.broadcast %cst_135 : f32 to vector<24x32xf32>
    %193 = arith.maximumf %191, %192 : vector<24x32xf32>
    %194 = math.absf %191 : vector<24x32xf32>
    %cst_136 = arith.constant 0.000000e+00 : f32
    %195 = vector.broadcast %cst_136 : f32 to vector<24x32xf32>
    %196 = arith.subf %195, %194 : vector<24x32xf32>
    %197 = math.exp %196 : vector<24x32xf32>
    %cst_137 = arith.constant 1.000000e+00 : f32
    %198 = vector.broadcast %cst_137 : f32 to vector<24x32xf32>
    %199 = arith.addf %198, %197 : vector<24x32xf32>
    %200 = math.log %199 : vector<24x32xf32>
    %201 = arith.addf %193, %200 : vector<24x32xf32>
    %cst_138 = arith.constant 0.693147182 : f32
    %202 = vector.broadcast %cst_138 : f32 to vector<24x32xf32>
    %203 = arith.subf %201, %202 : vector<24x32xf32>
    %204 = arith.truncf %135 : vector<16x16xf32> to vector<16x16xbf16>
    %cst_139 = arith.constant dense<0.000000e+00> : vector<16x16xf32>
    %205 = tpu.matmul %0, %204, %cst_139 {dimension_numbers = #tpu.dot_dimension_numbers<[1], [0], [0], [1], [0, 0, 1, 1], [], []>} : vector<16x16xbf16>, vector<16x16xbf16>, vector<16x16xf32> -> vector<16x16xf32>
    %206 = vector.extract_strided_slice %15 {offsets = [4, 0], sizes = [1, 16], strides = [1, 1]} : vector<16x128xf32> to vector<1x16xf32>
    %207 = vector.broadcast %206 : vector<1x16xf32> to vector<16x16xf32>
    %208 = arith.addf %205, %207 : vector<16x16xf32>
    %209 = arith.truncf %121 : vector<24x16xf32> to vector<24x16xbf16>
    %cst_140 = arith.constant dense<0.000000e+00> : vector<16x16xf32>
    %210 = tpu.matmul %1, %209, %cst_140 {dimension_numbers = #tpu.dot_dimension_numbers<[1], [0], [0], [1], [0, 0, 1, 1], [], []>} : vector<16x24xbf16>, vector<24x16xbf16>, vector<16x16xf32> -> vector<16x16xf32>
    %211 = vector.extract_strided_slice %15 {offsets = [3, 0], sizes = [1, 16], strides = [1, 1]} : vector<16x128xf32> to vector<1x16xf32>
    %212 = vector.broadcast %211 : vector<1x16xf32> to vector<16x16xf32>
    %213 = arith.addf %210, %212 : vector<16x16xf32>
    %214 = arith.truncf %117 : vector<48x16xf32> to vector<48x16xbf16>
    %cst_141 = arith.constant dense<0.000000e+00> : vector<48x1xf32>
    %215 = tpu.matmul %214, %19, %cst_141 {dimension_numbers = #tpu.dot_dimension_numbers<[1], [0], [0], [1], [0, 0, 1, 1], [], []>} : vector<48x16xbf16>, vector<16x1xbf16>, vector<48x1xf32> -> vector<48x1xf32>
    %216 = vector.extract_strided_slice %15 {offsets = [9, 0], sizes = [1, 1], strides = [1, 1]} : vector<16x128xf32> to vector<1x1xf32>
    %217 = vector.broadcast %216 : vector<1x1xf32> to vector<48x1xf32>
    %218 = arith.addf %215, %217 : vector<48x1xf32>
    %cst_142 = arith.constant 0.000000e+00 : f32
    %219 = vector.broadcast %cst_142 : f32 to vector<48x1xf32>
    %220 = arith.subf %219, %218 : vector<48x1xf32>
    %221 = math.exp %220 : vector<48x1xf32>
    %cst_143 = arith.constant 1.000000e+00 : f32
    %222 = vector.broadcast %cst_143 : f32 to vector<48x1xf32>
    %223 = arith.addf %222, %221 : vector<48x1xf32>
    %224 = tpu.reciprocal %223 {approx = true} : vector<48x1xf32> -> vector<48x1xf32>
    %225 = arith.truncf %141 : vector<16x16xf32> to vector<16x16xbf16>
    %cst_144 = arith.constant dense<0.000000e+00> : vector<24x16xf32>
    %226 = tpu.matmul %3, %225, %cst_144 {dimension_numbers = #tpu.dot_dimension_numbers<[1], [0], [0], [1], [0, 0, 1, 1], [], []>} : vector<24x16xbf16>, vector<16x16xbf16>, vector<24x16xf32> -> vector<24x16xf32>
    %227 = arith.truncf %224 : vector<48x1xf32> to vector<48x1xbf16>
    %cst_145 = arith.constant dense<0.000000e+00> : vector<24x1xf32>
    %228 = tpu.matmul %6, %227, %cst_145 {dimension_numbers = #tpu.dot_dimension_numbers<[1], [0], [0], [1], [0, 0, 1, 1], [], []>} : vector<24x48xbf16>, vector<48x1xbf16>, vector<24x1xf32> -> vector<24x1xf32>
    %229 = vector.broadcast %228 : vector<24x1xf32> to vector<24x16xf32>
    %230 = arith.mulf %226, %229 : vector<24x16xf32>
    %231 = arith.truncf %141 : vector<16x16xf32> to vector<16x16xbf16>
    %cst_146 = arith.constant dense<0.000000e+00> : vector<24x16xf32>
    %232 = tpu.matmul %4, %231, %cst_146 {dimension_numbers = #tpu.dot_dimension_numbers<[1], [0], [0], [1], [0, 0, 1, 1], [], []>} : vector<24x16xbf16>, vector<16x16xbf16>, vector<24x16xf32> -> vector<24x16xf32>
    %233 = arith.truncf %224 : vector<48x1xf32> to vector<48x1xbf16>
    %cst_147 = arith.constant dense<0.000000e+00> : vector<24x1xf32>
    %234 = tpu.matmul %7, %233, %cst_147 {dimension_numbers = #tpu.dot_dimension_numbers<[1], [0], [0], [1], [0, 0, 1, 1], [], []>} : vector<24x48xbf16>, vector<48x1xbf16>, vector<24x1xf32> -> vector<24x1xf32>
    %235 = vector.broadcast %234 : vector<24x1xf32> to vector<24x16xf32>
    %236 = arith.mulf %232, %235 : vector<24x16xf32>
    %237 = arith.maximumf %230, %236 : vector<24x16xf32>
    %238 = arith.truncf %237 : vector<24x16xf32> to vector<24x16xbf16>
    %cst_148 = arith.constant dense<0.000000e+00> : vector<24x32xf32>
    %239 = tpu.matmul %238, %20, %cst_148 {dimension_numbers = #tpu.dot_dimension_numbers<[1], [0], [0], [1], [0, 0, 1, 1], [], []>} : vector<24x16xbf16>, vector<16x32xbf16>, vector<24x32xf32> -> vector<24x32xf32>
    %240 = arith.addf %239, %122 : vector<24x32xf32>
    %241 = vector.extract_strided_slice %15 {offsets = [10, 0], sizes = [1, 32], strides = [1, 1]} : vector<16x128xf32> to vector<1x32xf32>
    %242 = vector.broadcast %241 : vector<1x32xf32> to vector<24x32xf32>
    %243 = arith.addf %240, %242 : vector<24x32xf32>
    %244 = arith.maximumf %203, %243 : vector<24x32xf32>
    %cst_149 = arith.constant 0.000000e+00 : f32
    %245 = vector.broadcast %cst_149 : f32 to vector<24x32xf32>
    %246 = arith.cmpf ogt, %244, %245 : vector<24x32xf32>
    %cst_150 = arith.constant 0.00999999977 : f32
    %247 = vector.broadcast %cst_150 : f32 to vector<24x32xf32>
    %248 = arith.mulf %247, %244 : vector<24x32xf32>
    %249 = arith.select %246, %244, %248 : vector<24x32xi1>, vector<24x32xf32>
    %cst_151 = arith.constant 0.000000e+00 : f32
    %250 = vector.broadcast %cst_151 : f32 to vector<12x32xf32>
    %251 = arith.cmpf ogt, %147, %250 : vector<12x32xf32>
    %cst_152 = arith.constant 0.00999999977 : f32
    %252 = vector.broadcast %cst_152 : f32 to vector<12x32xf32>
    %253 = arith.mulf %252, %147 : vector<12x32xf32>
    %254 = arith.select %251, %147, %253 : vector<12x32xi1>, vector<12x32xf32>
    %255 = arith.maximumf %208, %213 : vector<16x16xf32>
    %256 = arith.truncf %249 : vector<24x32xf32> to vector<24x32xbf16>
    %cst_153 = arith.constant dense<0.000000e+00> : vector<24x384xf32>
    %257 = tpu.matmul %256, %31, %cst_153 {dimension_numbers = #tpu.dot_dimension_numbers<[1], [0], [0], [1], [0, 0, 1, 1], [], []>} : vector<24x32xbf16>, vector<32x384xbf16>, vector<24x384xf32> -> vector<24x384xf32>
    %258 = vector.extract_strided_slice %257 {offsets = [0, 0], sizes = [24, 32], strides = [1, 1]} : vector<24x384xf32> to vector<24x32xf32>
    %259 = vector.extract_strided_slice %257 {offsets = [0, 256], sizes = [24, 32], strides = [1, 1]} : vector<24x384xf32> to vector<24x32xf32>
    %260 = arith.truncf %254 : vector<12x32xf32> to vector<12x32xbf16>
    %cst_154 = arith.constant dense<0.000000e+00> : vector<12x256xf32>
    %261 = tpu.matmul %260, %32, %cst_154 {dimension_numbers = #tpu.dot_dimension_numbers<[1], [0], [0], [1], [0, 0, 1, 1], [], []>} : vector<12x32xbf16>, vector<32x256xbf16>, vector<12x256xf32> -> vector<12x256xf32>
    %262 = vector.extract_strided_slice %261 {offsets = [0, 0], sizes = [12, 32], strides = [1, 1]} : vector<12x256xf32> to vector<12x32xf32>
    %263 = vector.extract_strided_slice %24 {offsets = [2, 0], sizes = [1, 32], strides = [1, 1]} : vector<16x128xf32> to vector<1x32xf32>
    %264 = vector.broadcast %263 : vector<1x32xf32> to vector<12x32xf32>
    %265 = arith.addf %262, %264 : vector<12x32xf32>
    %266 = vector.extract_strided_slice %261 {offsets = [0, 128], sizes = [12, 32], strides = [1, 1]} : vector<12x256xf32> to vector<12x32xf32>
    %267 = vector.extract_strided_slice %24 {offsets = [1, 0], sizes = [1, 32], strides = [1, 1]} : vector<16x128xf32> to vector<1x32xf32>
    %268 = vector.broadcast %267 : vector<1x32xf32> to vector<12x32xf32>
    %269 = arith.addf %266, %268 : vector<12x32xf32>
    %270 = arith.truncf %255 : vector<16x16xf32> to vector<16x16xbf16>
    %cst_155 = arith.constant dense<0.000000e+00> : vector<16x256xf32>
    %271 = tpu.matmul %270, %30, %cst_155 {dimension_numbers = #tpu.dot_dimension_numbers<[1], [0], [0], [1], [0, 0, 1, 1], [], []>} : vector<16x16xbf16>, vector<16x256xbf16>, vector<16x256xf32> -> vector<16x256xf32>
    %272 = vector.extract_strided_slice %271 {offsets = [0, 128], sizes = [16, 16], strides = [1, 1]} : vector<16x256xf32> to vector<16x16xf32>
    %273 = vector.extract_strided_slice %24 {offsets = [5, 0], sizes = [1, 16], strides = [1, 1]} : vector<16x128xf32> to vector<1x16xf32>
    %274 = vector.broadcast %273 : vector<1x16xf32> to vector<16x16xf32>
    %275 = arith.addf %272, %274 : vector<16x16xf32>
    %cst_156 = arith.constant 0.000000e+00 : f32
    %276 = vector.broadcast %cst_156 : f32 to vector<16x16xf32>
    %277 = arith.maximumf %275, %276 : vector<16x16xf32>
    %278 = arith.truncf %258 : vector<24x32xf32> to vector<24x32xbf16>
    %cst_157 = arith.constant dense<0.000000e+00> : vector<12x32xf32>
    %279 = tpu.matmul %2, %278, %cst_157 {dimension_numbers = #tpu.dot_dimension_numbers<[1], [0], [0], [1], [0, 0, 1, 1], [], []>} : vector<12x24xbf16>, vector<24x32xbf16>, vector<12x32xf32> -> vector<12x32xf32>
    %280 = vector.extract_strided_slice %24 {offsets = [0, 0], sizes = [1, 32], strides = [1, 1]} : vector<16x128xf32> to vector<1x32xf32>
    %281 = vector.broadcast %280 : vector<1x32xf32> to vector<12x32xf32>
    %282 = arith.addf %279, %281 : vector<12x32xf32>
    %283 = arith.addf %282, %269 : vector<12x32xf32>
    %284 = arith.truncf %97 : vector<48x16xf32> to vector<48x16xbf16>
    %cst_158 = arith.constant dense<0.000000e+00> : vector<48x32xf32>
    %285 = tpu.matmul %284, %25, %cst_158 {dimension_numbers = #tpu.dot_dimension_numbers<[1], [0], [0], [1], [0, 0, 1, 1], [], []>} : vector<48x16xbf16>, vector<16x32xbf16>, vector<48x32xf32> -> vector<48x32xf32>
    %286 = vector.extract_strided_slice %24 {offsets = [6, 0], sizes = [1, 32], strides = [1, 1]} : vector<16x128xf32> to vector<1x32xf32>
    %287 = vector.broadcast %286 : vector<1x32xf32> to vector<48x32xf32>
    %288 = arith.addf %285, %287 : vector<48x32xf32>
    %cst_159 = arith.constant 0.000000e+00 : f32
    %289 = vector.broadcast %cst_159 : f32 to vector<48x32xf32>
    %290 = arith.maximumf %288, %289 : vector<48x32xf32>
    %291 = math.absf %288 : vector<48x32xf32>
    %cst_160 = arith.constant 0.000000e+00 : f32
    %292 = vector.broadcast %cst_160 : f32 to vector<48x32xf32>
    %293 = arith.subf %292, %291 : vector<48x32xf32>
    %294 = math.exp %293 : vector<48x32xf32>
    %cst_161 = arith.constant 1.000000e+00 : f32
    %295 = vector.broadcast %cst_161 : f32 to vector<48x32xf32>
    %296 = arith.addf %295, %294 : vector<48x32xf32>
    %297 = math.log %296 : vector<48x32xf32>
    %298 = arith.addf %290, %297 : vector<48x32xf32>
    %cst_162 = arith.constant 0.693147182 : f32
    %299 = vector.broadcast %cst_162 : f32 to vector<48x32xf32>
    %300 = arith.subf %298, %299 : vector<48x32xf32>
    %301 = arith.truncf %300 : vector<48x32xf32> to vector<48x32xbf16>
    %cst_163 = arith.constant dense<0.000000e+00> : vector<48x32xf32>
    %302 = tpu.matmul %301, %26, %cst_163 {dimension_numbers = #tpu.dot_dimension_numbers<[1], [0], [0], [1], [0, 0, 1, 1], [], []>} : vector<48x32xbf16>, vector<32x32xbf16>, vector<48x32xf32> -> vector<48x32xf32>
    %303 = vector.extract_strided_slice %24 {offsets = [7, 0], sizes = [1, 32], strides = [1, 1]} : vector<16x128xf32> to vector<1x32xf32>
    %304 = vector.broadcast %303 : vector<1x32xf32> to vector<48x32xf32>
    %305 = arith.addf %302, %304 : vector<48x32xf32>
    %cst_164 = arith.constant 0.000000e+00 : f32
    %306 = vector.broadcast %cst_164 : f32 to vector<48x32xf32>
    %307 = arith.maximumf %305, %306 : vector<48x32xf32>
    %308 = math.absf %305 : vector<48x32xf32>
    %cst_165 = arith.constant 0.000000e+00 : f32
    %309 = vector.broadcast %cst_165 : f32 to vector<48x32xf32>
    %310 = arith.subf %309, %308 : vector<48x32xf32>
    %311 = math.exp %310 : vector<48x32xf32>
    %cst_166 = arith.constant 1.000000e+00 : f32
    %312 = vector.broadcast %cst_166 : f32 to vector<48x32xf32>
    %313 = arith.addf %312, %311 : vector<48x32xf32>
    %314 = math.log %313 : vector<48x32xf32>
    %315 = arith.addf %307, %314 : vector<48x32xf32>
    %cst_167 = arith.constant 0.693147182 : f32
    %316 = vector.broadcast %cst_167 : f32 to vector<48x32xf32>
    %317 = arith.subf %315, %316 : vector<48x32xf32>
    %318 = arith.truncf %265 : vector<12x32xf32> to vector<12x32xbf16>
    %cst_168 = arith.constant dense<0.000000e+00> : vector<48x32xf32>
    %319 = tpu.matmul %5, %318, %cst_168 {dimension_numbers = #tpu.dot_dimension_numbers<[1], [0], [0], [1], [0, 0, 1, 1], [], []>} : vector<48x12xbf16>, vector<12x32xbf16>, vector<48x32xf32> -> vector<48x32xf32>
    %320 = arith.mulf %319, %317 : vector<48x32xf32>
    %321 = arith.truncf %320 : vector<48x32xf32> to vector<48x32xbf16>
    %cst_169 = arith.constant dense<0.000000e+00> : vector<24x32xf32>
    %322 = tpu.matmul %8, %321, %cst_169 {dimension_numbers = #tpu.dot_dimension_numbers<[1], [0], [0], [1], [0, 0, 1, 1], [], []>} : vector<24x48xbf16>, vector<48x32xbf16>, vector<24x32xf32> -> vector<24x32xf32>
    %323 = arith.truncf %322 : vector<24x32xf32> to vector<24x32xbf16>
    %cst_170 = arith.constant dense<0.000000e+00> : vector<24x32xf32>
    %324 = tpu.matmul %323, %27, %cst_170 {dimension_numbers = #tpu.dot_dimension_numbers<[1], [0], [0], [1], [0, 0, 1, 1], [], []>} : vector<24x32xbf16>, vector<32x32xbf16>, vector<24x32xf32> -> vector<24x32xf32>
    %325 = vector.extract_strided_slice %24 {offsets = [8, 0], sizes = [1, 32], strides = [1, 1]} : vector<16x128xf32> to vector<1x32xf32>
    %326 = vector.broadcast %325 : vector<1x32xf32> to vector<24x32xf32>
    %327 = arith.addf %324, %326 : vector<24x32xf32>
    %cst_171 = arith.constant 0.000000e+00 : f32
    %328 = vector.broadcast %cst_171 : f32 to vector<24x32xf32>
    %329 = arith.maximumf %327, %328 : vector<24x32xf32>
    %330 = math.absf %327 : vector<24x32xf32>
    %cst_172 = arith.constant 0.000000e+00 : f32
    %331 = vector.broadcast %cst_172 : f32 to vector<24x32xf32>
    %332 = arith.subf %331, %330 : vector<24x32xf32>
    %333 = math.exp %332 : vector<24x32xf32>
    %cst_173 = arith.constant 1.000000e+00 : f32
    %334 = vector.broadcast %cst_173 : f32 to vector<24x32xf32>
    %335 = arith.addf %334, %333 : vector<24x32xf32>
    %336 = math.log %335 : vector<24x32xf32>
    %337 = arith.addf %329, %336 : vector<24x32xf32>
    %cst_174 = arith.constant 0.693147182 : f32
    %338 = vector.broadcast %cst_174 : f32 to vector<24x32xf32>
    %339 = arith.subf %337, %338 : vector<24x32xf32>
    %340 = arith.truncf %117 : vector<48x16xf32> to vector<48x16xbf16>
    %cst_175 = arith.constant dense<0.000000e+00> : vector<48x1xf32>
    %341 = tpu.matmul %340, %28, %cst_175 {dimension_numbers = #tpu.dot_dimension_numbers<[1], [0], [0], [1], [0, 0, 1, 1], [], []>} : vector<48x16xbf16>, vector<16x1xbf16>, vector<48x1xf32> -> vector<48x1xf32>
    %342 = vector.extract_strided_slice %24 {offsets = [9, 0], sizes = [1, 1], strides = [1, 1]} : vector<16x128xf32> to vector<1x1xf32>
    %343 = vector.broadcast %342 : vector<1x1xf32> to vector<48x1xf32>
    %344 = arith.addf %341, %343 : vector<48x1xf32>
    %cst_176 = arith.constant 0.000000e+00 : f32
    %345 = vector.broadcast %cst_176 : f32 to vector<48x1xf32>
    %346 = arith.subf %345, %344 : vector<48x1xf32>
    %347 = math.exp %346 : vector<48x1xf32>
    %cst_177 = arith.constant 1.000000e+00 : f32
    %348 = vector.broadcast %cst_177 : f32 to vector<48x1xf32>
    %349 = arith.addf %348, %347 : vector<48x1xf32>
    %350 = tpu.reciprocal %349 {approx = true} : vector<48x1xf32> -> vector<48x1xf32>
    %351 = arith.truncf %277 : vector<16x16xf32> to vector<16x16xbf16>
    %cst_178 = arith.constant dense<0.000000e+00> : vector<24x16xf32>
    %352 = tpu.matmul %3, %351, %cst_178 {dimension_numbers = #tpu.dot_dimension_numbers<[1], [0], [0], [1], [0, 0, 1, 1], [], []>} : vector<24x16xbf16>, vector<16x16xbf16>, vector<24x16xf32> -> vector<24x16xf32>
    %353 = arith.truncf %350 : vector<48x1xf32> to vector<48x1xbf16>
    %cst_179 = arith.constant dense<0.000000e+00> : vector<24x1xf32>
    %354 = tpu.matmul %6, %353, %cst_179 {dimension_numbers = #tpu.dot_dimension_numbers<[1], [0], [0], [1], [0, 0, 1, 1], [], []>} : vector<24x48xbf16>, vector<48x1xbf16>, vector<24x1xf32> -> vector<24x1xf32>
    %355 = vector.broadcast %354 : vector<24x1xf32> to vector<24x16xf32>
    %356 = arith.mulf %352, %355 : vector<24x16xf32>
    %357 = arith.truncf %277 : vector<16x16xf32> to vector<16x16xbf16>
    %cst_180 = arith.constant dense<0.000000e+00> : vector<24x16xf32>
    %358 = tpu.matmul %4, %357, %cst_180 {dimension_numbers = #tpu.dot_dimension_numbers<[1], [0], [0], [1], [0, 0, 1, 1], [], []>} : vector<24x16xbf16>, vector<16x16xbf16>, vector<24x16xf32> -> vector<24x16xf32>
    %359 = arith.truncf %350 : vector<48x1xf32> to vector<48x1xbf16>
    %cst_181 = arith.constant dense<0.000000e+00> : vector<24x1xf32>
    %360 = tpu.matmul %7, %359, %cst_181 {dimension_numbers = #tpu.dot_dimension_numbers<[1], [0], [0], [1], [0, 0, 1, 1], [], []>} : vector<24x48xbf16>, vector<48x1xbf16>, vector<24x1xf32> -> vector<24x1xf32>
    %361 = vector.broadcast %360 : vector<24x1xf32> to vector<24x16xf32>
    %362 = arith.mulf %358, %361 : vector<24x16xf32>
    %363 = arith.maximumf %356, %362 : vector<24x16xf32>
    %364 = arith.truncf %363 : vector<24x16xf32> to vector<24x16xbf16>
    %cst_182 = arith.constant dense<0.000000e+00> : vector<24x32xf32>
    %365 = tpu.matmul %364, %29, %cst_182 {dimension_numbers = #tpu.dot_dimension_numbers<[1], [0], [0], [1], [0, 0, 1, 1], [], []>} : vector<24x16xbf16>, vector<16x32xbf16>, vector<24x32xf32> -> vector<24x32xf32>
    %366 = arith.addf %365, %259 : vector<24x32xf32>
    %367 = vector.extract_strided_slice %24 {offsets = [10, 0], sizes = [1, 32], strides = [1, 1]} : vector<16x128xf32> to vector<1x32xf32>
    %368 = vector.broadcast %367 : vector<1x32xf32> to vector<24x32xf32>
    %369 = arith.addf %366, %368 : vector<24x32xf32>
    %370 = arith.maximumf %339, %369 : vector<24x32xf32>
    %cst_183 = arith.constant 0.000000e+00 : f32
    %371 = vector.broadcast %cst_183 : f32 to vector<24x32xf32>
    %372 = arith.cmpf ogt, %370, %371 : vector<24x32xf32>
    %cst_184 = arith.constant 0.00999999977 : f32
    %373 = vector.broadcast %cst_184 : f32 to vector<24x32xf32>
    %374 = arith.mulf %373, %370 : vector<24x32xf32>
    %375 = arith.select %372, %370, %374 : vector<24x32xi1>, vector<24x32xf32>
    %cst_185 = arith.constant 0.000000e+00 : f32
    %376 = vector.broadcast %cst_185 : f32 to vector<12x32xf32>
    %377 = arith.cmpf ogt, %283, %376 : vector<12x32xf32>
    %cst_186 = arith.constant 0.00999999977 : f32
    %378 = vector.broadcast %cst_186 : f32 to vector<12x32xf32>
    %379 = arith.mulf %378, %283 : vector<12x32xf32>
    %380 = arith.select %377, %283, %379 : vector<12x32xi1>, vector<12x32xf32>
    %381 = arith.truncf %57 : vector<24x8xf32> to vector<24x8xbf16>
    %cst_187 = arith.constant dense<0.000000e+00> : vector<24x32xf32>
    %382 = tpu.matmul %381, %37, %cst_187 {dimension_numbers = #tpu.dot_dimension_numbers<[1], [0], [0], [1], [0, 0, 1, 1], [], []>} : vector<24x8xbf16>, vector<8x32xbf16>, vector<24x32xf32> -> vector<24x32xf32>
    %383 = arith.truncf %375 : vector<24x32xf32> to vector<24x32xbf16>
    %cst_188 = arith.constant dense<0.000000e+00> : vector<24x32xf32>
    %384 = tpu.matmul %383, %38, %cst_188 {dimension_numbers = #tpu.dot_dimension_numbers<[1], [0], [0], [1], [0, 0, 1, 1], [], []>} : vector<24x32xbf16>, vector<32x32xbf16>, vector<24x32xf32> -> vector<24x32xf32>
    %385 = arith.addf %382, %384 : vector<24x32xf32>
    %386 = vector.extract_strided_slice %9 {offsets = [5, 0], sizes = [1, 32], strides = [1, 1]} : vector<16x128xf32> to vector<1x32xf32>
    %387 = vector.broadcast %386 : vector<1x32xf32> to vector<24x32xf32>
    %388 = arith.addf %385, %387 : vector<24x32xf32>
    %cst_189 = arith.constant 0.000000e+00 : f32
    %389 = vector.broadcast %cst_189 : f32 to vector<24x32xf32>
    %390 = arith.cmpf ogt, %388, %389 : vector<24x32xf32>
    %cst_190 = arith.constant 0.00999999977 : f32
    %391 = vector.broadcast %cst_190 : f32 to vector<24x32xf32>
    %392 = arith.mulf %391, %388 : vector<24x32xf32>
    %393 = arith.select %390, %388, %392 : vector<24x32xi1>, vector<24x32xf32>
    %394 = arith.truncf %393 : vector<24x32xf32> to vector<24x32xbf16>
    %cst_191 = arith.constant dense<0.000000e+00> : vector<24x32xf32>
    %395 = tpu.matmul %394, %39, %cst_191 {dimension_numbers = #tpu.dot_dimension_numbers<[1], [0], [0], [1], [0, 0, 1, 1], [], []>} : vector<24x32xbf16>, vector<32x32xbf16>, vector<24x32xf32> -> vector<24x32xf32>
    %396 = vector.extract_strided_slice %9 {offsets = [6, 0], sizes = [1, 32], strides = [1, 1]} : vector<16x128xf32> to vector<1x32xf32>
    %397 = vector.broadcast %396 : vector<1x32xf32> to vector<24x32xf32>
    %398 = arith.addf %395, %397 : vector<24x32xf32>
    %cst_192 = arith.constant 0.000000e+00 : f32
    %399 = vector.broadcast %cst_192 : f32 to vector<24x32xf32>
    %400 = arith.cmpf ogt, %398, %399 : vector<24x32xf32>
    %cst_193 = arith.constant 0.00999999977 : f32
    %401 = vector.broadcast %cst_193 : f32 to vector<24x32xf32>
    %402 = arith.mulf %401, %398 : vector<24x32xf32>
    %403 = arith.select %400, %398, %402 : vector<24x32xi1>, vector<24x32xf32>
    %404 = arith.truncf %403 : vector<24x32xf32> to vector<24x32xbf16>
    %cst_194 = arith.constant dense<0.000000e+00> : vector<24x128xf32>
    %405 = tpu.matmul %404, %40, %cst_194 {dimension_numbers = #tpu.dot_dimension_numbers<[1], [0], [0], [1], [0, 0, 1, 1], [], []>} : vector<24x32xbf16>, vector<32x128xbf16>, vector<24x128xf32> -> vector<24x128xf32>
    %406 = vector.extract_strided_slice %9 {offsets = [7, 0], sizes = [1, 128], strides = [1, 1]} : vector<16x128xf32> to vector<1x128xf32>
    %407 = vector.broadcast %406 : vector<1x128xf32> to vector<24x128xf32>
    %408 = arith.addf %405, %407 : vector<24x128xf32>
    %cst_195 = arith.constant 0.000000e+00 : f32
    %409 = vector.broadcast %cst_195 : f32 to vector<24x128xf32>
    %410 = arith.maximumf %408, %409 : vector<24x128xf32>
    %411 = arith.truncf %62 : vector<12x8xf32> to vector<12x8xbf16>
    %cst_196 = arith.constant dense<0.000000e+00> : vector<12x32xf32>
    %412 = tpu.matmul %411, %33, %cst_196 {dimension_numbers = #tpu.dot_dimension_numbers<[1], [0], [0], [1], [0, 0, 1, 1], [], []>} : vector<12x8xbf16>, vector<8x32xbf16>, vector<12x32xf32> -> vector<12x32xf32>
    %413 = arith.truncf %380 : vector<12x32xf32> to vector<12x32xbf16>
    %cst_197 = arith.constant dense<0.000000e+00> : vector<12x32xf32>
    %414 = tpu.matmul %413, %34, %cst_197 {dimension_numbers = #tpu.dot_dimension_numbers<[1], [0], [0], [1], [0, 0, 1, 1], [], []>} : vector<12x32xbf16>, vector<32x32xbf16>, vector<12x32xf32> -> vector<12x32xf32>
    %415 = arith.addf %412, %414 : vector<12x32xf32>
    %416 = vector.extract_strided_slice %9 {offsets = [8, 0], sizes = [1, 32], strides = [1, 1]} : vector<16x128xf32> to vector<1x32xf32>
    %417 = vector.broadcast %416 : vector<1x32xf32> to vector<12x32xf32>
    %418 = arith.addf %415, %417 : vector<12x32xf32>
    %cst_198 = arith.constant 0.000000e+00 : f32
    %419 = vector.broadcast %cst_198 : f32 to vector<12x32xf32>
    %420 = arith.maximumf %418, %419 : vector<12x32xf32>
    %421 = arith.addf %87, %420 : vector<12x32xf32>
    %422 = arith.truncf %421 : vector<12x32xf32> to vector<12x32xbf16>
    %cst_199 = arith.constant dense<0.000000e+00> : vector<12x32xf32>
    %423 = tpu.matmul %422, %35, %cst_199 {dimension_numbers = #tpu.dot_dimension_numbers<[1], [0], [0], [1], [0, 0, 1, 1], [], []>} : vector<12x32xbf16>, vector<32x32xbf16>, vector<12x32xf32> -> vector<12x32xf32>
    %424 = vector.extract_strided_slice %9 {offsets = [9, 0], sizes = [1, 32], strides = [1, 1]} : vector<16x128xf32> to vector<1x32xf32>
    %425 = vector.broadcast %424 : vector<1x32xf32> to vector<12x32xf32>
    %426 = arith.addf %423, %425 : vector<12x32xf32>
    %cst_200 = arith.constant 0.000000e+00 : f32
    %427 = vector.broadcast %cst_200 : f32 to vector<12x32xf32>
    %428 = arith.maximumf %426, %427 : vector<12x32xf32>
    %429 = arith.addf %421, %428 : vector<12x32xf32>
    %430 = arith.truncf %429 : vector<12x32xf32> to vector<12x32xbf16>
    %cst_201 = arith.constant dense<0.000000e+00> : vector<12x128xf32>
    %431 = tpu.matmul %430, %36, %cst_201 {dimension_numbers = #tpu.dot_dimension_numbers<[1], [0], [0], [1], [0, 0, 1, 1], [], []>} : vector<12x32xbf16>, vector<32x128xbf16>, vector<12x128xf32> -> vector<12x128xf32>
    %432 = vector.extract_strided_slice %9 {offsets = [10, 0], sizes = [1, 128], strides = [1, 1]} : vector<16x128xf32> to vector<1x128xf32>
    %433 = vector.broadcast %432 : vector<1x128xf32> to vector<12x128xf32>
    %434 = arith.addf %431, %433 : vector<12x128xf32>
    %435 = math.tanh %434 : vector<12x128xf32>
    %436 = arith.truncf %62 : vector<12x8xf32> to vector<12x8xbf16>
    %cst_202 = arith.constant dense<0.000000e+00> : vector<12x64xf32>
    %437 = tpu.matmul %436, %41, %cst_202 {dimension_numbers = #tpu.dot_dimension_numbers<[1], [0], [0], [1], [0, 0, 1, 1], [], []>} : vector<12x8xbf16>, vector<8x64xbf16>, vector<12x64xf32> -> vector<12x64xf32>
    %438 = vector.extract_strided_slice %9 {offsets = [11, 0], sizes = [1, 64], strides = [1, 1]} : vector<16x128xf32> to vector<1x64xf32>
    %439 = vector.broadcast %438 : vector<1x64xf32> to vector<12x64xf32>
    %440 = arith.addf %437, %439 : vector<12x64xf32>
    %cst_203 = arith.constant 0.000000e+00 : f32
    %441 = vector.broadcast %cst_203 : f32 to vector<12x64xf32>
    %442 = arith.maximumf %440, %441 : vector<12x64xf32>
    %443 = arith.truncf %442 : vector<12x64xf32> to vector<12x64xbf16>
    %cst_204 = arith.constant dense<0.000000e+00> : vector<12x64xf32>
    %444 = tpu.matmul %443, %42, %cst_204 {dimension_numbers = #tpu.dot_dimension_numbers<[1], [0], [0], [1], [0, 0, 1, 1], [], []>} : vector<12x64xbf16>, vector<64x64xbf16>, vector<12x64xf32> -> vector<12x64xf32>
    %445 = vector.extract_strided_slice %9 {offsets = [12, 0], sizes = [1, 64], strides = [1, 1]} : vector<16x128xf32> to vector<1x64xf32>
    %446 = vector.broadcast %445 : vector<1x64xf32> to vector<12x64xf32>
    %447 = arith.addf %444, %446 : vector<12x64xf32>
    %cst_205 = arith.constant 0.000000e+00 : f32
    %448 = vector.broadcast %cst_205 : f32 to vector<12x64xf32>
    %449 = arith.maximumf %447, %448 : vector<12x64xf32>
    %450 = arith.truncf %449 : vector<12x64xf32> to vector<12x64xbf16>
    %cst_206 = arith.constant dense<0.000000e+00> : vector<12x128xf32>
    %451 = tpu.matmul %450, %43, %cst_206 {dimension_numbers = #tpu.dot_dimension_numbers<[1], [0], [0], [1], [0, 0, 1, 1], [], []>} : vector<12x64xbf16>, vector<64x128xbf16>, vector<12x128xf32> -> vector<12x128xf32>
    %452 = vector.extract_strided_slice %9 {offsets = [13, 0], sizes = [1, 128], strides = [1, 1]} : vector<16x128xf32> to vector<1x128xf32>
    %453 = vector.broadcast %452 : vector<1x128xf32> to vector<12x128xf32>
    %454 = arith.addf %451, %453 : vector<12x128xf32>
    %455 = arith.addf %454, %435 : vector<12x128xf32>
    %c0_207 = arith.constant 0 : index
    %c0_208 = arith.constant 0 : index
    %456 = vector.load %arg49[%c0_207, %c0_208] : memref<24x128xf32, #tpu.memory_space<vmem>>, vector<24x128xf32>
    tpu.vector_store %arg49[%c0_207, %c0_208], %410 {strides = array<i32>} : memref<24x128xf32, #tpu.memory_space<vmem>>, vector<24x128xf32>,
    %c0_209 = arith.constant 0 : index
    %c0_210 = arith.constant 0 : index
    %457 = vector.load %arg50[%c0_209, %c0_210] : memref<12x128xf32, #tpu.memory_space<vmem>>, vector<12x128xf32>
    tpu.vector_store %arg50[%c0_209, %c0_210], %455 {strides = array<i32>} : memref<12x128xf32, #tpu.memory_space<vmem>>, vector<12x128xf32>,
    return
  }
}

</mosaic_0001>

<bundles_post_ra>
// kernel: route_gnn_forward.1
= control target key start
LH: loop header
LB: loop body
LE: loop exit
PB: predicated region body
PF: predicated region fallthrough
CT: control target
= control target key end

     0   :  { %s6629_s6 = smov 1   ;;  %s6630_s10 = smov 2   ;;  %s7788_s0 = inlined_call_operand.smem [shape: u32[51], index: -1, kind: input, shape index: {}] }
   0x1   :  { %s6728_s5 = sld [smem:[%s7788_s0]]   ;;  %s6631_s14 = smov 3  }
   0x2   :  { %s6733_s9 = sld [smem:[%s7788_s0 + %s6629_s6]]   ;;  %s6632_s18 = smov 4  }
   0x3   :  { %s6738_s13 = sld [smem:[%s7788_s0 + %s6630_s10]]   ;;  %s6633_s22 = smov 5  }
   0x4   :  { %s6743_s17 = sld [smem:[%s7788_s0 + %s6631_s14]]   ;;  %s6634_s26 = smov 6  }
   0x5   :  { %s6748_s21 = sld [smem:[%s7788_s0 + %s6632_s18]]   ;;  %s6635_s30 = smov 7  }
   0x6   :  { %s6753_s25 = sld [smem:[%s7788_s0 + %s6633_s22]]   ;;  %s6636_s4 = smov 8  }
   0x7   :  { %7802 = sst [smem:[#allocation72_spill]] %s6728_s5  ;;  %s6637_s10 = smov 9  }
   0x8   :  { %s6758_s29 = sld [smem:[%s7788_s0 + %s6634_s26]]   ;;  %s6638_s15 = smov 10  }
   0x9   :  { %7803 = sst [smem:[#allocation73_spill]] %s6738_s13  ;;  %s6639_s20 = smov 11  }
   0xa   :  { %s6763_s3 = sld [smem:[%s7788_s0 + %s6635_s30]]   ;;  %s6640_s26 = smov 12  }
   0xb   :  { %7804 = sst [smem:[#allocation74_spill]] %s6748_s21  ;;  %s6641_s1 = smov 13  }
   0xc   :  { %s6768_s8 = sld [smem:[%s7788_s0 + %s6636_s4]]   ;;  %s6642_s7 = smov 14  }
   0xd   :  { %s6773_s14 = sld [smem:[%s7788_s0 + %s6637_s10]]   ;;  %s6644_s22 = smov 16  }
   0xe   :  { %7805 = sst [smem:[#allocation75_spill]] %s6758_s29  ;;  %s6645_s28 = smov 17  }
   0xf   :  { %s6778_s19 = sld [smem:[%s7788_s0 + %s6638_s15]]   ;;  %s6643_s15 = smov 15  }
  0x10   :  { %s6783_s24 = sld [smem:[%s7788_s0 + %s6639_s20]]  }
  0x11   :  { %s6788_s30 = sld [smem:[%s7788_s0 + %s6640_s26]]  }
  0x12   :  { %7806 = sst [smem:[#allocation76_spill]] %s6768_s8 }
  0x13   :  { %s6793_s6 = sld [smem:[%s7788_s0 + %s6641_s1]]  }
  0x14   :  { %s6798_s12 = sld [smem:[%s7788_s0 + %s6642_s7]]   ;;  %s6646_s7 = smov 18  }
  0x15   :  { %7807 = sst [smem:[#allocation77_spill]] %s6778_s19 }
  0x16   :  { %s6803_s20 = sld [smem:[%s7788_s0 + %s6643_s15]]   ;;  %s6647_s15 = smov 19  }
  0x17   :  { %7808 = sst [smem:[#allocation78_spill]] %s6788_s30 }
  0x18   :  { %s6808_s27 = sld [smem:[%s7788_s0 + %s6644_s22]]   ;;  %s6648_s22 = smov 20  }
  0x19   :  { %s6813_s4 = sld [smem:[%s7788_s0 + %s6645_s28]]   ;;  %s6649_s28 = smov 21  }
  0x1a   :  { %7809 = sst [smem:[#allocation79_spill]] %s6798_s12 }
  0x1b   :  { %s6818_s12 = sld [smem:[%s7788_s0 + %s6646_s7]]   ;;  %s6650_s7 = smov 22  }
  0x1c   :  { %s6823_s30 = sld [smem:[%s7788_s0 + %s6647_s15]]   ;;  %s6651_s15 = smov 23  }
  0x1d   :  { %s6833_s19 = sld [smem:[%s7788_s0 + %s6649_s28]]   ;;  %s6653_s28 = smov 25  }
  0x1e   :  { %7810 = sst [smem:[#allocation80_spill]] %s6808_s27 }
  0x1f   :  { %s6828_s27 = sld [smem:[%s7788_s0 + %s6648_s22]]   ;;  %s6652_s22 = smov 24  }
  0x20   :  { %s6843_s8 = sld [smem:[%s7788_s0 + %s6651_s15]]   ;;  %s6655_s15 = smov 27  }
  0x21   :  { %7811 = sst [smem:[#allocation81_spill]] %s6818_s12 }
  0x22   :  { %s6838_s12 = sld [smem:[%s7788_s0 + %s6650_s7]]   ;;  %s6654_s7 = smov 26  }
  0x23   :  { %s6853_s29 = sld [smem:[%s7788_s0 + %s6653_s28]]   ;;  %s6657_s28 = smov 29  }
  0x24   :  { %s6873_s21 = sld [smem:[%s7788_s0 + %s6657_s28]]   ;;  %s6661_s28 = smov 33  }
  0x25   :  { %7812 = sst [smem:[#allocation82_spill]] %s6828_s27 }
  0x26   :  { %7814 = sst [smem:[#allocation84_spill]] %s6843_s8 }
  0x27   :  { %s6848_s27 = sld [smem:[%s7788_s0 + %s6652_s22]]   ;;  %s6656_s22 = smov 28  }
  0x28   :  { %7813 = sst [smem:[#allocation83_spill]] %s6838_s12 }
  0x29   :  { %s6858_s12 = sld [smem:[%s7788_s0 + %s6654_s7]]   ;;  %s6658_s7 = smov 30  }
  0x2a   :  { %s6863_s8 = sld [smem:[%s7788_s0 + %s6655_s15]]   ;;  %s6659_s15 = smov 31  }
  0x2b   :  { %s6883_s13 = sld [smem:[%s7788_s0 + %s6659_s15]]   ;;  %s6663_s15 = smov 35  }
  0x2c   :  { %s6893_s5 = sld [smem:[%s7788_s0 + %s6661_s28]]   ;;  %s6665_s28 = smov 37  }
  0x2d   :  { %7815 = sst [smem:[#allocation85_spill]] %s6848_s27 }
  0x2e   :  { %s6868_s27 = sld [smem:[%s7788_s0 + %s6656_s22]]   ;;  %s6660_s22 = smov 32  }
  0x2f   :  { %7816 = sst [smem:[#allocation86_spill]] %s6858_s12 }
  0x30   :  { %s6878_s12 = sld [smem:[%s7788_s0 + %s6658_s7]]   ;;  %s6662_s7 = smov 34  }
  0x31   :  { %7819 = sst [smem:[#allocation89_spill]] %s6883_s13 }
  0x32   :  { %7821 = sst [smem:[#allocation91_spill]] %s6893_s5 }
  0x33   :  { %s6903_s13 = sld [smem:[%s7788_s0 + %s6663_s15]]   ;;  %s6667_s15 = smov 39  }
  0x34   :  { %7817 = sst [smem:[#allocation87_spill]] %s6868_s27 }
  0x35   :  { %s6888_s27 = sld [smem:[%s7788_s0 + %s6660_s22]]   ;;  %s6664_s22 = smov 36  }
  0x36   :  { %7818 = sst [smem:[#allocation88_spill]] %s6878_s12 }
  0x37   :  { %s6898_s12 = sld [smem:[%s7788_s0 + %s6662_s7]]   ;;  %s6666_s7 = smov 38  }
  0x38   :  { %s6913_s5 = sld [smem:[%s7788_s0 + %s6665_s28]]   ;;  %s6669_s28 = smov 41  }
  0x39   :  { %7823 = sst [smem:[#allocation93_spill]] %s6903_s13 }
  0x3a   :  { %s6923_s13 = sld [smem:[%s7788_s0 + %s6667_s15]]   ;;  %s6671_s15 = smov 43  }
  0x3b   :  { %7820 = sst [smem:[#allocation90_spill]] %s6888_s27 }
  0x3c   :  { %s6908_s27 = sld [smem:[%s7788_s0 + %s6664_s22]]   ;;  %s6668_s22 = smov 40  }
  0x3d   :  { %7822 = sst [smem:[#allocation92_spill]] %s6898_s12 }
  0x3e   :  { %7825 = sst [smem:[#allocation95_spill]] %s6913_s5 }
  0x3f   :  { %s6918_s12 = sld [smem:[%s7788_s0 + %s6666_s7]]   ;;  %s6670_s7 = smov 42  }
  0x40   :  { %7827 = sst [smem:[#allocation97_spill]] %s6923_s13 }
  0x41   :  { %s6933_s5 = sld [smem:[%s7788_s0 + %s6669_s28]]   ;;  %s6673_s28 = smov 45  }
  0x42   :  { %7824 = sst [smem:[#allocation94_spill]] %s6908_s27 }
  0x43   :  { %s6928_s27 = sld [smem:[%s7788_s0 + %s6668_s22]]   ;;  %s6672_s22 = smov 44  }
  0x44   :  { %s6943_s13 = sld [smem:[%s7788_s0 + %s6671_s15]]   ;;  %s6675_s15 = smov 47  }
  0x45   :  { %7826 = sst [smem:[#allocation96_spill]] %s6918_s12 }
  0x46   :  { %s6938_s12 = sld [smem:[%s7788_s0 + %s6670_s7]]   ;;  %s6674_s7 = smov 46  }
  0x47   :  { %7829 = sst [smem:[#allocation99_spill]] %s6933_s5 }
  0x48   :  { %s6953_s5 = sld [smem:[%s7788_s0 + %s6673_s28]]   ;;  %s6677_s28 = smov 49  }
  0x49   :  { %7828 = sst [smem:[#allocation98_spill]] %s6928_s27 }
  0x4a   :  { %7831 = sst [smem:[#allocation101_spill]] %s6943_s13 }
  0x4b   :  { %s6948_s27 = sld [smem:[%s7788_s0 + %s6672_s22]]   ;;  %s6676_s22 = smov 48  }
  0x4c   :  { %7830 = sst [smem:[#allocation100_spill]] %s6938_s12 }
  0x4d   :  { %s6958_s12 = sld [smem:[%s7788_s0 + %s6674_s7]]   ;;  %s6678_s7 = smov 50  }
  0x4e   :  { %7833 = sst [smem:[#allocation103_spill]] %s6953_s5 }
  0x4f   :  { %s6963_s13 = sld [smem:[%s7788_s0 + %s6675_s15]]  }
  0x50   :  { %s6973_s5 = sld [smem:[%s7788_s0 + %s6677_s28]]  }
  0x51   :  { %7832 = sst [smem:[#allocation102_spill]] %s6948_s27 }
  0x52   :  { %s6968_s27 = sld [smem:[%s7788_s0 + %s6676_s22]]  }
  0x53   :  { %7834 = sst [smem:[#allocation104_spill]] %s6958_s12 }
  0x54   :  { %s6978_s12 = sld [smem:[%s7788_s0 + %s6678_s7]]  }
  0x55   :  { %107 = vsyncpa [#allocation3], 0 }
  0x56   :  { %108 = vsyncpa [#allocation5], 0 }
  0x57   :  { %109 = vsyncpa [#allocation8], 0 }
  0x58   :  { %110 = vsyncpa [#allocation11], 0 }
  0x59   :  { %111 = vsyncpa [#allocation14], 0 }
  0x5a   :  { %112 = vsyncpa [#allocation17], 0 }
  0x5b   :  { %113 = vsyncpa [#allocation20], 0 }
  0x5c   :  { %114 = vsyncpa [#allocation23], 0 }
  0x5d   :  { %115 = vsyncpa [#allocation26], 0 }
  0x5e   :  { %116 = vsyncpa [#allocation29], 0 }
  0x5f   :  { %117 = vsyncpa [#allocation32], 0 }
  0x60   :  { %118 = vsyncpa [#allocation35], 0 }
  0x61   :  { %119 = vsyncpa [#allocation38], 0 }
  0x62   :  { %120 = vsyncpa [#allocation41], 0 }
  0x63   :  { %121 = vsyncpa [#allocation44], 0 }
  0x64   :  { %122 = vsyncpa [#allocation47], 0 }
  0x65   :  { %123 = vsyncpa [#allocation50], 0 }
  0x66   :  { %124 = vsyncpa [#allocation53], 0  ;;  %s6679_s0 = smov [#allocation4]   ;;  %s6680_s16 = smov [#allocation7]  }
  0x67   :  { %s142_s15 = sshll.u32 %s6679_s0, 4  ;;  %s166_s18 = sshll.u32 %s6680_s16, 4  ;;  %s143_s15 = int_to_ptr.vmem [resolvable:$true] %s142_s15  ;;  %s167_s18 = int_to_ptr.vmem [resolvable:$true] %s166_s18 }
  0x68   :  { %s5921_s22 = scalar_lea.vmem %s143_s15, 128  ;;  %p5926_p1 = scmp.lt.s32.totalorder %s143_s15, %s143_s15 }
  0x69   :  { %p5922_p0 = scmp.ne.s32.totalorder %s143_s15, %s5921_s22  ;;  %p5927_p2 = scmp.lt.s32.totalorder %s5921_s22, %s5921_s22 }
  0x6b   :  { %p5928_p3 = por %p5927_p2, %p5926_p1 }
  0x6d   :  { %p5929_p4 = pnand %p5928_p3, %p5922_p0 }
  0x6f   :  { %5932 = shalt.err (!%p5929_p4)
}
  0x70   :  { %s6681_s23 = smov 64   ;;  %s6682_s26 = smov 4  }
  0x71   :  { %148 = dma.hbm_to_vmem [thread:$0]  %s6733_s9, 128, %s143_s15, [#allocation5], %s6681_s23, %s6681_s23, %s6682_s26  }
  0x72   :  { %s5941_s28 = scalar_lea.vmem %s167_s18, 192  ;;  %p5946_p6 = scmp.lt.s32.totalorder %s167_s18, %s167_s18 }
  0x73   :  { %p5942_p5 = scmp.ne.s32.totalorder %s167_s18, %s5941_s28  ;;  %p5947_p7 = scmp.lt.s32.totalorder %s5941_s28, %s5941_s28 }
  0x75   :  { %p5948_p8 = por %p5947_p7, %p5946_p6 }
  0x77   :  { %p5949_p9 = pnand %p5948_p8, %p5942_p5 }
  0x79   :  { %5952 = shalt.err (!%p5949_p9)
}
  0x7a   :  { %172 = dma.hbm_to_vmem [thread:$0]  %s6743_s17, 192, %s167_s18, [#allocation8], %s6681_s23, %s6681_s23, %s6682_s26  }
  0x7b   :  { %s6683_s1 = smov [#allocation10]   ;;  %s6684_s7 = smov [#allocation13]  }
  0x7c   :  { %s190_s2 = sshll.u32 %s6683_s1, 4  ;;  %s214_s10 = sshll.u32 %s6684_s7, 4  ;;  %s191_s2 = int_to_ptr.vmem [resolvable:$true] %s190_s2  ;;  %s215_s10 = int_to_ptr.vmem [resolvable:$true] %s214_s10 }
  0x7d   :  { %s5961_s11 = scalar_lea.vmem %s191_s2, 384  ;;  %p5966_p11 = scmp.lt.s32.totalorder %s191_s2, %s191_s2 }
  0x7e   :  { %p5962_p10 = scmp.ne.s32.totalorder %s191_s2, %s5961_s11  ;;  %p5967_p12 = scmp.lt.s32.totalorder %s5961_s11, %s5961_s11 }
  0x80   :  { %p5968_p13 = por %p5967_p12, %p5966_p11 }
  0x82   :  { %p5969_p0 = pnand %p5968_p13, %p5962_p10 }
  0x84   :  { %5972 = shalt.err (!%p5969_p0)
}
  0x85   :  { %196 = dma.hbm_to_vmem [thread:$0]  %s6753_s25, 384, %s191_s2, [#allocation11], %s6681_s23, %s6681_s23, %s6682_s26  }
  0x86   :  { %s5981_s9 = scalar_lea.vmem %s215_s10, 192  ;;  %p5986_p2 = scmp.lt.s32.totalorder %s215_s10, %s215_s10 }
  0x87   :  { %p5982_p1 = scmp.ne.s32.totalorder %s215_s10, %s5981_s9  ;;  %p5987_p3 = scmp.lt.s32.totalorder %s5981_s9, %s5981_s9 }
  0x89   :  { %p5988_p4 = por %p5987_p3, %p5986_p2 }
  0x8b   :  { %p5989_p5 = pnand %p5988_p4, %p5982_p1 }
  0x8d   :  { %5992 = shalt.err (!%p5989_p5)
}
  0x8e   :  { %220 = dma.hbm_to_vmem [thread:$0]  %s6763_s3, 192, %s215_s10, [#allocation14], %s6681_s23, %s6681_s23, %s6682_s26  }
  0x8f   :  { %s6685_s17 = smov [#allocation16]  }
  0x90   :  { %s238_s0 = sshll.u32 %s6685_s17, 4  ;;  %s239_s0 = int_to_ptr.vmem [resolvable:$true] %s238_s0 }
  0x91   :  { %s6001_s15 = scalar_lea.vmem %s239_s0, 256  ;;  %p6006_p7 = scmp.lt.s32.totalorder %s239_s0, %s239_s0 }
  0x92   :  { %p6002_p6 = scmp.ne.s32.totalorder %s239_s0, %s6001_s15  ;;  %p6007_p8 = scmp.lt.s32.totalorder %s6001_s15, %s6001_s15 }
  0x94   :  { %p6008_p9 = por %p6007_p8, %p6006_p7 }
  0x96   :  { %p6009_p10 = pnand %p6008_p9, %p6002_p6 }
  0x98   :  { %6012 = shalt.err (!%p6009_p10)
}
  0x99   :  { %s6686_s25 = smov 128   ;;  %s6687_s16 = smov 8  }
  0x9a   :  { %244 = dma.hbm_to_vmem [thread:$0]  %s6773_s14, 256, %s239_s0, [#allocation17], %s6686_s25, %s6686_s25, %s6687_s16  }
  0x9b   :  { %s6688_s18 = smov [#allocation19]   ;;  %s6689_s3 = smov [#allocation22]  }
  0x9c   :  { %s261_s22 = sshll.u32 %s6688_s18, 4  ;;  %s281_s28 = sshll.u32 %s6689_s3, 4  ;;  %s262_s22 = int_to_ptr.vmem [resolvable:$true] %s261_s22  ;;  %s282_s28 = int_to_ptr.vmem [resolvable:$true] %s281_s28 }
  0x9d   :  { %s6021_s1 = scalar_lea.vmem %s262_s22, 64  ;;  %p6026_p12 = scmp.lt.s32.totalorder %s262_s22, %s262_s22 }
  0x9e   :  { %p6022_p11 = scmp.ne.s32.totalorder %s262_s22, %s6021_s1  ;;  %p6027_p13 = scmp.lt.s32.totalorder %s6021_s1, %s6021_s1 }
  0xa0   :  { %p6028_p0 = por %p6027_p13, %p6026_p12 }
  0xa2   :  { %p6029_p1 = pnand %p6028_p0, %p6022_p11 }
  0xa4   :  { %6032 = shalt.err (!%p6029_p1)
}
  0xa5   :  { %264 = dma.hbm_to_vmem [thread:$0]  %s6783_s24, 64, %s262_s22, [#allocation20]  }
  0xa6   :  { %s6041_s2 = scalar_lea.vmem %s282_s28, 64  ;;  %p6046_p3 = scmp.lt.s32.totalorder %s282_s28, %s282_s28 }
  0xa7   :  { %p6042_p2 = scmp.ne.s32.totalorder %s282_s28, %s6041_s2  ;;  %p6047_p4 = scmp.lt.s32.totalorder %s6041_s2, %s6041_s2 }
  0xa9   :  { %p6048_p5 = por %p6047_p4, %p6046_p3 }
  0xab   :  { %p6049_p6 = pnand %p6048_p5, %p6042_p2 }
  0xad   :  { %6052 = shalt.err (!%p6049_p6)
}
  0xae   :  { %284 = dma.hbm_to_vmem [thread:$0]  %s6793_s6, 64, %s282_s28, [#allocation23]  }
  0xaf   :  { %s6690_s14 = smov [#allocation25]   ;;  %s6691_s10 = smov [#allocation28]  }
  0xb0   :  { %s300_s7 = sshll.u32 %s6690_s14, 4  ;;  %s324_s11 = sshll.u32 %s6691_s10, 4  ;;  %s301_s7 = int_to_ptr.vmem [resolvable:$true] %s300_s7  ;;  %s325_s11 = int_to_ptr.vmem [resolvable:$true] %s324_s11 }
  0xb1   :  { %s6061_s9 = scalar_lea.vmem %s301_s7, 256  ;;  %p6066_p8 = scmp.lt.s32.totalorder %s301_s7, %s301_s7 }
  0xb2   :  { %p6062_p7 = scmp.ne.s32.totalorder %s301_s7, %s6061_s9  ;;  %p6067_p9 = scmp.lt.s32.totalorder %s6061_s9, %s6061_s9 }
  0xb4   :  { %p6068_p10 = por %p6067_p9, %p6066_p8 }
  0xb6   :  { %p6069_p11 = pnand %p6068_p10, %p6062_p7 }
  0xb8   :  { %6072 = shalt.err (!%p6069_p11)
}
  0xb9   :  { %306 = dma.hbm_to_vmem [thread:$0]  %s6803_s20, 256, %s301_s7, [#allocation26], %s6686_s25, %s6686_s25, %s6687_s16  }
  0xba   :  { %s6081_s24 = scalar_lea.vmem %s325_s11, 256  ;;  %p6086_p13 = scmp.lt.s32.totalorder %s325_s11, %s325_s11 }
  0xbb   :  { %p6082_p12 = scmp.ne.s32.totalorder %s325_s11, %s6081_s24  ;;  %p6087_p0 = scmp.lt.s32.totalorder %s6081_s24, %s6081_s24 }
  0xbd   :  { %p6088_p1 = por %p6087_p0, %p6086_p13 }
  0xbf   :  { %p6089_p2 = pnand %p6088_p1, %p6082_p12 }
  0xc1   :  { %6092 = shalt.err (!%p6089_p2)
}
  0xc2   :  { %330 = dma.hbm_to_vmem [thread:$0]  %s6813_s4, 256, %s325_s11, [#allocation29], %s6681_s23, %s6681_s23, %s6682_s26  }
  0xc3   :  { %s6692_s6 = smov [#allocation31]   ;;  %s6693_s0 = smov [#allocation34]  }
  0xc4   :  { %s348_s17 = sshll.u32 %s6692_s6, 4  ;;  %s372_s15 = sshll.u32 %s6693_s0, 4  ;;  %s349_s17 = int_to_ptr.vmem [resolvable:$true] %s348_s17  ;;  %s373_s15 = int_to_ptr.vmem [resolvable:$true] %s372_s15 }
  0xc5   :  { %s6101_s18 = scalar_lea.vmem %s349_s17, 128  ;;  %p6106_p4 = scmp.lt.s32.totalorder %s349_s17, %s349_s17 }
  0xc6   :  { %p6102_p3 = scmp.ne.s32.totalorder %s349_s17, %s6101_s18  ;;  %p6107_p5 = scmp.lt.s32.totalorder %s6101_s18, %s6101_s18 }
  0xc8   :  { %p6108_p6 = por %p6107_p5, %p6106_p4 }
  0xca   :  { %p6109_p7 = pnand %p6108_p6, %p6102_p3 }
  0xcc   :  { %6112 = shalt.err (!%p6109_p7)
}
  0xcd   :  { %354 = dma.hbm_to_vmem [thread:$0]  %s6823_s30, 128, %s349_s17, [#allocation32], %s6681_s23, %s6681_s23, %s6682_s26  }
  0xce   :  { %s6121_s20 = scalar_lea.vmem %s373_s15, 256  ;;  %p6126_p9 = scmp.lt.s32.totalorder %s373_s15, %s373_s15 }
  0xcf   :  { %p6122_p8 = scmp.ne.s32.totalorder %s373_s15, %s6121_s20  ;;  %p6127_p10 = scmp.lt.s32.totalorder %s6121_s20, %s6121_s20 }
  0xd1   :  { %p6128_p11 = por %p6127_p10, %p6126_p9 }
  0xd3   :  { %p6129_p12 = pnand %p6128_p11, %p6122_p8 }
  0xd5   :  { %6132 = shalt.err (!%p6129_p12)
}
  0xd6   :  { %378 = dma.hbm_to_vmem [thread:$0]  %s6833_s19, 256, %s373_s15, [#allocation35], %s6686_s25, %s6686_s25, %s6687_s16  }
  0xd7   :  { %s6694_s4 = smov [#allocation37]   ;;  %s6695_s3 = smov [#allocation40]  }
  0xd8   :  { %s400_s22 = sshll.u32 %s6694_s4, 4  ;;  %s424_s28 = sshll.u32 %s6695_s3, 4  ;;  %s401_s22 = int_to_ptr.vmem [resolvable:$true] %s400_s22  ;;  %s425_s28 = int_to_ptr.vmem [resolvable:$true] %s424_s28 }
  0xd9   :  { %s6141_s1 = scalar_lea.vmem %s401_s22, 128  ;;  %p6146_p0 = scmp.lt.s32.totalorder %s401_s22, %s401_s22 }
  0xda   :  { %p6142_p13 = scmp.ne.s32.totalorder %s401_s22, %s6141_s1  ;;  %p6147_p1 = scmp.lt.s32.totalorder %s6141_s1, %s6141_s1 }
  0xdc   :  { %p6148_p2 = por %p6147_p1, %p6146_p0 }
  0xde   :  { %p6149_p3 = pnand %p6148_p2, %p6142_p13 }
  0xe0   :  { %6152 = shalt.err (!%p6149_p3)
}
  0xe1   :  { %406 = dma.hbm_to_vmem [thread:$0]  %s6853_s29, 128, %s401_s22, [#allocation38], %s6681_s23, %s6681_s23, %s6682_s26  }
  0xe2   :  { %s6161_s30 = scalar_lea.vmem %s425_s28, 256  ;;  %p6166_p5 = scmp.lt.s32.totalorder %s425_s28, %s425_s28 }
  0xe3   :  { %p6162_p4 = scmp.ne.s32.totalorder %s425_s28, %s6161_s30  ;;  %p6167_p6 = scmp.lt.s32.totalorder %s6161_s30, %s6161_s30 }
  0xe5   :  { %p6168_p7 = por %p6167_p6, %p6166_p5 }
  0xe7   :  { %p6169_p8 = pnand %p6168_p7, %p6162_p4 }
  0xe9   :  { %6172 = shalt.err (!%p6169_p8)
}
  0xea   :  { %430 = dma.hbm_to_vmem [thread:$0]  %s6863_s8, 256, %s425_s28, [#allocation41], %s6681_s23, %s6681_s23, %s6682_s26  }
  0xeb   :  { %s6696_s19 = smov [#allocation43]   ;;  %s6697_s14 = smov [#allocation46]  }
  0xec   :  { %s448_s2 = sshll.u32 %s6696_s19, 4  ;;  %s477_s7 = sshll.u32 %s6697_s14, 4  ;;  %s449_s2 = int_to_ptr.vmem [resolvable:$true] %s448_s2  ;;  %s478_s7 = int_to_ptr.vmem [resolvable:$true] %s477_s7 }
  0xed   :  { %s6181_s10 = scalar_lea.vmem %s449_s2, 128  ;;  %p6186_p10 = scmp.lt.s32.totalorder %s449_s2, %s449_s2 }
  0xee   :  { %p6182_p9 = scmp.ne.s32.totalorder %s449_s2, %s6181_s10  ;;  %p6187_p11 = scmp.lt.s32.totalorder %s6181_s10, %s6181_s10 }
  0xf0   :  { %p6188_p12 = por %p6187_p11, %p6186_p10 }
  0xf2   :  { %p6189_p13 = pnand %p6188_p12, %p6182_p9 }
  0xf4   :  { %6192 = shalt.err (!%p6189_p13)
}
  0xf5   :  { %454 = dma.hbm_to_vmem [thread:$0]  %s6873_s21, 128, %s449_s2, [#allocation44], %s6681_s23, %s6681_s23, %s6682_s26  }
  0xf6   :  { %s6201_s29 = scalar_lea.vmem %s478_s7, 64  ;;  %p6206_p1 = scmp.lt.s32.totalorder %s478_s7, %s478_s7 }
  0xf7   :  { %p6202_p0 = scmp.ne.s32.totalorder %s478_s7, %s6201_s29  ;;  %p6207_p2 = scmp.lt.s32.totalorder %s6201_s29, %s6201_s29 }
  0xf9   :  { %p6208_p3 = por %p6207_p2, %p6206_p1 }
  0xfb   :  { %p6209_p4 = pnand %p6208_p3, %p6202_p0 }
  0xfd   :  { %6212 = shalt.err (!%p6209_p4)
}
  0xfe   :  { %s7835_s8 = sld [smem:[#allocation91_spill]]  ;;  %s6698_s11 = smov [#allocation49]  }
  0xff   :  { %s498_s9 = sshll.u32 %s6698_s11, 4  ;;  %s6699_s24 = smov [#allocation2]   ;;  %s499_s9 = int_to_ptr.vmem [resolvable:$true] %s498_s9 }
 0x100   :  { %s130_s6 = sshll.u32 %s6699_s24, 4  ;;  %s6221_s17 = scalar_lea.vmem %s499_s9, 256  ;;  %s131_s6 = int_to_ptr.vmem [resolvable:$true] %s130_s6 }
 0x101   :  { %p6222_p5 = scmp.ne.s32.totalorder %s499_s9, %s6221_s17  ;;  %p6226_p6 = scmp.lt.s32.totalorder %s499_s9, %s499_s9 }
 0x102   :  { %p6227_p7 = scmp.lt.s32.totalorder %s6221_s17, %s6221_s17 }
 0x104   :  { %480 = dma.hbm_to_vmem [thread:$0]  %s7835_s8, 64, %s478_s7, [#allocation47]  }
 0x105   :  { %p6228_p8 = por %p6227_p7, %p6226_p6 }
 0x107   :  { %p6229_p9 = pnand %p6228_p8, %p6222_p5 }
 0x109   :  { %6232 = shalt.err (!%p6229_p9)
}
 0x10a   :  { %s7836_s21 = sld [smem:[#allocation93_spill]]  ;;  %s6241_s0 = scalar_lea.vmem %s131_s6, 128 }
 0x10b   :  { %p6242_p10 = scmp.ne.s32.totalorder %s131_s6, %s6241_s0  ;;  %p6246_p11 = scmp.lt.s32.totalorder %s131_s6, %s131_s6 }
 0x10c   :  { %p6247_p12 = scmp.lt.s32.totalorder %s6241_s0, %s6241_s0 }
 0x10e   :  { %p6248_p13 = por %p6247_p12, %p6246_p11 }
 0x110   :  { %504 = dma.hbm_to_vmem [thread:$0]  %s7836_s21, 256, %s499_s9, [#allocation50], %s6681_s23, %s6681_s23, %s6682_s26  }
 0x111   :  { %p6249_p0 = pnand %p6248_p13, %p6242_p10 }
 0x113   :  { %6252 = shalt.err (!%p6249_p0)
}
 0x114   :  { %s7837_s15 = sld [smem:[#allocation72_spill]]  ;;  %s6700_s18 = smov [#allocation6]  }
 0x115   :  { %s154_s20 = sshll.u32 %s6700_s18, 4  ;;  %s6701_s4 = smov [#allocation9]   ;;  %s155_s20 = int_to_ptr.vmem [resolvable:$true] %s154_s20 }
 0x116   :  { %s178_s22 = sshll.u32 %s6701_s4, 4  ;;  %s6261_s3 = scalar_lea.vmem %s155_s20, 128  ;;  %s179_s22 = int_to_ptr.vmem [resolvable:$true] %s178_s22 }
 0x117   :  { %p6262_p1 = scmp.ne.s32.totalorder %s155_s20, %s6261_s3  ;;  %p6266_p2 = scmp.lt.s32.totalorder %s155_s20, %s155_s20 }
 0x118   :  { %p6267_p3 = scmp.lt.s32.totalorder %s6261_s3, %s6261_s3 }
 0x11a   :  { %136 = dma.hbm_to_vmem [thread:$0]  %s7837_s15, 128, %s131_s6, [#allocation3], %s6681_s23, %s6681_s23, %s6682_s26  }
 0x11b   :  { %p6268_p4 = por %p6267_p3, %p6266_p2 }
 0x11d   :  { %p6269_p5 = pnand %p6268_p4, %p6262_p1 }
 0x11f   :  { %6272 = shalt.err (!%p6269_p5)
}
 0x120   :  { %s7838_s28 = sld [smem:[#allocation73_spill]]  ;;  %s6281_s1 = scalar_lea.vmem %s179_s22, 192 }
 0x121   :  { %p6282_p6 = scmp.ne.s32.totalorder %s179_s22, %s6281_s1  ;;  %p6286_p7 = scmp.lt.s32.totalorder %s179_s22, %s179_s22 }
 0x122   :  { %p6287_p8 = scmp.lt.s32.totalorder %s6281_s1, %s6281_s1 }
 0x124   :  { %p6288_p9 = por %p6287_p8, %p6286_p7 }
 0x126   :  { %160 = dma.hbm_to_vmem [thread:$0]  %s7838_s28, 128, %s155_s20, [#allocation5], %s6681_s23, %s6681_s23, %s6682_s26  }
 0x127   :  { %p6289_p10 = pnand %p6288_p9, %p6282_p6 }
 0x129   :  { %6292 = shalt.err (!%p6289_p10)
}
 0x12a   :  { %s7839_s30 = sld [smem:[#allocation74_spill]]  ;;  %s6702_s19 = smov [#allocation12]  }
 0x12b   :  { %s202_s2 = sshll.u32 %s6702_s19, 4  ;;  %s6703_s14 = smov [#allocation15]   ;;  %s203_s2 = int_to_ptr.vmem [resolvable:$true] %s202_s2 }
 0x12c   :  { %s226_s7 = sshll.u32 %s6703_s14, 4  ;;  %s6301_s10 = scalar_lea.vmem %s203_s2, 192  ;;  %s227_s7 = int_to_ptr.vmem [resolvable:$true] %s226_s7 }
 0x12d   :  { %p6302_p11 = scmp.ne.s32.totalorder %s203_s2, %s6301_s10  ;;  %p6306_p12 = scmp.lt.s32.totalorder %s203_s2, %s203_s2 }
 0x12e   :  { %p6307_p13 = scmp.lt.s32.totalorder %s6301_s10, %s6301_s10 }
 0x130   :  { %184 = dma.hbm_to_vmem [thread:$0]  %s7839_s30, 192, %s179_s22, [#allocation8], %s6681_s23, %s6681_s23, %s6682_s26  }
 0x131   :  { %p6308_p0 = por %p6307_p13, %p6306_p12 }
 0x133   :  { %p6309_p1 = pnand %p6308_p0, %p6302_p11 }
 0x135   :  { %6312 = shalt.err (!%p6309_p1)
}
 0x136   :  { %s7840_s29 = sld [smem:[#allocation75_spill]]  ;;  %s6321_s8 = scalar_lea.vmem %s227_s7, 192 }
 0x137   :  { %p6322_p2 = scmp.ne.s32.totalorder %s227_s7, %s6321_s8  ;;  %p6326_p3 = scmp.lt.s32.totalorder %s227_s7, %s227_s7 }
 0x138   :  { %p6327_p4 = scmp.lt.s32.totalorder %s6321_s8, %s6321_s8 }
 0x13a   :  { %p6328_p5 = por %p6327_p4, %p6326_p3 }
 0x13c   :  { %208 = dma.hbm_to_vmem [thread:$0]  %s7840_s29, 192, %s203_s2, [#allocation11], %s6681_s23, %s6681_s23, %s6682_s26  }
 0x13d   :  { %p6329_p6 = pnand %p6328_p5, %p6322_p2 }
 0x13f   :  { %6332 = shalt.err (!%p6329_p6)
}
 0x140   :  { %s7841_s11 = sld [smem:[#allocation76_spill]]  ;;  %s6704_s9 = smov [#allocation18]  }
 0x141   :  { %s251_s24 = sshll.u32 %s6704_s9, 4  ;;  %s6705_s6 = smov [#allocation21]   ;;  %s252_s24 = int_to_ptr.vmem [resolvable:$true] %s251_s24 }
 0x142   :  { %s271_s17 = sshll.u32 %s6705_s6, 4  ;;  %s6341_s21 = scalar_lea.vmem %s252_s24, 64  ;;  %s272_s17 = int_to_ptr.vmem [resolvable:$true] %s271_s17 }
 0x143   :  { %p6342_p7 = scmp.ne.s32.totalorder %s252_s24, %s6341_s21  ;;  %p6346_p8 = scmp.lt.s32.totalorder %s252_s24, %s252_s24 }
 0x144   :  { %p6347_p9 = scmp.lt.s32.totalorder %s6341_s21, %s6341_s21 }
 0x146   :  { %232 = dma.hbm_to_vmem [thread:$0]  %s7841_s11, 192, %s227_s7, [#allocation14], %s6681_s23, %s6681_s23, %s6682_s26  }
 0x147   :  { %p6348_p10 = por %p6347_p9, %p6346_p8 }
 0x149   :  { %p6349_p11 = pnand %p6348_p10, %p6342_p7 }
 0x14b   :  { %6352 = shalt.err (!%p6349_p11)
}
 0x14c   :  { %s7842_s0 = sld [smem:[#allocation77_spill]]  ;;  %s6361_s15 = scalar_lea.vmem %s272_s17, 64 }
 0x14d   :  { %p6362_p12 = scmp.ne.s32.totalorder %s272_s17, %s6361_s15  ;;  %p6366_p13 = scmp.lt.s32.totalorder %s272_s17, %s272_s17 }
 0x14e   :  { %p6367_p0 = scmp.lt.s32.totalorder %s6361_s15, %s6361_s15 }
 0x150   :  { %p6368_p1 = por %p6367_p0, %p6366_p13 }
 0x152   :  { %254 = dma.hbm_to_vmem [thread:$0]  %s7842_s0, 64, %s252_s24, [#allocation17]  }
 0x153   :  { %p6369_p2 = pnand %p6368_p1, %p6362_p12 }
 0x155   :  { %6372 = shalt.err (!%p6369_p2)
}
 0x156   :  { %s7843_s18 = sld [smem:[#allocation78_spill]]  ;;  %s6706_s20 = smov [#allocation24]  }
 0x157   :  { %s291_s4 = sshll.u32 %s6706_s20, 4  ;;  %s6707_s22 = smov [#allocation27]   ;;  %s292_s4 = int_to_ptr.vmem [resolvable:$true] %s291_s4 }
 0x158   :  { %s312_s3 = sshll.u32 %s6707_s22, 4  ;;  %s6381_s28 = scalar_lea.vmem %s292_s4, 64  ;;  %s313_s3 = int_to_ptr.vmem [resolvable:$true] %s312_s3 }
 0x159   :  { %p6382_p3 = scmp.ne.s32.totalorder %s292_s4, %s6381_s28  ;;  %p6386_p4 = scmp.lt.s32.totalorder %s292_s4, %s292_s4 }
 0x15a   :  { %p6387_p5 = scmp.lt.s32.totalorder %s6381_s28, %s6381_s28 }
 0x15c   :  { %274 = dma.hbm_to_vmem [thread:$0]  %s7843_s18, 64, %s272_s17, [#allocation20]  }
 0x15d   :  { %p6388_p6 = por %p6387_p5, %p6386_p4 }
 0x15f   :  { %p6389_p7 = pnand %p6388_p6, %p6382_p3 }
 0x161   :  { %6392 = shalt.err (!%p6389_p7)
}
 0x162   :  { %s7844_s1 = sld [smem:[#allocation79_spill]]  ;;  %s6401_s30 = scalar_lea.vmem %s313_s3, 128 }
 0x163   :  { %p6402_p8 = scmp.ne.s32.totalorder %s313_s3, %s6401_s30  ;;  %p6406_p9 = scmp.lt.s32.totalorder %s313_s3, %s313_s3 }
 0x164   :  { %p6407_p10 = scmp.lt.s32.totalorder %s6401_s30, %s6401_s30 }
 0x166   :  { %p6408_p11 = por %p6407_p10, %p6406_p9 }
 0x168   :  { %294 = dma.hbm_to_vmem [thread:$0]  %s7844_s1, 64, %s292_s4, [#allocation23]  }
 0x169   :  { %p6409_p12 = pnand %p6408_p11, %p6402_p8 }
 0x16b   :  { %6412 = shalt.err (!%p6409_p12)
}
 0x16c   :  { %s7845_s19 = sld [smem:[#allocation80_spill]]  ;;  %s6708_s2 = smov [#allocation30]  }
 0x16d   :  { %s336_s14 = sshll.u32 %s6708_s2, 4  ;;  %s6709_s7 = smov [#allocation33]   ;;  %s337_s14 = int_to_ptr.vmem [resolvable:$true] %s336_s14 }
 0x16e   :  { %s360_s10 = sshll.u32 %s6709_s7, 4  ;;  %s6421_s29 = scalar_lea.vmem %s337_s14, 256  ;;  %s361_s10 = int_to_ptr.vmem [resolvable:$true] %s360_s10 }
 0x16f   :  { %p6422_p13 = scmp.ne.s32.totalorder %s337_s14, %s6421_s29  ;;  %p6426_p0 = scmp.lt.s32.totalorder %s337_s14, %s337_s14 }
 0x170   :  { %p6427_p1 = scmp.lt.s32.totalorder %s6421_s29, %s6421_s29 }
 0x172   :  { %318 = dma.hbm_to_vmem [thread:$0]  %s7845_s19, 128, %s313_s3, [#allocation26], %s6681_s23, %s6681_s23, %s6682_s26  }
 0x173   :  { %p6428_p2 = por %p6427_p1, %p6426_p0 }
 0x175   :  { %p6429_p3 = pnand %p6428_p2, %p6422_p13 }
 0x177   :  { %6432 = shalt.err (!%p6429_p3)
}
 0x178   :  { %s7846_s8 = sld [smem:[#allocation81_spill]]  ;;  %s6441_s11 = scalar_lea.vmem %s361_s10, 128 }
 0x179   :  { %p6442_p4 = scmp.ne.s32.totalorder %s361_s10, %s6441_s11  ;;  %p6446_p5 = scmp.lt.s32.totalorder %s361_s10, %s361_s10 }
 0x17a   :  { %p6447_p6 = scmp.lt.s32.totalorder %s6441_s11, %s6441_s11 }
 0x17c   :  { %p6448_p7 = por %p6447_p6, %p6446_p5 }
 0x17e   :  { %342 = dma.hbm_to_vmem [thread:$0]  %s7846_s8, 256, %s337_s14, [#allocation29], %s6681_s23, %s6681_s23, %s6682_s26  }
 0x17f   :  { %p6449_p8 = pnand %p6448_p7, %p6442_p4 }
 0x181   :  { %6452 = shalt.err (!%p6449_p8)
}
 0x182   :  { %s7847_s9 = sld [smem:[#allocation82_spill]]  ;;  %s6710_s24 = smov [#allocation36]  }
 0x183   :  { %s388_s6 = sshll.u32 %s6710_s24, 4  ;;  %s6711_s17 = smov [#allocation39]   ;;  %s389_s6 = int_to_ptr.vmem [resolvable:$true] %s388_s6 }
 0x184   :  { %s412_s21 = sshll.u32 %s6711_s17, 4  ;;  %s6461_s0 = scalar_lea.vmem %s389_s6, 256  ;;  %s413_s21 = int_to_ptr.vmem [resolvable:$true] %s412_s21 }
 0x185   :  { %p6462_p9 = scmp.ne.s32.totalorder %s389_s6, %s6461_s0  ;;  %p6466_p10 = scmp.lt.s32.totalorder %s389_s6, %s389_s6 }
 0x186   :  { %p6467_p11 = scmp.lt.s32.totalorder %s6461_s0, %s6461_s0 }
 0x188   :  { %366 = dma.hbm_to_vmem [thread:$0]  %s7847_s9, 128, %s361_s10, [#allocation32], %s6681_s23, %s6681_s23, %s6682_s26  }
 0x189   :  { %p6468_p12 = por %p6467_p11, %p6466_p10 }
 0x18b   :  { %p6469_p13 = pnand %p6468_p12, %p6462_p9 }
 0x18d   :  { %6472 = shalt.err (!%p6469_p13)
}
 0x18e   :  { %s7848_s15 = sld [smem:[#allocation85_spill]]  ;;  %s6481_s18 = scalar_lea.vmem %s413_s21, 256 }
 0x18f   :  { %p6482_p0 = scmp.ne.s32.totalorder %s413_s21, %s6481_s18  ;;  %p6486_p1 = scmp.lt.s32.totalorder %s413_s21, %s413_s21 }
 0x190   :  { %p6487_p2 = scmp.lt.s32.totalorder %s6481_s18, %s6481_s18 }
 0x192   :  { %p6488_p3 = por %p6487_p2, %p6486_p1 }
 0x194   :  { %394 = dma.hbm_to_vmem [thread:$0]  %s7848_s15, 256, %s389_s6, [#allocation35], %s6686_s25, %s6686_s25, %s6687_s16  }
 0x195   :  { %p6489_p4 = pnand %p6488_p3, %p6482_p0 }
 0x197   :  { %6492 = shalt.err (!%p6489_p4)
}
 0x198   :  { %s7849_s20 = sld [smem:[#allocation86_spill]]  ;;  %s6712_s4 = smov [#allocation42]  }
 0x199   :  { %s436_s22 = sshll.u32 %s6712_s4, 4  ;;  %s6713_s3 = smov [#allocation45]   ;;  %s437_s22 = int_to_ptr.vmem [resolvable:$true] %s436_s22 }
 0x19a   :  { %s460_s28 = sshll.u32 %s6713_s3, 4  ;;  %s6501_s1 = scalar_lea.vmem %s437_s22, 128  ;;  %s461_s28 = int_to_ptr.vmem [resolvable:$true] %s460_s28 }
 0x19b   :  { %p6502_p5 = scmp.ne.s32.totalorder %s437_s22, %s6501_s1  ;;  %p6506_p6 = scmp.lt.s32.totalorder %s437_s22, %s437_s22 }
 0x19c   :  { %p6507_p7 = scmp.lt.s32.totalorder %s6501_s1, %s6501_s1 }
 0x19e   :  { %418 = dma.hbm_to_vmem [thread:$0]  %s7849_s20, 256, %s413_s21, [#allocation38], %s6681_s23, %s6681_s23, %s6682_s26  }
 0x19f   :  { %p6508_p8 = por %p6507_p7, %p6506_p6 }
 0x1a1   :  { %p6509_p9 = pnand %p6508_p8, %p6502_p5 }
 0x1a3   :  { %6512 = shalt.err (!%p6509_p9)
}
 0x1a4   :  { %s7850_s30 = sld [smem:[#allocation87_spill]]  ;;  %s6521_s19 = scalar_lea.vmem %s461_s28, 256 }
 0x1a5   :  { %p6522_p10 = scmp.ne.s32.totalorder %s461_s28, %s6521_s19  ;;  %p6526_p11 = scmp.lt.s32.totalorder %s461_s28, %s461_s28 }
 0x1a6   :  { %p6527_p12 = scmp.lt.s32.totalorder %s6521_s19, %s6521_s19 }
 0x1a8   :  { %p6528_p13 = por %p6527_p12, %p6526_p11 }
 0x1aa   :  { %442 = dma.hbm_to_vmem [thread:$0]  %s7850_s30, 128, %s437_s22, [#allocation41], %s6681_s23, %s6681_s23, %s6682_s26  }
 0x1ab   :  { %p6529_p0 = pnand %p6528_p13, %p6522_p10 }
 0x1ad   :  { %6532 = shalt.err (!%p6529_p0)
}
 0x1ae   :  { %s7851_s2 = sld [smem:[#allocation88_spill]]  ;;  %s6714_s14 = smov [#allocation48]  }
 0x1af   :  { %s486_s7 = sshll.u32 %s6714_s14, 4  ;;  %s6715_s10 = smov [#allocation51]   ;;  %s487_s7 = int_to_ptr.vmem [resolvable:$true] %s486_s7 }
 0x1b0   :  { %s510_s29 = sshll.u32 %s6715_s10, 4  ;;  %s6541_s8 = scalar_lea.vmem %s487_s7, 256  ;;  %s511_s29 = int_to_ptr.vmem [resolvable:$true] %s510_s29 }
 0x1b1   :  { %p6542_p1 = scmp.ne.s32.totalorder %s487_s7, %s6541_s8  ;;  %p6546_p2 = scmp.lt.s32.totalorder %s487_s7, %s487_s7 }
 0x1b2   :  { %p6547_p3 = scmp.lt.s32.totalorder %s6541_s8, %s6541_s8 }
 0x1b4   :  { %466 = dma.hbm_to_vmem [thread:$0]  %s7851_s2, 256, %s461_s28, [#allocation44], %s6686_s25, %s6686_s25, %s6687_s16  }
 0x1b5   :  { %p6548_p4 = por %p6547_p3, %p6546_p2 }
 0x1b7   :  { %p6549_p5 = pnand %p6548_p4, %p6542_p1 }
 0x1b9   :  { %6552 = shalt.err (!%p6549_p5)
}
 0x1ba   :  { %s7852_s11 = sld [smem:[#allocation92_spill]]  ;;  %s6561_s9 = scalar_lea.vmem %s511_s29, 256 }
 0x1bb   :  { %p6562_p6 = scmp.ne.s32.totalorder %s511_s29, %s6561_s9  ;;  %p6566_p7 = scmp.lt.s32.totalorder %s511_s29, %s511_s29 }
 0x1bc   :  { %p6567_p8 = scmp.lt.s32.totalorder %s6561_s9, %s6561_s9 }
 0x1be   :  { %p6568_p9 = por %p6567_p8, %p6566_p7 }
 0x1c0   :  { %492 = dma.hbm_to_vmem [thread:$0]  %s7852_s11, 256, %s487_s7, [#allocation47], %s6681_s23, %s6681_s23, %s6682_s26  }
 0x1c1   :  { %p6569_p10 = pnand %p6568_p9, %p6562_p6 }
 0x1c3   :  { %6572 = shalt.err (!%p6569_p10)
}
 0x1c4   :  { %s7853_s25 = sld [smem:[#allocation94_spill]]  ;;  %s6716_s16 = smov [#allocation52]  }
 0x1c5   :  { %s524_s24 = sshll.u32 %s6716_s16, 4  ;;  %s525_s24 = int_to_ptr.vmem [resolvable:$true] %s524_s24 }
 0x1c6   :  { %s6581_s6 = scalar_lea.vmem %s525_s24, 256  ;;  %p6586_p12 = scmp.lt.s32.totalorder %s525_s24, %s525_s24 }
 0x1c7   :  { %p6582_p11 = scmp.ne.s32.totalorder %s525_s24, %s6581_s6  ;;  %p6587_p13 = scmp.lt.s32.totalorder %s6581_s6, %s6581_s6 }
 0x1c9   :  { %p6588_p0 = por %p6587_p13, %p6586_p12 }
 0x1ca   :  { %516 = dma.hbm_to_vmem [thread:$0]  %s7853_s25, 256, %s511_s29, [#allocation50], %s6681_s23, %s6681_s23, %s6682_s26  }
 0x1cb   :  { %p6589_p1 = pnand %p6588_p0, %p6582_p11 }
 0x1cd   :  { %6592 = shalt.err (!%p6589_p1)
}
 0x1ce   :  { %s7854_s17 = sld [smem:[#allocation96_spill]] }
 0x1d4   :  { %530 = dma.hbm_to_vmem [thread:$0]  %s7854_s17, 256, %s525_s24, [#allocation53], %s6681_s23, %s6681_s23, %s6682_s26  }
 0x1d5   :  { %6593 = dma.done.wait [#allocation3], 128  }
 0x1d6   :  { %6594 = vsyncadd [#allocation3], 4294967168 }
 0x1d7   :  { %6595 = dma.done.wait [#allocation5], 256  }
 0x1d8   :  { %6596 = vsyncadd [#allocation5], 4294967040 }
 0x1d9   :  { %6597 = dma.done.wait [#allocation8], 384  }
 0x1da   :  { %6598 = vsyncadd [#allocation8], 4294966912 }
 0x1db   :  { %6599 = dma.done.wait [#allocation11], 576  }
 0x1dc   :  { %6600 = vsyncadd [#allocation11], 4294966720 }
 0x1dd   :  { %6601 = dma.done.wait [#allocation14], 384  }
 0x1de   :  { %6602 = vsyncadd [#allocation14], 4294966912 }
 0x1df   :  { %6603 = dma.done.wait [#allocation17], 320  }
 0x1e0   :  { %6604 = vsyncadd [#allocation17], 4294966976 }
 0x1e1   :  { %6605 = dma.done.wait [#allocation20], 128  }
 0x1e2   :  { %6606 = vsyncadd [#allocation20], 4294967168 }
 0x1e3   :  { %6607 = dma.done.wait [#allocation23], 128  }
 0x1e4   :  { %6608 = vsyncadd [#allocation23], 4294967168 }
 0x1e5   :  { %6609 = dma.done.wait [#allocation26], 384  }
 0x1e6   :  { %6610 = vsyncadd [#allocation26], 4294966912 }
 0x1e7   :  { %6611 = dma.done.wait [#allocation29], 512  }
 0x1e8   :  { %6612 = vsyncadd [#allocation29], 4294966784 }
 0x1e9   :  { %6613 = dma.done.wait [#allocation32], 256  }
 0x1ea   :  { %6614 = vsyncadd [#allocation32], 4294967040 }
 0x1eb   :  { %6615 = dma.done.wait [#allocation35], 512  }
 0x1ec   :  { %6616 = vsyncadd [#allocation35], 4294966784 }
 0x1ed   :  { %6617 = dma.done.wait [#allocation38], 384  }
 0x1ee   :  { %6618 = vsyncadd [#allocation38], 4294966912 }
 0x1ef   :  { %6619 = dma.done.wait [#allocation41], 384  }
 0x1f0   :  { %6620 = vsyncadd [#allocation41], 4294966912 }
 0x1f1   :  { %6621 = dma.done.wait [#allocation44], 384  }
 0x1f2   :  { %6622 = vsyncadd [#allocation44], 4294966912 }
 0x1f3   :  { %6623 = dma.done.wait [#allocation47], 320  }
 0x1f4   :  { %6624 = vsyncadd [#allocation47], 4294966976 }
 0x1f5   :  { %6625 = dma.done.wait [#allocation50], 512  }
 0x1f6   :  { %6626 = vsyncadd [#allocation50], 4294966784 }
 0x1f7   :  { %6627 = dma.done.wait [#allocation53], 256  }
 0x1f8   :  { %6628 = vsyncadd [#allocation53], 4294967040  ;;  %s7855_s23 = sld [smem:[#allocation104_spill]]  ;;  %v6717_v0 = vmov 0.0   ;;  %vm6718_vm0 = vmmov 0   ;;  %vm857_vm1 = vcmask 1043456   ;;  %v810_v15 = vlaneseq }
 0x1f9   :  { %5132 = vmatprep.subr.bf16.mxu1 %v6717_v0  ;;  %5134 = vmatprep.mubr.msk.bf16.mxu1 %vm6718_vm0, %v6717_v0  ;;  %v685_v1 = vld [vmem:[#allocation21] sm:$0xf]  ;;  %v686_v2 = vld [vmem:[#allocation22] sm:$0xf]  ;;  %s7856_s26 = sld [smem:[#allocation103_spill]]  ;;  %v803_v11 = vld [vmem:[%s6963_s13 + $0x10] sm:$0xff] }
 0x1fa   :  { %v927_v4 = vsel %vm857_vm1, %v685_v1, 0  ;;  %5536 = vmatprep.subr.msk.bf16.mxu0 %vm857_vm1, %v686_v2  ;;  %v859_v5 = vsel %vm857_vm1, %v686_v2, 0  ;;  %v801_v9 = vld [vmem:[%s6963_s13] sm:$0xff]  ;;  %v802_v10 = vld [vmem:[%s6963_s13 + $0x8] sm:$0xff]  ;;  %v815_v14 = vadd.f32 0.0001, %v803_v11 }
 0x1fb   :  { %5133 = vmatpush3.bf16.msra.mxu1 %v927_v4  ;;  %5127 = vmatpush3.bf16.msra.mxu0 %v859_v5  ;;  %v813_v12 = vadd.f32 0.0001, %v801_v9  ;;  %v814_v13 = vadd.f32 0.0001, %v802_v10  ;;  %v811_v20 = vand.u32 127, %v810_v15  ;;  %vm850_vm2 = vcmask 64512  }
 0x1fc   :  { %5152 = vmatprep.subr.bf16.mxu1 %v6717_v0  ;;  %5138 = vmatprep.subr.bf16.mxu0 %v6717_v0  ;;  %v684_v21 = vld [vmem:[#allocation19] sm:$0xf]  ;;  %v687_v22 = vld [vmem:[#allocation24] sm:$0xf]  ;;  %v683_v23 = vld [vmem:[#allocation18] sm:$0xf] }
 0x1fd   :  { %vm812_vm3 = vcmp.ge.s32.totalorder %v811_v20, 6  ;;  %v1079_v24 = vsel %vm857_vm1, %v684_v21, 0  ;;  %v993_v25 = vsel %vm857_vm1, %v687_v22, 0  ;;  %v1145_v26 = vsel %vm857_vm1, %v683_v23, 0  ;;  %s7857_s13 = sld [smem:[#allocation102_spill]]  ;;  %v804_v54 = vld [vmem:[%s6968_s27] sm:$0xff] }
 0x1fe   :  { %v799_v3 = vld [vmem:[%s7855_s23] sm:$0xff]  ;;  %v800_v6 = vld [vmem:[%s7855_s23 + $0x8] sm:$0xf]  ;;  %v806_v60 = vld [vmem:[%s6968_s27 + $0x10] sm:$0xff]  ;;  %s7858_s21 = sld [smem:[#allocation83_spill]]  ;;  %v7177_v20 = vshrl.u32 %v810_v15, 7 }
 0x1ff   :  { %v828_v7 = vadd.f32 0.0001, %v799_v3  ;;  %v829_v8 = vadd.f32 0.0001, %v800_v6  ;;  %v797_v16 = vld [vmem:[%s7856_s26] sm:$0xff]  ;;  %v798_v17 = vld [vmem:[%s7856_s26 + $0x8] sm:$0xff] }
 0x200   :  { %v836_v18 = vadd.f32 0.0001, %v797_v16  ;;  %v837_v19 = vadd.f32 0.0001, %v798_v17  ;;  %v805_v55 = vld [vmem:[%s6968_s27 + $0x8] sm:$0xff]  ;;  %v807_v61 = vld [vmem:[%s6968_s27 + $0x18] sm:$0xff] }
 0x201   :  { %5715 = vlog2.f32 %v828_v7  ;;  %v976_v59 = vpack.c.bf16 %v805_v55, %v804_v54  ;;  %v977_v2 = vpack.c.bf16 %v807_v61, %v806_v60  ;;  %v808_v3 = vld [vmem:[%s6968_s27 + $0x20] sm:$0xff]  ;;  %v809_v4 = vld [vmem:[%s6968_s27 + $0x28] sm:$0xff]  ;;  %s7859_s27 = sld [smem:[#allocation84_spill]]  ;;  %v7800_v17 = vmov 0  }
 0x202   :  { %5717 = vlog2.f32 %v829_v8  ;;  %v978_v6 = vpack.c.bf16 %v809_v4, %v808_v3  ;;  %5630 = vset.pattern.permute.xlu1 %v7800_v17  ;;  %5629 = vset.pattern.permute.xlu0 %v7800_v17  ;;  %v7180_v21 = vsub.s32 0, %v7177_v20  ;;  %v681_v22 = vld [vmem:[#allocation16] sm:$0xff]  ;;  %vm1256_vm7 = vcmask 261120   ;;  %v5639_v60 = vld [vmem:[#allocation34] ss:$8 sps:$4 sm:$0xff]   ;;  %s7862_s0 = sld [smem:[#allocation89_spill]] }
 0x203   :  { %5719 = vlog2.f32 %v813_v12  ;;  %v791_v57 = vld [vmem:[%s7857_s13] sm:$0xff]  ;;  %v792_v58 = vld [vmem:[%s7857_s13 + $0x8] sm:$0xff]  ;;  %v793_v63 = vld [vmem:[%s7857_s13 + $0x10] sm:$0xff]  ;;  %vm1452_vm11 = vcmask 130048   ;;  %s7863_s15 = sld [smem:[#allocation90_spill]] }
 0x204   :  { %5721 = vlog2.f32 %v814_v13  ;;  %v1128_v62 = vpack.c.bf16 %v792_v58, %v791_v57  ;;  %v794_v1 = vld [vmem:[%s7857_s13 + $0x18] sm:$0xff]  ;;  %v795_v7 = vld [vmem:[%s7857_s13 + $0x20] sm:$0xff]  ;;  %v796_v8 = vld [vmem:[%s7857_s13 + $0x28] sm:$0xff]  ;;  %s7865_s18 = sld [smem:[#allocation95_spill]] }
 0x205   :  { %5723 = vlog2.f32 %v815_v14  ;;  %v1129_v5 = vpack.c.bf16 %v794_v1, %v793_v63  ;;  %v5632_v12 = vld [vmem:[%s7858_s21 + $0x18] ss:$12 sps:$4 sm:$0xff]   ;;  %v5635_v14 = vld [vmem:[%s7858_s21] ss:$12 sps:$4 sm:$0xff]   ;;  %v5638_v16 = vld [vmem:[%s7858_s21 + $0x8] ss:$12 sps:$4 sm:$0xff]  }
 0x206   :  { %5725 = vlog2.f32 %v836_v18  ;;  %v5637_v13 = vld [vmem:[%s7858_s21 + $0x4] ss:$12 sps:$4 sm:$0xff]   ;;  %s7866_s20 = sld [smem:[#allocation97_spill]] }
 0x207   :  { %5727 = vlog2.f32 %v837_v19  ;;  %v5641_v18 = vld [vmem:[#allocation34 + $0x4] ss:$8 sps:$4 sm:$0xff]   ;;  %v5642_v1 = vld [vmem:[%s7859_s27 + $0x10] ss:$8 sps:$4 sm:$0xff]   ;;  %s7867_s4 = sld [smem:[#allocation98_spill]] }
 0x208   :  { %v5644_v19 = vld [vmem:[%s7859_s27 + $0x14] ss:$8 sps:$4 sm:$0xff]   ;;  %s7868_s22 = sld [smem:[#allocation99_spill]] }
 0x209   :  { %s7870_s3 = sld [smem:[#allocation101_spill]] }
 0x20e   :  { %v5716_v27 = vpop.eup %5715 }
 0x20f   :  { %v5718_v28 = vpop.eup %5717  ;;  %v831_v29 = vmul.f32 0.6931472, %v5716_v27 }
 0x210   :  { %v5720_v30 = vpop.eup %5719  ;;  %v833_v31 = vmul.f32 0.6931472, %v5718_v28 }
 0x211   :  { %v5722_v32 = vpop.eup %5721  ;;  %v834_v33 = vmul.f32 0.4342945, %v831_v29  ;;  %v817_v34 = vmul.f32 0.6931472, %v5720_v30 }
 0x212   :  { %v5724_v35 = vpop.eup %5723  ;;  %v835_v36 = vmul.f32 0.4342945, %v833_v31  ;;  %v819_v37 = vmul.f32 0.6931472, %v5722_v32  ;;  %v7184_v31 = vsub.s32 3, %v7177_v20 }
 0x213   :  { %v5726_v38 = vpop.eup %5725  ;;  %v821_v39 = vmul.f32 0.6931472, %v5724_v35  ;;  %v822_v40 = vmul.f32 0.4342945, %v817_v34  ;;  %v7187_v34 = vsub.s32 4, %v7177_v20 }
 0x214   :  { %v5728_v41 = vpop.eup %5727  ;;  %v7117_v42 = vpack.c.bf16 %v835_v36, %v834_v33  ;;  %v823_v43 = vmul.f32 0.4342945, %v819_v37  ;;  %v839_v44 = vmul.f32 0.6931472, %v5726_v38  ;;  %v1074_v37 = vrot.slane %v681_v22, %v7184_v31 }
 0x215   :  { %v824_v45 = vmul.f32 0.4342945, %v821_v39  ;;  %v825_v46 = vsel %vm812_vm3, %v822_v40, %v801_v9  ;;  %v841_v47 = vmul.f32 0.6931472, %v5728_v41  ;;  %v1130_v9 = vpack.c.bf16 %v796_v8, %v795_v7 }
 0x216   :  { %5135 = vmatmul.mubr.msk.bf16.vlgmr.msra.gmra.mxu1 %vm850_vm2, %v7117_v42  ;;  %v826_v48 = vsel %vm812_vm3, %v823_v43, %v802_v10  ;;  %v842_v49 = vmul.f32 0.4342945, %v839_v44  ;;  %v5634_v10 = vld [vmem:[%s7858_s21 + $0x1c] ss:$12 sps:$4 sm:$0xff]   ;;  %v7191_v41 = vsub.s32 1, %v7177_v20 }
 0x217   :  { %v827_v50 = vsel %vm812_vm3, %v824_v45, %v803_v11  ;;  %v7124_v51 = vpack.c.bf16 %v826_v48, %v825_v46  ;;  %5153 = vmatpush3.bf16.msra.mxu1 %v1079_v24  ;;  %5154 = vmatprep.mubr.msk.bf16.mxu1 %vm6718_vm0, %v6717_v0  ;;  %v843_v52 = vmul.f32 0.4342945, %v841_v47  ;;  %v5631_v11 = vld [vmem:[%s7858_s21 + $0x20] ss:$12 sps:$4 sm:$0xff]   ;;  %v849_v24 = vrot.slane %v681_v22, %v7180_v21 }
 0x218   :  { %v7128_v53 = vpack.c.bf16 %v827_v50, %v827_v50  ;;  %5158 = vmatprep.subr.bf16.mxu1 %v6717_v0  ;;  %v7194_v46 = vsub.s32 2, %v7177_v20  ;;  %v7197_v47 = vrot.slane %v681_v22, %v7187_v34  ;;  %v922_v57 = vrot.slane %v681_v22, %v7191_v41 }
 0x219   :  { %5128 = vmatprep.mubr.msk.bf16.mxu0 %vm850_vm2, %v7124_v51  ;;  %v1070_v56 = vpack.c.bf16 %v843_v52, %v842_v49 }
 0x21a   :  { %5129 = vmatmul.mubr.msk.bf16.vlgmr.msra.gmra.mxu0 %vm850_vm2, %v7128_v53  ;;  %v7201_v63 = vrot.slane %v681_v22, %v7194_v46 }
 0x21b   :  { %5139 = vmatpush3.bf16.msra.mxu0 %v993_v25  ;;  %5140 = vmatprep.mubr.msk.bf16.mxu0 %vm6718_vm0, %v6717_v0 }
 0x21c   :  { %1275 = vmatprep.subr.bf16.mxu0 %v5634_v10 }
 0x21e   :  { %5155 = vmatmul.mubr.msk.bf16.vlgmr.msra.gmra.mxu1 %vm850_vm2, %v1070_v56 }
 0x21f   :  { %5159 = vmatpush3.bf16.msra.mxu1 %v1145_v26  ;;  %5160 = vmatprep.mubr.msk.bf16.mxu1 %vm6718_vm0, %v6717_v0 }
 0x220   :  { %5172 = vmatprep.subr.bf16.mxu1 %v5631_v11 }
 0x222   :  { %5141 = vmatmul.mubr.msk.bf16.vlgmr.msra.gmra.mxu0 %vm850_vm2, %v976_v59 }
 0x223   :  { %5144 = vmatprep.mubr.msk.bf16.mxu0 %vm6718_vm0, %v6717_v0  ;;  %1276 = vmatpush1.bf16.msra.mxu0 %v5632_v12 }
 0x224   :  { %1277 = vmatprep.subr.bf16.mxu0 %v5637_v13 }
 0x226   :  { %5161 = vmatmul.mubr.msk.bf16.vlgmr.msra.gmra.mxu1 %vm850_vm2, %v1128_v62 }
 0x227   :  { %5164 = vmatprep.mubr.msk.bf16.mxu1 %vm6718_vm0, %v6717_v0  ;;  %5173 = vmatpush3.bf16.msra.mxu1 %v5631_v11 }
 0x228   :  { %1278 = vmatpush1.bf16.msra.mxu0 %v5635_v14  ;;  %5174 = vmatprep.subr.bf16.mxu1 %v5638_v16  ;;  %v5645_v14 = vld [vmem:[%s7859_s27] ss:$8 sps:$4 sm:$0xff]  }
 0x229   :  { %1398 = vmatprep.subr.bf16.mxu0 %v5644_v19 }
 0x22a   :  { %5145 = vmatmul.mubr.msk.bf16.gmra.mxu0 %vm850_vm2, %v977_v2 }
 0x22b   :  { %5148 = vmatprep.mubr.msk.bf16.mxu0 %vm6718_vm0, %v6717_v0  ;;  %5175 = vmatpush3.bf16.msra.mxu1 %v5638_v16 }
 0x22c   :  { %1470 = vmatprep.subr.bf16.mxu1 %v5641_v18 }
 0x22e   :  { %5165 = vmatmul.mubr.msk.bf16.gmra.mxu1 %vm850_vm2, %v1129_v5 }
 0x22f   :  { %5168 = vmatprep.mubr.msk.bf16.mxu1 %vm6718_vm0, %v6717_v0 }
 0x232   :  { %5149 = vmatmul.mubr.msk.bf16.gmra.mxu0 %vm850_vm2, %v978_v6  ;;  %v5647_v6 = vld [vmem:[%s7859_s27 + $0x4] ss:$8 sps:$4 sm:$0xff]  }
 0x233   :  { %1295 = vmatprep.mubr.bf16.mxu0 %v7800_v17 }
 0x236   :  { %5169 = vmatmul.mubr.msk.bf16.gmra.mxu1 %vm850_vm2, %v1130_v9 }
 0x2d6   :  { %v963_v23 = vpop.f32.mrf.mxu1 }
 0x2d7   :  { %v964_v8 = vadd.f32 %v963_v23, %v922_v57 }
 0x2d8   :  { %v5136_v25 = vpop.f32.mrf.mxu1 }
 0x2d9   :  { %vm970_vm12 = vcmp.gt.f32.partialorder %v964_v8, 0.0 }
 0x2da   :  { %v5130_v26 = vpop.f32.mrf.mxu0  ;;  %v966_v27 = vpop.f32.mrf.mxu1 }
 0x2db   :  { %v904_v28 = vadd.f32 %v5130_v26, %v849_v24  ;;  %v967_v12 = vadd.f32 %v966_v27, %v922_v57  ;;  %v5648_v26 = vld [vmem:[#allocation27] sm:$0xff]  }
 0x2dc   :  { %v895_v29 = vpop.f32.mrf.mxu0  ;;  %v5137_v30 = vpop.f32.mrf.mxu1 }
 0x2dd   :  { %v896_v32 = vadd.f32 %v895_v29, %v849_v24  ;;  %v914_v35 = vmul.f32 0.01, %v904_v28  ;;  %vm911_vm4 = vcmp.gt.f32.partialorder %v904_v28, 0.0  ;;  %v972_v30 = vmul.f32 0.01, %v964_v8 }
 0x2de   :  { %v5131_v33 = vpop.f32.mrf.mxu0  ;;  %v1115_v15 = vpop.f32.mrf.mxu1  ;;  %vm971_vm14 = vcmp.gt.f32.partialorder %v967_v12, 0.0 }
 0x2df   :  { %v912_v39 = vmul.f32 0.01, %v896_v32  ;;  %vm909_vm5 = vcmp.gt.f32.partialorder %v896_v32, 0.0  ;;  %v917_v48 = vsel %vm911_vm4, %v904_v28, %v914_v35  ;;  %v1116_v49 = vadd.f32 %v1115_v15, %v1074_v37 }
 0x2e0   :  { %v898_v36 = vpop.f32.mrf.mxu0  ;;  %v5156_v38 = vpop.f32.mrf.mxu1  ;;  %v1223_v62 = vpack.c.bf16 %v917_v48, %v917_v48  ;;  %v7228_v48 = vsel %vm970_vm12, %v964_v8, %v972_v30 }
 0x2e1   :  { %v899_v40 = vadd.f32 %v898_v36, %v849_v24  ;;  %v915_v55 = vsel %vm909_vm5, %v896_v32, %v912_v39  ;;  %v1124_v3 = vmul.f32 0.01, %v1116_v49  ;;  %vm1122_vm8 = vcmp.gt.f32.partialorder %v1116_v49, 0.0 }
 0x2e2   :  { %v1118_v43 = vpop.f32.mrf.mxu1  ;;  %v1029_v44 = vpop.f32.mrf.mxu0  ;;  %v973_v32 = vmul.f32 0.01, %v967_v12 }
 0x2e3   :  { %vm910_vm6 = vcmp.gt.f32.partialorder %v899_v40, 0.0  ;;  %v913_v45 = vmul.f32 0.01, %v899_v40  ;;  %v1119_v50 = vadd.f32 %v1118_v43, %v1074_v37  ;;  %v1030_v13 = vadd.f32 %v1029_v44, %v7201_v63 }
 0x2e4   :  { %v5157_v52 = vpop.f32.mrf.mxu1  ;;  %v5142_v54 = vpop.f32.mrf.mxu0  ;;  %v1126_v16 = vsel %vm1122_vm8, %v1116_v49, %v1124_v3  ;;  %v7231_v49 = vsel %vm971_vm14, %v967_v12, %v973_v32  ;;  %vm1518_vm14 = vcmask 195584  }
 0x2e5   :  { %v916_v56 = vsel %vm910_vm6, %v899_v40, %v913_v45  ;;  %v1125_v4 = vmul.f32 0.01, %v1119_v50  ;;  %vm1123_vm9 = vcmp.gt.f32.partialorder %v1119_v50, 0.0  ;;  %v1058_v35 = vmul.f32 0.01, %v1030_v13 }
 0x2e6   :  { %v1222_v58 = vpack.c.bf16 %v916_v56, %v915_v55  ;;  %v1032_v59 = vpop.f32.mrf.mxu0  ;;  %v1181_v61 = vpop.f32.mrf.mxu1  ;;  %vm1052_vm15 = vcmp.gt.f32.partialorder %v1030_v13, 0.0 }
 0x2e7   :  { %v1182_v2 = vadd.f32 %v1181_v61, %v7197_v47  ;;  %v1127_v18 = vsel %vm1123_vm9, %v1119_v50, %v1125_v4  ;;  %v1033_v19 = vadd.f32 %v1032_v59, %v7201_v63  ;;  %v1064_v52 = vsel %vm1052_vm15, %v1030_v13, %v1058_v35 }
 0x2e8   :  { %4783 = vmatmul.mubr.msk.bf16.vlgmr.msra.gmra.mxu0 %vm1256_vm7, %v1222_v58  ;;  %5176 = vmatprep.mubr.msk.bf16.mxu1 %vm1256_vm7, %v1222_v58  ;;  %v5143_v5 = vpop.f32.mrf.mxu0  ;;  %v5162_v7 = vpop.f32.mrf.mxu1  ;;  %v1441_v33 = vpack.c.bf16 %v1127_v18, %v1126_v16  ;;  %v1362_v61 = vpack.c.bf16 %v7231_v49, %v7228_v48  ;;  %vm1878_vm15 = vcmask 1045504  }
 0x2e9   :  { %5177 = vmatmul.mubr.msk.bf16.vlgmr.msra.gmra.mxu1 %vm1256_vm7, %v1223_v62  ;;  %1305 = vmatprep.mubr.bf16.mxu0 %v7800_v17  ;;  %v1210_v10 = vmul.f32 0.01, %v1182_v2  ;;  %vm1204_vm10 = vcmp.gt.f32.partialorder %v1182_v2, 0.0  ;;  %v1059_v36 = vmul.f32 0.01, %v1033_v19  ;;  %vm1053_vm3 = vcmp.gt.f32.partialorder %v1033_v19, 0.0 }
 0x2ea   :  { %1471 = vmatpush1.bf16.msra.mxu1 %v5639_v60  ;;  %v1037_v9 = vpop.f32.mrf.mxu0  ;;  %1488 = vmatprep.mubr.bf16.mxu1 %v7800_v17  ;;  %v1184_v11 = vpop.f32.mrf.mxu1 }
 0x2eb   :  { %1399 = vmatpush1.bf16.msra.mxu0 %v5642_v1  ;;  %5188 = vmatprep.subr.bf16.mxu1 %v6717_v0  ;;  %v1185_v23 = vadd.f32 %v1184_v11, %v7197_v47  ;;  %v1216_v27 = vsel %vm1204_vm10, %v1182_v2, %v1210_v10  ;;  %v1065_v54 = vsel %vm1053_vm3, %v1033_v19, %v1059_v36  ;;  %vm1868_vm3 = vcmask 97280  }
 0x2ec   :  { %v5146_v22 = vpop.f32.mrf.mxu0  ;;  %1400 = vmatprep.subr.bf16.mxu0 %v5647_v6  ;;  %v5163_v24 = vpop.f32.mrf.mxu1  ;;  %v1038_v55 = vadd.f32 %v1037_v9, %v7201_v63  ;;  %v7239_v1 = vpack.c.bf16 %v1065_v54, %v1064_v52 }
 0x2ed   :  { %vm1205_vm13 = vcmp.gt.f32.partialorder %v1185_v23, 0.0  ;;  %v1211_v28 = vmul.f32 0.01, %v1185_v23 }
 0x2ee   :  { %v1040_v25 = vpop.f32.mrf.mxu0  ;;  %v1189_v29 = vpop.f32.mrf.mxu1  ;;  %v1060_v3 = vmul.f32 0.01, %v1038_v55  ;;  %vm1054_vm6 = vcmp.gt.f32.partialorder %v1038_v55, 0.0 }
 0x2ef   :  { %1401 = vmatpush1.bf16.msra.mxu0 %v5645_v14  ;;  %v1190_v15 = vadd.f32 %v1189_v29, %v7197_v47  ;;  %v1217_v38 = vsel %vm1205_vm13, %v1185_v23, %v1211_v28  ;;  %v1041_v56 = vadd.f32 %v1040_v25, %v7201_v63 }
 0x2f0   :  { %4784 = vmatmul.mubr.msk.bf16.gmra.mxu0 %vm1256_vm7, %v1223_v62  ;;  %v5147_v37 = vpop.f32.mrf.mxu0  ;;  %v5166_v39 = vpop.f32.mrf.mxu1  ;;  %5180 = vmatprep.subr.bf16.mxu0 %v6717_v0  ;;  %v7223_v40 = vpack.c.bf16 %v1217_v38, %v1216_v27  ;;  %v1066_v7 = vsel %vm1054_vm6, %v1038_v55, %v1060_v3 }
 0x2f1   :  { %4794 = vmatmul.mubr.msk.bf16.vlgmr.msra.gmra.mxu1 %vm1452_vm11, %v1441_v33  ;;  %1418 = vmatprep.mubr.bf16.mxu0 %v7800_v17  ;;  %vm1206_vm4 = vcmp.gt.f32.partialorder %v1190_v15, 0.0  ;;  %v1212_v44 = vmul.f32 0.01, %v1190_v15  ;;  %v1061_v4 = vmul.f32 0.01, %v1041_v56  ;;  %vm1055_vm8 = vcmp.gt.f32.partialorder %v1041_v56, 0.0 }
 0x2f2   :  { %5189 = vmatpush3.bf16.msra.mxu1 %v5648_v26  ;;  %v1045_v43 = vpop.f32.mrf.mxu0  ;;  %5190 = vmatprep.mubr.msk.bf16.mxu1 %vm6718_vm0, %v6717_v0  ;;  %v1192_v45 = vpop.f32.mrf.mxu1 }
 0x2f3   :  { %v1193_v50 = vadd.f32 %v1192_v45, %v7197_v47  ;;  %5218 = vmatprep.subr.bf16.mxu1 %v6717_v0  ;;  %v1218_v59 = vsel %vm1206_vm4, %v1190_v15, %v1212_v44  ;;  %v1067_v8 = vsel %vm1055_vm8, %v1041_v56, %v1061_v4  ;;  %v1046_v9 = vadd.f32 %v1045_v43, %v7201_v63  ;;  %v7284_v56 = vld [vmem:[#allocation25] sm:$0xff] }
 0x2f4   :  { %v5150_v57 = vpop.f32.mrf.mxu0  ;;  %v5167_v58 = vpop.f32.mrf.mxu1  ;;  %v7252_v11 = vpack.c.bf16 %v1067_v8, %v1066_v7  ;;  %v5654_v4 = vld [vmem:[#allocation28 + $0x8] sm:$0xff]   ;;  %vm1956_vm4 = vcmask 392192  }
 0x2f5   :  { %vm1207_vm5 = vcmp.gt.f32.partialorder %v1193_v50, 0.0  ;;  %v1213_v60 = vmul.f32 0.01, %v1193_v50  ;;  %v1062_v12 = vmul.f32 0.01, %v1046_v9  ;;  %vm1056_vm9 = vcmp.gt.f32.partialorder %v1046_v9, 0.0 }
 0x2f6   :  { %v1048_v62 = vpop.f32.mrf.mxu0 }
 0x2f7   :  { %v1219_v2 = vsel %vm1207_vm5, %v1193_v50, %v1213_v60  ;;  %v1049_v10 = vadd.f32 %v1048_v62, %v7201_v63  ;;  %v1068_v14 = vsel %vm1056_vm9, %v1046_v9, %v1062_v12  ;;  %v1197_v63 = vpop.f32.mrf.mxu1  ;;  %v7281_v50 = vsub.s32 6, %v7177_v20 }
 0x2f8   :  { %4791 = vmatmul.mubr.msk.bf16.vlgmr.msra.gmra.mxu0 %vm1256_vm7, %v1362_v61  ;;  %v5151_v5 = vpop.f32.mrf.mxu0  ;;  %v7242_v6 = vpack.c.bf16 %v1219_v2, %v1218_v59  ;;  %v1198_v19 = vadd.f32 %v1197_v63, %v7197_v47  ;;  %v5649_v2 = vld [vmem:[#allocation6] sm:$0x3f]  }
 0x2f9   :  { %5191 = vmatmul.mubr.msk.bf16.vlgmr.msra.gmra.mxu1 %vm1452_vm11, %v7239_v1  ;;  %5184 = vmatprep.mubr.msk.bf16.mxu0 %vm6718_vm0, %v6717_v0  ;;  %v1063_v13 = vmul.f32 0.01, %v1049_v10  ;;  %vm1057_vm10 = vcmp.gt.f32.partialorder %v1049_v10, 0.0  ;;  %v5170_v22 = vpop.f32.mrf.mxu1  ;;  %v7293_v61 = vrot.slane %v7284_v56, %v7281_v50  ;;  %v1432_v5 = vrot.slane %v7284_v56, %v7194_v46 }
 0x2fa   :  { %5194 = vmatprep.mubr.msk.bf16.mxu1 %vm6718_vm0, %v6717_v0  ;;  %v1214_v23 = vmul.f32 0.01, %v1198_v19  ;;  %vm1208_vm12 = vcmp.gt.f32.partialorder %v1198_v19, 0.0 }
 0x2fb   :  { %v1069_v16 = vsel %vm1057_vm10, %v1049_v10, %v1063_v13  ;;  %v1200_v24 = vpop.f32.mrf.mxu1  ;;  %v7304_v10 = vsub.s32 5, %v7177_v20 }
 0x2fc   :  { %v7258_v18 = vpack.c.bf16 %v1069_v16, %v1068_v14  ;;  %v1201_v25 = vadd.f32 %v1200_v24, %v7197_v47  ;;  %v1220_v27 = vsel %vm1208_vm12, %v1198_v19, %v1214_v23  ;;  %v5655_v16 = vld [vmem:[#allocation28] sm:$0xff]  }
 0x2fd   :  { %v5171_v26 = vpop.f32.mrf.mxu1 }
 0x2fe   :  { %vm1209_vm13 = vcmp.gt.f32.partialorder %v1201_v25, 0.0  ;;  %v1215_v28 = vmul.f32 0.01, %v1201_v25 }
 0x300   :  { %v1221_v29 = vsel %vm1209_vm13, %v1201_v25, %v1215_v28  ;;  %v1502_v25 = vrot.slane %v7284_v56, %v7304_v10 }
 0x301   :  { %5195 = vmatmul.mubr.msk.bf16.gmra.mxu1 %vm1452_vm11, %v7252_v11  ;;  %v7266_v30 = vpack.c.bf16 %v1221_v29, %v1220_v27 }
 0x302   :  { %5198 = vmatprep.mubr.msk.bf16.mxu1 %vm6718_vm0, %v6717_v0 }
 0x309   :  { %5199 = vmatmul.mubr.msk.bf16.gmra.mxu1 %vm1452_vm11, %v7258_v18 }
 0x30a   :  { %5220 = vmatprep.mubr.msk.bf16.mxu1 %vm6718_vm0, %v6717_v0 }
 0x3a8   :  { %v1297_v32 = vpop.f32.mrf.mxu0 }
 0x3a9   :  { %v7268_v33 = vpop.f32.mrf.mxu1 }
 0x3aa   :  { %v7270_v15 = vpop.f32.mrf.mxu0 }
 0x3ab   :  { %v7272_v35 = vpop.f32.mrf.mxu1 }
 0x3ac   :  { %v1301_v36 = vpop.f32.mrf.mxu0 }
 0x3ad   :  { %v5179_v37 = vpop.f32.mrf.mxu1  ;;  %v1507_v58 = vpack.c.bf16 %v1301_v36, %v1297_v32 }
 0x3ae   :  { %v7274_v38 = vpop.f32.mrf.mxu0 }
 0x3af   :  { %v7276_v39 = vpop.f32.mrf.mxu1 }
 0x3b0   :  { %v1307_v47 = vpop.f32.mrf.mxu0 }
 0x3b1   :  { %v1508_v43 = vpack.c.bf16 %v1307_v47, %v1307_v47  ;;  %v7278_v44 = vpop.f32.mrf.mxu1 }
 0x3b2   :  { %v1309_v45 = vpop.f32.mrf.mxu0 }
 0x3b3   :  { %v1523_v52 = vsel %vm857_vm1, %v1508_v43, 0  ;;  %v1492_v54 = vpop.f32.mrf.mxu1  ;;  %v2168_v32 = vpack.c.bf16 %v1309_v45, %v1309_v45  ;;  %v5650_v43 = vld [vmem:[#allocation10] sm:$0xff]  }
 0x3b4   :  { %v1311_v55 = vpop.f32.mrf.mxu0  ;;  %5181 = vmatpush3.bf16.msra.mxu0 %v1523_v52 }
 0x3b5   :  { %v7286_v57 = vpop.f32.mrf.mxu1  ;;  %5182 = vmatprep.subr.bf16.mxu0 %v6717_v0  ;;  %v2182_v45 = vsel %vm857_vm1, %v2168_v32, 0 }
 0x3b6   :  { %v1312_v60 = vpop.f32.mrf.mxu0 }
 0x3b7   :  { %v1496_v62 = vpop.f32.mrf.mxu1 }
 0x3b8   :  { %v1420_v3 = vpop.f32.mrf.mxu0  ;;  %5183 = vmatpush3.bf16.msra.mxu0 %v1507_v58  ;;  %v1504_v36 = vadd.f32 %v1502_v25, %v1496_v62  ;;  %v1503_v58 = vadd.f32 %v1502_v25, %v1492_v54 }
 0x3b9   :  { %v1624_v7 = vpop.f32.mrf.mxu1  ;;  %5202 = vmatprep.subr.bf16.mxu0 %v6717_v0  ;;  %v1433_v63 = vadd.f32 %v1432_v5, %v1420_v3 }
 0x3ba   :  { %v7299_v8 = vadd.f32 %v1624_v7, %v7293_v61  ;;  %v7301_v9 = vpop.f32.mrf.mxu0  ;;  %v1506_v62 = vmax.f32 %v1504_v36, 0.0  ;;  %v1505_v54 = vmax.f32 %v1503_v58, 0.0 }
 0x3bb   :  { %5185 = vmatmul.mubr.msk.bf16.vlgmr.msra.gmra.mxu0 %vm1518_vm14, %v5649_v2  ;;  %v5192_v12 = vpop.f32.mrf.mxu1 }
 0x3bc   :  { %v1653_v13 = vand.u32 2147483647, %v7299_v8  ;;  %v1424_v14 = vpop.f32.mrf.mxu0  ;;  %5203 = vmatpush3.bf16.msra.mxu0 %v5654_v4  ;;  %5206 = vmatprep.mubr.msk.bf16.mxu0 %vm6718_vm0, %v6717_v0 }
 0x3bd   :  { %v1434_v19 = vadd.f32 %v1432_v5, %v1424_v14  ;;  %v1627_v22 = vpop.f32.mrf.mxu1  ;;  %5204 = vmatprep.subr.bf16.mxu0 %v6717_v0 }
 0x3be   :  { %v1659_v23 = vsub.f32 0.0, %v1653_v13  ;;  %v7312_v24 = vadd.f32 %v1627_v22, %v7293_v61  ;;  %v2167_v13 = vpack.c.bf16 %v7274_v38, %v7270_v15  ;;  %v5651_v22 = vld [vmem:[#allocation10 + $0x8] sm:$0xff]  }
 0x3bf   :  { %v1852_v26 = vpack.c.bf16 %v1434_v19, %v1433_v63  ;;  %v5193_v27 = vpop.f32.mrf.mxu1  ;;  %v7334_v63 = vpack.c.bf16 %v1506_v62, %v1505_v54  ;;  %v5653_v62 = vld [vmem:[#allocation4] sm:$0xff]  }
 0x3c0   :  { %v1665_v28 = vmul.f32 1.442695, %v1659_v23  ;;  %v1654_v29 = vand.u32 2147483647, %v7312_v24  ;;  %5205 = vmatpush3.bf16.msra.mxu0 %v5655_v16 }
 0x3c1   :  { %v1632_v37 = vpop.f32.mrf.mxu1  ;;  %v1880_v47 = vsel %vm1878_vm15, %v1852_v26, 0 }
 0x3c2   :  { %5729 = vpow2.f32 %v1665_v28  ;;  %v1660_v52 = vsub.f32 0.0, %v1654_v29  ;;  %v7319_v55 = vadd.f32 %v1632_v37, %v7293_v61  ;;  %5219 = vmatpush3.bf16.msra.mxu1 %v1880_v47 }
 0x3c3   :  { %v5196_v60 = vpop.f32.mrf.mxu1  ;;  %5256 = vmatprep.subr.bf16.mxu1 %v6717_v0 }
 0x3c4   :  { %v1667_v2 = vmul.f32 1.442695, %v1660_v52  ;;  %v1655_v3 = vand.u32 2147483647, %v7319_v55  ;;  %v5652_v52 = vld [vmem:[#allocation10 + $0x10] sm:$0xff]  }
 0x3c5   :  { %v1635_v4 = vpop.f32.mrf.mxu1  ;;  %5221 = vmatmul.mubr.msk.bf16.vlgmr.msra.gmra.mxu1 %vm1868_vm3, %v5650_v43 }
 0x3c6   :  { %5731 = vpow2.f32 %v1667_v2  ;;  %v1661_v5 = vsub.f32 0.0, %v1655_v3  ;;  %v7326_v7 = vadd.f32 %v1635_v4, %v7293_v61  ;;  %5257 = vmatpush3.bf16.msra.mxu1 %v2182_v45  ;;  %5224 = vmatprep.mubr.msk.bf16.mxu1 %vm6718_vm0, %v6717_v0 }
 0x3c7   :  { %v5197_v12 = vpop.f32.mrf.mxu1  ;;  %5258 = vmatprep.subr.bf16.mxu1 %v6717_v0 }
 0x3c8   :  { %v1669_v14 = vmul.f32 1.442695, %v1661_v5  ;;  %v1656_v16 = vand.u32 2147483647, %v7326_v7 }
 0x3c9   :  { %v1640_v19 = vpop.f32.mrf.mxu1 }
 0x3ca   :  { %5733 = vpow2.f32 %v1669_v14  ;;  %v1662_v23 = vsub.f32 0.0, %v1656_v16  ;;  %v7337_v25 = vadd.f32 %v1640_v19, %v7293_v61  ;;  %5259 = vmatpush3.bf16.msra.mxu1 %v2167_v13  ;;  %v1647_v16 = vmax.f32 %v7299_v8, 0.0 }
 0x3cb   :  { %v5200_v26 = vpop.f32.mrf.mxu1  ;;  %5278 = vmatprep.subr.bf16.mxu1 %v7334_v63  ;;  %v1650_v8 = vmax.f32 %v7326_v7, 0.0 }
 0x3cc   :  { %v1671_v27 = vmul.f32 1.442695, %v1662_v23  ;;  %v1657_v28 = vand.u32 2147483647, %v7337_v25  ;;  %v1648_v26 = vmax.f32 %v7312_v24, 0.0 }
 0x3cd   :  { %v1643_v15 = vpop.f32.mrf.mxu1  ;;  %5225 = vmatmul.mubr.msk.bf16.gmra.mxu1 %vm1868_vm3, %v5651_v22 }
 0x3ce   :  { %5735 = vpow2.f32 %v1671_v27  ;;  %v1663_v38 = vsub.f32 0.0, %v1657_v28  ;;  %v7343_v29 = vadd.f32 %v1643_v15, %v7293_v61  ;;  %5228 = vmatprep.mubr.msk.bf16.mxu1 %vm6718_vm0, %v6717_v0 }
 0x3cf   :  { %v5730_v32 = vpop.eup %5729  ;;  %v5201_v36 = vpop.f32.mrf.mxu1 }
 0x3d0   :  { %v1677_v37 = vadd.f32 1.0, %v5730_v32  ;;  %v1673_v47 = vmul.f32 1.442695, %v1663_v38  ;;  %v1658_v43 = vand.u32 2147483647, %v7343_v29  ;;  %v1652_v7 = vmax.f32 %v7343_v29, 0.0 }
 0x3d2   :  { %5737 = vlog2.f32 %v1677_v37  ;;  %v1664_v58 = vsub.f32 0.0, %v1658_v43  ;;  %v1649_v43 = vmax.f32 %v7319_v55, 0.0 }
 0x3d3   :  { %v5732_v60 = vpop.eup %5731  ;;  %5739 = vpow2.f32 %v1673_v47 }
 0x3d4   :  { %v1678_v2 = vadd.f32 1.0, %v5732_v60  ;;  %v1675_v3 = vmul.f32 1.442695, %v1664_v58 }
 0x3d5   :  { %5229 = vmatmul.mubr.msk.bf16.gmra.mxu1 %vm1868_vm3, %v5652_v52 }
 0x3d6   :  { %5741 = vlog2.f32 %v1678_v2  ;;  %5260 = vmatprep.mubr.msk.bf16.mxu1 %vm6718_vm0, %v6717_v0 }
 0x3d7   :  { %v5734_v61 = vpop.eup %5733  ;;  %5743 = vpow2.f32 %v1675_v3 }
 0x3d8   :  { %v1679_v45 = vadd.f32 1.0, %v5734_v61 }
 0x3da   :  { %5745 = vlog2.f32 %v1679_v45 }
 0x3db   :  { %v5736_v4 = vpop.eup %5735 }
 0x3dc   :  { %v1680_v5 = vadd.f32 1.0, %v5736_v4  ;;  %v1651_v4 = vmax.f32 %v7337_v25, 0.0  ;;  %v1512_v25 = vrot.slane %v7284_v56, %v7180_v21 }
 0x3dd   :  { %5261 = vmatmul.mubr.msk.bf16.vlgmr.msra.gmra.mxu1 %vm1518_vm14, %v5653_v62 }
 0x3de   :  { %5747 = vlog2.f32 %v1680_v5  ;;  %5279 = vmatpush3.bf16.msra.mxu1 %v7334_v63 }
 0x3df   :  { %v5738_v54 = vpop.eup %5737 }
 0x3e0   :  { %v5740_v12 = vpop.eup %5739  ;;  %v1684_v13 = vmul.f32 0.6931472, %v5738_v54 }
 0x3e1   :  { %v1681_v14 = vadd.f32 1.0, %v5740_v12 }
 0x3e2   :  { %v1695_v23 = vadd.f32 %v1684_v13, %v1647_v16 }
 0x3e3   :  { %v5742_v19 = vpop.eup %5741  ;;  %5749 = vlog2.f32 %v1681_v14 }
 0x3e4   :  { %v5744_v22 = vpop.eup %5743  ;;  %v1686_v27 = vmul.f32 0.6931472, %v5742_v19  ;;  %v4801_v32 = vadd.f32 -0.6931472, %v1695_v23  ;;  %v1438_v19 = vrot.slane %v7284_v56, %v7191_v41 }
 0x3e5   :  { %v1682_v28 = vadd.f32 1.0, %v5744_v22  ;;  %v1426_v22 = vpop.f32.mrf.mxu0 }
 0x3e6   :  { %v1696_v15 = vadd.f32 %v1686_v27, %v1648_v26  ;;  %v5656_v26 = vld [vmem:[#allocation15] sm:$0xff]   ;;  %v1439_v29 = vadd.f32 %v1438_v19, %v7301_v9 }
 0x3e7   :  { %v5746_v38 = vpop.eup %5745  ;;  %5751 = vlog2.f32 %v1682_v28 }
 0x3e8   :  { %v4802_v36 = vadd.f32 -0.6931472, %v1696_v15  ;;  %v1688_v37 = vmul.f32 0.6931472, %v5746_v38 }
 0x3ea   :  { %v1707_v47 = vpack.c.bf16 %v4802_v36, %v4801_v32  ;;  %v1697_v58 = vadd.f32 %v1688_v37, %v1649_v43  ;;  %v1440_v32 = vadd.f32 %v1438_v19, %v1426_v22 }
 0x3eb   :  { %v5748_v52 = vpop.eup %5747 }
 0x3ec   :  { %v1690_v60 = vmul.f32 0.6931472, %v5748_v52  ;;  %5207 = vmatmul.mubr.msk.bf16.vlgmr.msra.gmra.mxu0 %vm1256_vm7, %v1707_v47  ;;  %v4803_v3 = vadd.f32 -0.6931472, %v1697_v58 }
 0x3ed   :  { %5210 = vmatprep.mubr.msk.bf16.mxu0 %vm6718_vm0, %v6717_v0 }
 0x3ee   :  { %v1698_v24 = vadd.f32 %v1690_v60, %v1650_v8 }
 0x3f0   :  { %v5750_v2 = vpop.eup %5749  ;;  %v4804_v61 = vadd.f32 -0.6931472, %v1698_v24 }
 0x3f1   :  { %v1692_v45 = vmul.f32 0.6931472, %v5750_v2 }
 0x3f2   :  { %v1708_v62 = vpack.c.bf16 %v4804_v61, %v4803_v3 }
 0x3f3   :  { %v1699_v55 = vadd.f32 %v1692_v45, %v1651_v4 }
 0x3f4   :  { %v5752_v5 = vpop.eup %5751  ;;  %5211 = vmatmul.mubr.msk.bf16.gmra.mxu0 %vm1256_vm7, %v1708_v62 }
 0x3f5   :  { %v1694_v54 = vmul.f32 0.6931472, %v5752_v5  ;;  %5214 = vmatprep.mubr.msk.bf16.mxu0 %vm6718_vm0, %v6717_v0  ;;  %v4805_v13 = vadd.f32 -0.6931472, %v1699_v55 }
 0x3f7   :  { %v1700_v12 = vadd.f32 %v1694_v54, %v1652_v7 }
 0x3f9   :  { %v4806_v14 = vadd.f32 -0.6931472, %v1700_v12  ;;  %v7391_v12 = vsub.s32 7, %v7177_v20 }
 0x3fb   :  { %v1709_v16 = vpack.c.bf16 %v4806_v14, %v4805_v13 }
 0x3fd   :  { %5215 = vmatmul.mubr.msk.bf16.gmra.mxu0 %vm1256_vm7, %v1709_v16  ;;  %v1713_v16 = vrot.slane %v7284_v56, %v7391_v12 }
 0x3fe   :  { %5238 = vmatprep.mubr.msk.bf16.mxu0 %vm1956_vm4, %v5656_v26 }
 0x47b   :  { %v1559_v23 = vpop.f32.mrf.mxu0 }
 0x47c   :  { %v1560_v27 = vadd.f32 %v1559_v23, %v1512_v25 }
 0x47d   :  { %v5186_v28 = vpop.f32.mrf.mxu0 }
 0x47e   :  { %v1566_v15 = vadd.f32 %v1560_v27, %v1439_v29 }
 0x47f   :  { %v1562_v38 = vpop.f32.mrf.mxu0 }
 0x480   :  { %v1563_v36 = vadd.f32 %v1562_v38, %v1512_v25  ;;  %v2708_v47 = vmul.f32 0.01, %v1566_v15  ;;  %vm2706_vm5 = vcmp.gt.f32.partialorder %v1566_v15, 0.0 }
 0x481   :  { %v5187_v37 = vpop.f32.mrf.mxu0 }
 0x482   :  { %v1567_v43 = vadd.f32 %v1563_v36, %v1440_v32  ;;  %v7374_v8 = vsel %vm2706_vm5, %v1566_v15, %v2708_v47 }
 0x484   :  { %vm2707_vm6 = vcmp.gt.f32.partialorder %v1567_v43, 0.0  ;;  %v2709_v52 = vmul.f32 0.01, %v1567_v43 }
 0x485   :  { %v7372_v58 = vpop.f32.mrf.mxu1 }
 0x486   :  { %v7376_v60 = vsel %vm2707_vm6, %v1567_v43, %v2709_v52 }
 0x487   :  { %v5222_v24 = vpop.f32.mrf.mxu1 }
 0x489   :  { %v7380_v2 = vpop.f32.mrf.mxu1 }
 0x48b   :  { %v5223_v3 = vpop.f32.mrf.mxu1 }
 0x48d   :  { %v7382_v61 = vpop.f32.mrf.mxu1 }
 0x48f   :  { %v5226_v45 = vpop.f32.mrf.mxu1 }
 0x491   :  { %v7384_v62 = vpop.f32.mrf.mxu1 }
 0x493   :  { %v5227_v4 = vpop.f32.mrf.mxu1 }
 0x495   :  { %v7386_v5 = vpop.f32.mrf.mxu1 }
 0x497   :  { %v5230_v55 = vpop.f32.mrf.mxu1 }
 0x499   :  { %v7388_v7 = vpop.f32.mrf.mxu1 }
 0x49b   :  { %v5231_v54 = vpop.f32.mrf.mxu1 }
 0x4ac   :  { %v1769_v13 = vpop.f32.mrf.mxu0 }
 0x4ad   :  { %v7398_v26 = vadd.f32 %v1769_v13, %v1713_v16 }
 0x4ae   :  { %v5208_v14 = vpop.f32.mrf.mxu0 }
 0x4af   :  { %v1798_v38 = vand.u32 2147483647, %v7398_v26 }
 0x4b0   :  { %v1772_v19 = vpop.f32.mrf.mxu0 }
 0x4b1   :  { %v7395_v25 = vadd.f32 %v1772_v19, %v1713_v16  ;;  %v1804_v24 = vsub.f32 0.0, %v1798_v38 }
 0x4b2   :  { %v5209_v22 = vpop.f32.mrf.mxu0 }
 0x4b3   :  { %v1799_v23 = vand.u32 2147483647, %v7395_v25  ;;  %v1810_v14 = vmul.f32 1.442695, %v1804_v24 }
 0x4b4   :  { %v1777_v29 = vpop.f32.mrf.mxu0 }
 0x4b5   :  { %v7400_v27 = vadd.f32 %v1777_v29, %v1713_v16  ;;  %v1805_v15 = vsub.f32 0.0, %v1799_v23 }
 0x4b6   :  { %v5212_v28 = vpop.f32.mrf.mxu0 }
 0x4b7   :  { %v1800_v20 = vand.u32 2147483647, %v7400_v27  ;;  %v1812_v43 = vmul.f32 1.442695, %v1805_v15 }
 0x4b8   :  { %v1780_v32 = vpop.f32.mrf.mxu0 }
 0x4b9   :  { %v1806_v36 = vsub.f32 0.0, %v1800_v20  ;;  %v1781_v37 = vadd.f32 %v1780_v32, %v1713_v16  ;;  %5753 = vpow2.f32 %v1812_v43 }
 0x4ba   :  { %v5213_v47 = vpop.f32.mrf.mxu0 }
 0x4bb   :  { %v1801_v52 = vand.u32 2147483647, %v1781_v37  ;;  %v1814_v3 = vmul.f32 1.442695, %v1806_v36 }
 0x4bd   :  { %v1807_v45 = vsub.f32 0.0, %v1801_v52  ;;  %v1785_v4 = vpop.f32.mrf.mxu0  ;;  %5755 = vpow2.f32 %v1814_v3 }
 0x4be   :  { %v1786_v55 = vadd.f32 %v1785_v4, %v1713_v16 }
 0x4bf   :  { %v1816_v54 = vmul.f32 1.442695, %v1807_v45  ;;  %v5216_v13 = vpop.f32.mrf.mxu0 }
 0x4c0   :  { %v1802_v19 = vand.u32 2147483647, %v1786_v55 }
 0x4c1   :  { %5757 = vpow2.f32 %v1816_v54  ;;  %v1788_v22 = vpop.f32.mrf.mxu0 }
 0x4c2   :  { %v1808_v23 = vsub.f32 0.0, %v1802_v19  ;;  %v1789_v29 = vadd.f32 %v1788_v22, %v1713_v16  ;;  %5759 = vpow2.f32 %v1810_v14 }
 0x4c3   :  { %v5217_v28 = vpop.f32.mrf.mxu0 }
 0x4c4   :  { %v1818_v20 = vmul.f32 1.442695, %v1808_v23  ;;  %v1803_v15 = vand.u32 2147483647, %v1789_v29 }
 0x4c6   :  { %5761 = vpow2.f32 %v1818_v20  ;;  %v1809_v38 = vsub.f32 0.0, %v1803_v15  ;;  %v5754_v36 = vpop.eup %5753  ;;  %v1795_v15 = vmax.f32 %v1781_v37, 0.0 }
 0x4c7   :  { %v1823_v3 = vadd.f32 1.0, %v5754_v36 }
 0x4c8   :  { %v1820_v32 = vmul.f32 1.442695, %v1809_v38  ;;  %v1796_v38 = vmax.f32 %v1786_v55, 0.0 }
 0x4ca   :  { %5763 = vpow2.f32 %v1820_v32  ;;  %v5756_v47 = vpop.eup %5755 }
 0x4cb   :  { %v1824_v45 = vadd.f32 1.0, %v5756_v47 }
 0x4ce   :  { %v5758_v43 = vpop.eup %5757 }
 0x4cf   :  { %v1825_v52 = vadd.f32 1.0, %v5758_v43  ;;  %v5760_v24 = vpop.eup %5759  ;;  %v1794_v43 = vmax.f32 %v7400_v27, 0.0 }
 0x4d0   :  { %v1822_v54 = vadd.f32 1.0, %v5760_v24 }
 0x4d1   :  { %5765 = vlog2.f32 %v1825_v52 }
 0x4d2   :  { %5767 = vlog2.f32 %v1824_v45 }
 0x4d3   :  { %v5762_v4 = vpop.eup %5761  ;;  %5769 = vlog2.f32 %v1823_v3 }
 0x4d4   :  { %v1826_v16 = vadd.f32 1.0, %v5762_v4  ;;  %v1793_v4 = vmax.f32 %v7395_v25, 0.0 }
 0x4d6   :  { %5771 = vlog2.f32 %v1826_v16 }
 0x4d7   :  { %v5764_v13 = vpop.eup %5763  ;;  %5773 = vlog2.f32 %v1822_v54  ;;  %v1797_v54 = vmax.f32 %v1789_v29, 0.0 }
 0x4d8   :  { %v1827_v14 = vadd.f32 1.0, %v5764_v13 }
 0x4da   :  { %5775 = vlog2.f32 %v1827_v14 }
 0x4de   :  { %v5766_v19 = vpop.eup %5765 }
 0x4df   :  { %v5768_v22 = vpop.eup %5767  ;;  %v1835_v28 = vmul.f32 0.6931472, %v5766_v19  ;;  %v1792_v19 = vmax.f32 %v7398_v26, 0.0 }
 0x4e0   :  { %v5770_v23 = vpop.eup %5769  ;;  %v1833_v32 = vmul.f32 0.6931472, %v5768_v22 }
 0x4e1   :  { %v1831_v52 = vmul.f32 0.6931472, %v5770_v23  ;;  %v1843_v45 = vadd.f32 %v1835_v28, %v1795_v15 }
 0x4e2   :  { %v1842_v13 = vadd.f32 %v1833_v32, %v1794_v43  ;;  %v7860_v43 = vpack.c.bf16 %v7286_v57, %v7278_v44  ;;  %v2218_v44 = vpop.f32.mrf.mxu1 }
 0x4e3   :  { %v5772_v20 = vpop.eup %5771  ;;  %v1841_v9 = vadd.f32 %v1831_v52, %v1793_v4  ;;  %v4815_v37 = vadd.f32 -0.6931472, %v1843_v45  ;;  %v5660_v52 = vld [vmem:[#allocation2] sm:$0xff]   ;;  %v5661_v45 = vld [vmem:[#allocation31] sm:$0xff]   ;;  %v7436_v4 = vld [vmem:[#allocation7] sm:$0xff]  }
 0x4e4   :  { %v1837_v36 = vmul.f32 0.6931472, %v5772_v20  ;;  %v5774_v47 = vpop.eup %5773  ;;  %v4814_v17 = vadd.f32 -0.6931472, %v1842_v13  ;;  %v5262_v57 = vpop.f32.mrf.mxu1  ;;  %5280 = vmatprep.mubr.msk.bf16.mxu1 %vm1452_vm11, %v7436_v4  ;;  %v5665_v13 = vld [vmem:[#allocation13] sm:$0xff]  }
 0x4e5   :  { %v1829_v16 = vmul.f32 0.6931472, %v5774_v47  ;;  %v4813_v27 = vadd.f32 -0.6931472, %v1841_v9  ;;  %v1942_v23 = vmul.f32 %v4815_v37, %v7384_v62  ;;  %v5657_v9 = vld [vmem:[#allocation15 + $0x8] ss:$0 sps:$4 sm:$0xff]  }
 0x4e6   :  { %v1844_v24 = vadd.f32 %v1837_v36, %v1796_v38  ;;  %v1941_v15 = vmul.f32 %v4814_v17, %v7382_v61  ;;  %v5659_v17 = vld [vmem:[#allocation30] sm:$0xff]  }
 0x4e7   :  { %v5776_v3 = vpop.eup %5775  ;;  %v1840_v20 = vadd.f32 %v1829_v16, %v1792_v19  ;;  %v1940_v26 = vmul.f32 %v4813_v27, %v7380_v2  ;;  %v7444_v16 = vld [vmem:[#allocation12] sm:$0xff]  }
 0x4e8   :  { %v1839_v14 = vmul.f32 0.6931472, %v5776_v3  ;;  %v4816_v55 = vadd.f32 -0.6931472, %v1844_v24  ;;  %v1946_v32 = vpack.c.bf16 %v1942_v23, %v1941_v15  ;;  %v2221_v24 = vpop.f32.mrf.mxu1 }
 0x4e9   :  { %v4812_v29 = vadd.f32 -0.6931472, %v1840_v20  ;;  %v2117_v20 = vrot.slane %v7284_v56, %v7187_v34 }
 0x4ea   :  { %v1845_v22 = vadd.f32 %v1839_v14, %v1797_v54  ;;  %v1943_v28 = vmul.f32 %v4816_v55, %v7386_v5  ;;  %v5263_v3 = vpop.f32.mrf.mxu1  ;;  %v7438_v54 = vld [vmem:[#allocation7 + $0x8] ss:$0 sps:$4 sm:$0xff]   ;;  %v2172_v55 = vrot.slane %v7284_v56, %v7184_v31 }
 0x4eb   :  { %v1939_v36 = vmul.f32 %v4812_v29, %v7372_v58  ;;  %5281 = vmatmul.mubr.msk.bf16.vlgmr.msra.gmra.mxu1 %vm1452_vm11, %v7438_v54 }
 0x4ec   :  { %v4817_v59 = vadd.f32 -0.6931472, %v1845_v22  ;;  %5290 = vmatprep.mubr.msk.bf16.mxu1 %vm1956_vm4, %v7444_v16  ;;  %v2219_v23 = vadd.f32 %v2218_v44, %v2172_v55  ;;  %v2222_v29 = vadd.f32 %v2221_v24, %v2172_v55 }
 0x4ed   :  { %v1945_v47 = vpack.c.bf16 %v1940_v26, %v1939_v36 }
 0x4ee   :  { %v1944_v25 = vmul.f32 %v4817_v59, %v7388_v7  ;;  %v5658_v59 = vld [vmem:[#allocation30 + $0x8] sm:$0xff]  }
 0x4f0   :  { %v1947_v38 = vpack.c.bf16 %v1944_v25, %v1943_v28 }
 0x4f2   :  { %5232 = vmatprep.subr.bf16.mxu0 %v1947_v38 }
 0x4f3   :  { %5233 = vmatpush3.bf16.msra.mxu0 %v1947_v38 }
 0x4f4   :  { %5234 = vmatprep.subr.bf16.mxu0 %v1946_v32 }
 0x4f7   :  { %5235 = vmatpush3.bf16.msra.mxu0 %v1946_v32 }
 0x4f8   :  { %5236 = vmatprep.subr.bf16.mxu0 %v1945_v47 }
 0x4fb   :  { %5237 = vmatpush3.bf16.msra.mxu0 %v1945_v47 }
 0x4fc   :  { %5242 = vmatprep.subr.bf16.mxu0 %v5658_v59 }
 0x4fe   :  { %5239 = vmatmul.mubr.msk.bf16.vlgmr.msra.gmra.mxu0 %vm1956_vm4, %v5657_v9 }
 0x4ff   :  { %5243 = vmatpush3.bf16.msra.mxu0 %v5658_v59 }
 0x500   :  { %5244 = vmatprep.subr.bf16.mxu0 %v5659_v17 }
 0x503   :  { %5245 = vmatpush3.bf16.msra.mxu0 %v5659_v17 }
 0x504   :  { %5250 = vmatprep.subr.bf16.mxu0 %v6717_v0 }
 0x5be   :  { %v5240_v2 = vpop.f32.mrf.mxu0 }
 0x5bf   :  { %v2012_v7 = vpack.c.bf16 %v5240_v2, %v5240_v2 }
 0x5c0   :  { %v1997_v61 = vpop.f32.mrf.mxu0 }
 0x5c2   :  { %v5241_v62 = vpop.f32.mrf.mxu0 }
 0x5c3   :  { %v7461_v62 = vld [vmem:[#allocation25 + $0x8] sm:$0xff] }
 0x5c4   :  { %v2000_v58 = vpop.f32.mrf.mxu0 }
 0x5c5   :  { %v2011_v5 = vpack.c.bf16 %v2000_v58, %v1997_v61  ;;  %v2231_v58 = vrot.slane %v7461_v62, %v7191_v41 }
 0x5c7   :  { %5246 = vmatprep.mubr.msk.bf16.mxu0 %vm1256_vm7, %v2011_v5 }
 0x5c8   :  { %5247 = vmatmul.mubr.msk.bf16.vlgmr.msra.gmra.mxu0 %vm1256_vm7, %v2012_v7 }
 0x5c9   :  { %5251 = vmatpush3.bf16.msra.mxu0 %v7860_v43  ;;  %5252 = vmatprep.mubr.msk.bf16.mxu0 %vm6718_vm0, %v6717_v0 }
 0x5ca   :  { %5264 = vmatprep.subr.bf16.mxu0 %v6717_v0 }
 0x5d0   :  { %5253 = vmatmul.mubr.msk.bf16.vlgmr.msra.gmra.mxu0 %vm1452_vm11, %v5660_v52 }
 0x5d1   :  { %5265 = vmatpush3.bf16.msra.mxu0 %v5661_v45  ;;  %5266 = vmatprep.mubr.msk.bf16.mxu0 %vm6718_vm0, %v6717_v0 }
 0x5d8   :  { %5267 = vmatmul.mubr.msk.bf16.vlgmr.msra.gmra.mxu0 %vm1452_vm11, %v7223_v40 }
 0x5d9   :  { %5270 = vmatprep.mubr.msk.bf16.mxu0 %vm6718_vm0, %v6717_v0 }
 0x5e0   :  { %5271 = vmatmul.mubr.msk.bf16.gmra.mxu0 %vm1452_vm11, %v7242_v6 }
 0x5e1   :  { %5274 = vmatprep.mubr.msk.bf16.mxu0 %vm6718_vm0, %v6717_v0 }
 0x5e8   :  { %5275 = vmatmul.mubr.msk.bf16.gmra.mxu0 %vm1452_vm11, %v7266_v30 }
 0x5e9   :  { %5306 = vmatprep.mubr.msk.bf16.mxu0 %vm1956_vm4, %v5665_v13 }
 0x688   :  { %v7449_v14 = vpop.f32.mrf.mxu0 }
 0x68a   :  { %v7451_v19 = vpop.f32.mrf.mxu0 }
 0x68c   :  { %v5249_v37 = vpop.f32.mrf.mxu0 }
 0x68e   :  { %v7455_v22 = vpop.f32.mrf.mxu0 }
 0x690   :  { %v2160_v27 = vpop.f32.mrf.mxu0 }
 0x691   :  { %v2161_v28 = vadd.f32 %v2160_v27, %v2117_v20 }
 0x692   :  { %v5254_v25 = vpop.f32.mrf.mxu0 }
 0x693   :  { %v2712_v15 = vmax.f32 %v2161_v28, %v2219_v23 }
 0x694   :  { %v2163_v38 = vpop.f32.mrf.mxu0 }
 0x695   :  { %v2164_v26 = vadd.f32 %v2163_v38, %v2117_v20 }
 0x696   :  { %v5255_v32 = vpop.f32.mrf.mxu0 }
 0x697   :  { %v2713_v36 = vmax.f32 %v2164_v26, %v2222_v29 }
 0x698   :  { %v2281_v47 = vpop.f32.mrf.mxu0 }
 0x699   :  { %v7459_v9 = vpack.c.bf16 %v2713_v36, %v2712_v15  ;;  %v2282_v57 = vadd.f32 %v2281_v47, %v2231_v58 }
 0x69a   :  { %v5268_v59 = vpop.f32.mrf.mxu0 }
 0x69b   :  { %v2304_v23 = vsub.f32 0.0, %v2282_v57 }
 0x69c   :  { %v2284_v17 = vpop.f32.mrf.mxu0 }
 0x69d   :  { %v2285_v52 = vadd.f32 %v2284_v17, %v2231_v58  ;;  %v2310_v36 = vmul.f32 1.442695, %v2304_v23 }
 0x69e   :  { %v5269_v2 = vpop.f32.mrf.mxu0 }
 0x69f   :  { %v2305_v55 = vsub.f32 0.0, %v2285_v52 }
 0x6a0   :  { %v2289_v61 = vpop.f32.mrf.mxu0 }
 0x6a1   :  { %v2290_v7 = vadd.f32 %v2289_v61, %v2231_v58  ;;  %v2312_v38 = vmul.f32 1.442695, %v2305_v55 }
 0x6a2   :  { %v5272_v56 = vpop.f32.mrf.mxu0 }
 0x6a3   :  { %v2306_v3 = vsub.f32 0.0, %v2290_v7 }
 0x6a4   :  { %v2292_v5 = vpop.f32.mrf.mxu0 }
 0x6a5   :  { %v2293_v43 = vadd.f32 %v2292_v5, %v2231_v58  ;;  %v2314_v25 = vmul.f32 1.442695, %v2306_v3 }
 0x6a6   :  { %v5273_v45 = vpop.f32.mrf.mxu0 }
 0x6a7   :  { %v2307_v44 = vsub.f32 0.0, %v2293_v43 }
 0x6a8   :  { %v2297_v24 = vpop.f32.mrf.mxu0 }
 0x6a9   :  { %v2316_v13 = vmul.f32 1.442695, %v2307_v44  ;;  %v2298_v37 = vadd.f32 %v2297_v24, %v2231_v58 }
 0x6aa   :  { %v5276_v20 = vpop.f32.mrf.mxu0 }
 0x6ab   :  { %v2308_v27 = vsub.f32 0.0, %v2298_v37  ;;  %5777 = vpow2.f32 %v2316_v13 }
 0x6ac   :  { %v2300_v28 = vpop.f32.mrf.mxu0 }
 0x6ad   :  { %v2318_v29 = vmul.f32 1.442695, %v2308_v27  ;;  %v2301_v15 = vadd.f32 %v2300_v28, %v2231_v58  ;;  %v5666_v28 = vld [vmem:[#allocation12 + $0x8] ss:$0 sps:$4 sm:$0xff]  }
 0x6ae   :  { %v5277_v26 = vpop.f32.mrf.mxu0 }
 0x6af   :  { %v2309_v32 = vsub.f32 0.0, %v2301_v15  ;;  %5779 = vpow2.f32 %v2318_v29  ;;  %v5668_v29 = vld [vmem:[#allocation9] sm:$0xff]   ;;  %v7861_v15 = vmov 0   ;;  %v5282_v26 = vpop.f32.mrf.mxu1 }
 0x6b0   :  { %5781 = vpow2.f32 %v2314_v25  ;;  %v5667_v25 = vld [vmem:[#allocation13 + $0x8] ss:$0 sps:$4 sm:$0xff]  }
 0x6b1   :  { %v2320_v47 = vmul.f32 1.442695, %v2309_v32  ;;  %5783 = vpow2.f32 %v2312_v38  ;;  %v5669_v38 = vld [vmem:[#allocation9 + $0x8] ss:$0 sps:$4 sm:$0xff]   ;;  %v2383_v32 = vpop.f32.mrf.mxu1 }
 0x6b3   :  { %5785 = vpow2.f32 %v2320_v47 }
 0x6b4   :  { %5787 = vpow2.f32 %v2310_v36  ;;  %v5283_v36 = vpop.f32.mrf.mxu1 }
 0x6b6   :  { %v2386_v47 = vpop.f32.mrf.mxu1 }
 0x6b8   :  { %v5778_v59 = vpop.eup %5777 }
 0x6b9   :  { %v2325_v2 = vadd.f32 1.0, %v5778_v59 }
 0x6bb   :  { %5789 = vrcp.f32 %v2325_v2 }
 0x6bc   :  { %v5780_v17 = vpop.eup %5779 }
 0x6bd   :  { %v5782_v61 = vpop.eup %5781  ;;  %v2326_v56 = vadd.f32 1.0, %v5780_v17 }
 0x6be   :  { %v5784_v5 = vpop.eup %5783  ;;  %v2324_v43 = vadd.f32 1.0, %v5782_v61 }
 0x6bf   :  { %5791 = vrcp.f32 %v2326_v56  ;;  %v2323_v45 = vadd.f32 1.0, %v5784_v5 }
 0x6c0   :  { %v5786_v7 = vpop.eup %5785 }
 0x6c1   :  { %v2327_v58 = vadd.f32 1.0, %v5786_v7  ;;  %v5788_v52 = vpop.eup %5787 }
 0x6c2   :  { %v2322_v44 = vadd.f32 1.0, %v5788_v52 }
 0x6c3   :  { %5793 = vrcp.f32 %v2327_v58  ;;  %v5670_v58 = vld [vmem:[#allocation33] sm:$0xff]  }
 0x6c4   :  { %5795 = vrcp.f32 %v2324_v43 }
 0x6c5   :  { %5797 = vrcp.f32 %v2323_v45 }
 0x6c6   :  { %5799 = vrcp.f32 %v2322_v44 }
 0x6c8   :  { %v5790_v57 = vpop.eup %5789 }
 0x6cc   :  { %v5792_v24 = vpop.eup %5791 }
 0x6d0   :  { %v5794_v3 = vpop.eup %5793 }
 0x6d1   :  { %v2399_v13 = vpack.c.bf16 %v5794_v3, %v5792_v24  ;;  %v5796_v37 = vpop.eup %5795 }
 0x6d2   :  { %v2398_v55 = vpack.c.bf16 %v5790_v57, %v5796_v37  ;;  %v5798_v20 = vpop.eup %5797 }
 0x6d3   :  { %5284 = vmatprep.subr.bf16.mxu1 %v2399_v13  ;;  %5300 = vmatprep.subr.bf16.mxu0 %v2399_v13  ;;  %v5800_v27 = vpop.eup %5799 }
 0x6d4   :  { %5285 = vmatpush3.bf16.msra.mxu1 %v2399_v13  ;;  %5301 = vmatpush3.bf16.msra.mxu0 %v2399_v13  ;;  %v2397_v23 = vpack.c.bf16 %v5798_v20, %v5800_v27 }
 0x6d5   :  { %5286 = vmatprep.subr.bf16.mxu1 %v2398_v55  ;;  %5302 = vmatprep.subr.bf16.mxu0 %v2398_v55 }
 0x6d8   :  { %5287 = vmatpush3.bf16.msra.mxu1 %v2398_v55  ;;  %5303 = vmatpush3.bf16.msra.mxu0 %v2398_v55 }
 0x6d9   :  { %5288 = vmatprep.subr.bf16.mxu1 %v2397_v23  ;;  %5304 = vmatprep.subr.bf16.mxu0 %v2397_v23 }
 0x6dc   :  { %5289 = vmatpush3.bf16.msra.mxu1 %v2397_v23  ;;  %5305 = vmatpush3.bf16.msra.mxu0 %v2397_v23 }
 0x6dd   :  { %5294 = vmatprep.subr.bf16.mxu1 %v7334_v63 }
 0x6df   :  { %5291 = vmatmul.mubr.msk.bf16.vlgmr.msra.gmra.mxu1 %vm1956_vm4, %v5666_v28  ;;  %5307 = vmatmul.mubr.msk.bf16.vlgmr.msra.gmra.mxu0 %vm1956_vm4, %v5667_v25 }
 0x6e0   :  { %5295 = vmatpush3.bf16.msra.mxu1 %v7334_v63  ;;  %5296 = vmatprep.mubr.msk.bf16.mxu1 %vm1452_vm11, %v5668_v29 }
 0x6e1   :  { %2786 = vmatprep.mubr.bf16.mxu0 %v7861_v15  ;;  %5310 = vmatprep.subr.bf16.mxu1 %v5670_v58 }
 0x6e7   :  { %5297 = vmatmul.mubr.msk.bf16.vlgmr.msra.gmra.mxu1 %vm1452_vm11, %v5669_v38 }
 0x6e8   :  { %5311 = vmatpush3.bf16.msra.mxu1 %v5670_v58 }
 0x79f   :  { %v5292_v59 = vpop.f32.mrf.mxu1  ;;  %v5308_v17 = vpop.f32.mrf.mxu0 }
 0x7a1   :  { %v2448_v2 = vpop.f32.mrf.mxu1  ;;  %v2590_v61 = vpop.f32.mrf.mxu0 }
 0x7a2   :  { %2464 = vperm.xlu0 %5629, %v2448_v2   ;;  %2606 = vperm.xlu1 %5630, %v2590_v61   ;;  %v5673_v2 = vld [vmem:[%s7862_s0 + $0x1c] ss:$12 sps:$4 sm:$0xff]   ;;  %v5674_v61 = vld [vmem:[%s7862_s0 + $0x20] ss:$12 sps:$4 sm:$0xff]  }
 0x7a3   :  { %v5293_v56 = vpop.f32.mrf.mxu1  ;;  %v5309_v5 = vpop.f32.mrf.mxu0  ;;  %2766 = vmatprep.subr.bf16.mxu0 %v5673_v2  ;;  %5316 = vmatprep.subr.bf16.mxu1 %v5674_v61 }
 0x7a4   :  { %v5677_v56 = vld [vmem:[%s7862_s0 + $0x4] ss:$12 sps:$4 sm:$0xff]   ;;  %v5675_v5 = vld [vmem:[%s7862_s0] ss:$12 sps:$4 sm:$0xff]  }
 0x7a5   :  { %v2451_v63 = vpop.f32.mrf.mxu1  ;;  %v2593_v7 = vpop.f32.mrf.mxu0 }
 0x7a6   :  { %2469 = vperm.xlu0 %5629, %v2451_v63   ;;  %2611 = vperm.xlu1 %5630, %v2593_v7   ;;  %v5678_v63 = vld [vmem:[%s7862_s0 + $0x8] ss:$12 sps:$4 sm:$0xff]  }
 0x7a7   :  { %v5298_v43 = vpop.f32.mrf.mxu1  ;;  %v5687_v7 = vld [vmem:[#allocation45 + $0x4] ss:$8 sps:$4 sm:$0xff]  }
 0x7a9   :  { %v2528_v52 = vpop.f32.mrf.mxu1 }
 0x7aa   :  { %2474 = vperm.xlu0 %5629, %v5292_v59   ;;  %2616 = vperm.xlu1 %5630, %v5308_v17  }
 0x7ab   :  { %v5299_v45 = vpop.f32.mrf.mxu1 }
 0x7ad   :  { %v2531_v13 = vpop.f32.mrf.mxu1 }
 0x81d   :  { %v2465_v44 = vpop.permute.xlu0 %2464  ;;  %v2607_v57 = vpop.permute.xlu1 %2606 }
 0x81e   :  { %v2477_v24 = vmul.f32 %v2465_v44, %v2383_v32  ;;  %v2619_v3 = vmul.f32 %v2607_v57, %v2528_v52 }
 0x820   :  { %v2622_v23 = vmax.f32 %v2477_v24, %v2619_v3 }
 0x821   :  { %v2470_v37 = vpop.permute.xlu0 %2469  ;;  %v2612_v55 = vpop.permute.xlu1 %2611 }
 0x822   :  { %v2478_v20 = vmul.f32 %v2470_v37, %v2386_v47  ;;  %v2620_v27 = vmul.f32 %v2612_v55, %v2531_v13  ;;  %v5671_v47 = vld [vmem:[%s7862_s0 + $0x18] ss:$12 sps:$4 sm:$0xff]  }
 0x823   :  { %2767 = vmatpush1.bf16.msra.mxu0 %v5671_v47  ;;  %v2690_v47 = vrot.slane %v7461_v62, %v7194_v46 }
 0x824   :  { %v2623_v28 = vmax.f32 %v2478_v20, %v2620_v27  ;;  %2768 = vmatprep.subr.bf16.mxu0 %v5677_v56 }
 0x825   :  { %v2475_v25 = vpop.permute.xlu0 %2474  ;;  %v2617_v29 = vpop.permute.xlu1 %2616 }
 0x826   :  { %v2625_v38 = vpack.c.bf16 %v2623_v28, %v2622_v23  ;;  %v2479_v36 = vmul.f32 %v5282_v26, %v2475_v25  ;;  %v2621_v59 = vmul.f32 %v5298_v43, %v2617_v29  ;;  %v5681_v26 = vld [vmem:[%s7863_s15 + $0x14] ss:$8 sps:$4 sm:$0xff]   ;;  %v2016_v43 = vrot.slane %v7461_v62, %v7180_v21 }
 0x827   :  { %2769 = vmatpush1.bf16.msra.mxu0 %v5675_v5 }
 0x828   :  { %v2624_v32 = vmax.f32 %v2479_v36, %v2621_v59  ;;  %5312 = vmatprep.mubr.msk.bf16.mxu1 %vm1452_vm11, %v2625_v38  ;;  %2957 = vmatprep.subr.bf16.mxu0 %v5687_v7  ;;  %v2078_v58 = vadd.f32 %v7449_v14, %v2016_v43  ;;  %v2070_v52 = vadd.f32 %v7451_v19, %v2016_v43 }
 0x829   :  { %v2073_v57 = vadd.f32 %v7455_v22, %v2016_v43 }
 0x82a   :  { %v2626_v17 = vpack.c.bf16 %v2624_v32, %v2624_v32  ;;  %v2088_v45 = vand.u32 2147483647, %v2078_v58  ;;  %v2086_v44 = vand.u32 2147483647, %v2070_v52  ;;  %v2083_v2 = vmax.f32 %v2070_v52, 0.0 }
 0x82b   :  { %v2087_v13 = vand.u32 2147483647, %v2073_v57  ;;  %v2084_v43 = vmax.f32 %v2073_v57, 0.0 }
 0x82c   :  { %5313 = vmatmul.mubr.msk.bf16.vlgmr.msra.gmra.mxu1 %vm1452_vm11, %v2626_v17  ;;  %v2091_v24 = vsub.f32 0.0, %v2088_v45  ;;  %v2089_v3 = vsub.f32 0.0, %v2086_v44  ;;  %v2085_v17 = vmax.f32 %v2078_v58, 0.0 }
 0x82d   :  { %5317 = vmatpush3.bf16.msra.mxu1 %v5674_v61  ;;  %v2090_v20 = vsub.f32 0.0, %v2087_v13 }
 0x82e   :  { %5318 = vmatprep.subr.bf16.mxu1 %v5678_v63  ;;  %v2096_v37 = vmul.f32 1.442695, %v2091_v24  ;;  %v2092_v55 = vmul.f32 1.442695, %v2089_v3 }
 0x82f   :  { %v2094_v27 = vmul.f32 1.442695, %v2090_v20 }
 0x830   :  { %5801 = vpow2.f32 %v2096_v37 }
 0x831   :  { %5319 = vmatpush3.bf16.msra.mxu1 %v5678_v63  ;;  %5803 = vpow2.f32 %v2092_v55 }
 0x832   :  { %2886 = vmatprep.subr.bf16.mxu1 %v5681_v26  ;;  %5805 = vpow2.f32 %v2094_v27 }
 0x83d   :  { %v5802_v23 = vpop.eup %5801 }
 0x83e   :  { %v5804_v28 = vpop.eup %5803  ;;  %v2100_v25 = vadd.f32 1.0, %v5802_v23 }
 0x83f   :  { %v2098_v14 = vadd.f32 1.0, %v5804_v28  ;;  %v5806_v29 = vpop.eup %5805 }
 0x840   :  { %5807 = vlog2.f32 %v2100_v25  ;;  %v2099_v19 = vadd.f32 1.0, %v5806_v29 }
 0x841   :  { %5809 = vlog2.f32 %v2098_v14 }
 0x842   :  { %5811 = vlog2.f32 %v2099_v19 }
 0x84d   :  { %v5808_v22 = vpop.eup %5807 }
 0x84e   :  { %v5810_v38 = vpop.eup %5809  ;;  %v2106_v36 = vmul.f32 0.6931472, %v5808_v22  ;;  %v5679_v22 = vld [vmem:[%s7863_s15 + $0x10] ss:$8 sps:$4 sm:$0xff]  }
 0x84f   :  { %v2102_v59 = vmul.f32 0.6931472, %v5810_v38  ;;  %v5812_v32 = vpop.eup %5811 }
 0x850   :  { %v2109_v61 = vadd.f32 %v2106_v36, %v2085_v17  ;;  %v2104_v63 = vmul.f32 0.6931472, %v5812_v32  ;;  %v5684_v36 = vld [vmem:[%s7863_s15 + $0x4] ss:$8 sps:$4 sm:$0xff]   ;;  %v7864_v32 = vpack.c.bf16 %v7376_v60, %v7374_v8  ;;  %v5688_v17 = vld [vmem:[#allocation37] sm:$0xff]  }
 0x851   :  { %v2107_v5 = vadd.f32 %v2102_v59, %v2083_v2  ;;  %v5685_v59 = vld [vmem:[#allocation45] ss:$8 sps:$4 sm:$0xff]  }
 0x852   :  { %v4834_v24 = vadd.f32 -0.6931472, %v2109_v61  ;;  %v2108_v37 = vadd.f32 %v2104_v63, %v2084_v43 }
 0x853   :  { %v4832_v13 = vadd.f32 -0.6931472, %v2107_v5 }
 0x854   :  { %v4833_v27 = vadd.f32 -0.6931472, %v2108_v37 }
 0x8ec   :  { %v5314_v56 = vpop.f32.mrf.mxu1 }
 0x8ed   :  { %v2682_v26 = vadd.f32 %v5314_v56, %v7268_v33 }
 0x8ee   :  { %v2673_v7 = vpop.f32.mrf.mxu1 }
 0x8ef   :  { %v2693_v45 = vadd.f32 %v2690_v47, %v2682_v26  ;;  %v2674_v44 = vadd.f32 %v2673_v7, %v7272_v35 }
 0x8f0   :  { %v5315_v3 = vpop.f32.mrf.mxu1 }
 0x8f1   :  { %v2691_v58 = vadd.f32 %v2690_v47, %v2674_v44  ;;  %v2696_v52 = vmax.f32 %v4834_v24, %v2693_v45 }
 0x8f2   :  { %v2676_v55 = vpop.f32.mrf.mxu1 }
 0x8f3   :  { %v2694_v62 = vmax.f32 %v4832_v13, %v2691_v58  ;;  %v2677_v20 = vadd.f32 %v2676_v55, %v7276_v39  ;;  %v2702_v33 = vmul.f32 0.01, %v2696_v52  ;;  %vm2699_vm8 = vcmp.gt.f32.partialorder %v2696_v52, 0.0  ;;  %v5682_v39 = vld [vmem:[%s7863_s15] ss:$8 sps:$4 sm:$0xff]  }
 0x8f4   :  { %v5689_v55 = vld [vmem:[#allocation39 + $0x8] sm:$0xff]  }
 0x8f5   :  { %v2692_v23 = vadd.f32 %v2690_v47, %v2677_v20  ;;  %v2700_v57 = vmul.f32 0.01, %v2694_v62  ;;  %vm2697_vm9 = vcmp.gt.f32.partialorder %v2694_v62, 0.0  ;;  %v2705_v25 = vsel %vm2699_vm8, %v2696_v52, %v2702_v33 }
 0x8f6   :  { %v2715_v38 = vpack.c.bf16 %v2705_v25, %v2705_v25 }
 0x8f7   :  { %v2695_v28 = vmax.f32 %v4833_v27, %v2692_v23  ;;  %v2703_v14 = vsel %vm2697_vm9, %v2694_v62, %v2700_v57  ;;  %v5901_v23 = vld [vmem:[#allocation6] sm:$0x3f]   ;;  %v5690_v57 = vld [vmem:[#allocation39] sm:$0xff]  }
 0x8f9   :  { %vm2698_vm10 = vcmp.gt.f32.partialorder %v2695_v28, 0.0  ;;  %v2701_v35 = vmul.f32 0.01, %v2695_v28 }
 0x8fb   :  { %v2704_v29 = vsel %vm2698_vm10, %v2695_v28, %v2701_v35 }
 0x8fc   :  { %v2714_v19 = vpack.c.bf16 %v2704_v29, %v2703_v14  ;;  %v5902_v14 = vld [vmem:[#allocation10] sm:$0xff]  }
 0x8fe   :  { %4868 = vmatmul.mubr.msk.bf16.vlgmr.msra.gmra.mxu0 %vm1256_vm7, %v2714_v19  ;;  %5320 = vmatprep.mubr.msk.bf16.mxu1 %vm1256_vm7, %v2714_v19 }
 0x8ff   :  { %5321 = vmatmul.mubr.msk.bf16.vlgmr.msra.gmra.mxu1 %vm1256_vm7, %v2715_v38  ;;  %2794 = vmatprep.mubr.bf16.mxu0 %v7861_v15 }
 0x900   :  { %2887 = vmatpush1.bf16.msra.mxu1 %v5679_v22  ;;  %2906 = vmatprep.mubr.bf16.mxu1 %v7861_v15 }
 0x901   :  { %2888 = vmatprep.subr.bf16.mxu1 %v5684_v36  ;;  %2958 = vmatpush1.bf16.msra.mxu0 %v5685_v59 }
 0x902   :  { %5332 = vmatprep.subr.bf16.mxu0 %v6717_v0 }
 0x904   :  { %2889 = vmatpush1.bf16.msra.mxu1 %v5682_v39 }
 0x905   :  { %5324 = vmatprep.subr.bf16.mxu1 %v6717_v0 }
 0x906   :  { %4869 = vmatmul.mubr.msk.bf16.gmra.mxu0 %vm1256_vm7, %v2715_v38 }
 0x907   :  { %4876 = vmatmul.mubr.msk.bf16.vlgmr.msra.gmra.mxu1 %vm1256_vm7, %v7864_v32  ;;  %2975 = vmatprep.mubr.bf16.mxu0 %v7861_v15 }
 0x908   :  { %5328 = vmatprep.mubr.msk.bf16.mxu1 %vm6718_vm0, %v6717_v0 }
 0x90e   :  { %4879 = vmatmul.mubr.msk.bf16.vlgmr.msra.gmra.mxu0 %vm1452_vm11, %v7459_v9 }
 0x90f   :  { %5333 = vmatpush3.bf16.msra.mxu0 %v5688_v17  ;;  %5334 = vmatprep.mubr.msk.bf16.mxu0 %vm6718_vm0, %v6717_v0 }
 0x910   :  { %5362 = vmatprep.subr.bf16.mxu0 %v6717_v0 }
 0x916   :  { %5335 = vmatmul.mubr.msk.bf16.vlgmr.msra.gmra.mxu0 %vm1452_vm11, %v7239_v1 }
 0x917   :  { %5338 = vmatprep.mubr.msk.bf16.mxu0 %vm6718_vm0, %v6717_v0 }
 0x91e   :  { %5339 = vmatmul.mubr.msk.bf16.gmra.mxu0 %vm1452_vm11, %v7252_v11  ;;  %v7532_v11 = vld [vmem:[#allocation36] sm:$0xff] }
 0x91f   :  { %5342 = vmatprep.mubr.msk.bf16.mxu0 %vm6718_vm0, %v6717_v0  ;;  %v2987_v62 = vrot.slane %v7532_v11, %v7304_v10  ;;  %v3047_v35 = vrot.slane %v7532_v11, %v7281_v50 }
 0x926   :  { %5343 = vmatmul.mubr.msk.bf16.gmra.mxu0 %vm1452_vm11, %v7258_v18  ;;  %v2920_v18 = vrot.slane %v7532_v11, %v7194_v46 }
 0x927   :  { %5364 = vmatprep.mubr.msk.bf16.mxu0 %vm6718_vm0, %v6717_v0 }
 0x9be   :  { %v2788_v8 = vpop.f32.mrf.mxu0 }
 0x9bf   :  { %v7526_v60 = vpop.f32.mrf.mxu1 }
 0x9c0   :  { %v2790_v9 = vpop.f32.mrf.mxu0 }
 0x9c1   :  { %v7528_v1 = vpop.f32.mrf.mxu1 }
 0x9c2   :  { %v2791_v15 = vpop.f32.mrf.mxu0 }
 0x9c3   :  { %v5323_v2 = vpop.f32.mrf.mxu1  ;;  %v2992_v24 = vpack.c.bf16 %v2791_v15, %v2788_v8 }
 0x9c4   :  { %v2793_v47 = vpop.f32.mrf.mxu0 }
 0x9c5   :  { %v7530_v61 = vpop.f32.mrf.mxu1 }
 0x9c6   :  { %v2796_v56 = vpop.f32.mrf.mxu0 }
 0x9c7   :  { %v2993_v5 = vpack.c.bf16 %v2796_v56, %v2796_v56  ;;  %v2908_v63 = vpop.f32.mrf.mxu1  ;;  %v5903_v56 = vld [vmem:[#allocation10 + $0x8] sm:$0xff]  }
 0x9c8   :  { %v2798_v26 = vpop.f32.mrf.mxu0  ;;  %v2921_v3 = vadd.f32 %v2920_v18, %v2908_v63 }
 0x9c9   :  { %v2999_v7 = vsel %vm857_vm1, %v2993_v5, 0  ;;  %v7537_v43 = vpop.f32.mrf.mxu1 }
 0x9ca   :  { %v2799_v45 = vpop.f32.mrf.mxu0  ;;  %5325 = vmatpush3.bf16.msra.mxu1 %v2999_v7 }
 0x9cb   :  { %v2912_v44 = vpop.f32.mrf.mxu1  ;;  %5326 = vmatprep.subr.bf16.mxu1 %v6717_v0 }
 0x9cc   :  { %v2922_v13 = vadd.f32 %v2920_v18, %v2912_v44  ;;  %v2800_v37 = vpop.f32.mrf.mxu0 }
 0x9ce   :  { %v3316_v58 = vpack.c.bf16 %v2922_v13, %v2921_v3  ;;  %v2977_v52 = vpop.f32.mrf.mxu0  ;;  %5327 = vmatpush3.bf16.msra.mxu1 %v2992_v24 }
 0x9cf   :  { %5346 = vmatprep.subr.bf16.mxu1 %v6717_v0  ;;  %v5904_v52 = vld [vmem:[#allocation10 + $0x10] sm:$0xff]  }
 0x9d0   :  { %v2978_v20 = vpop.f32.mrf.mxu0  ;;  %v3318_v27 = vsel %vm1878_vm15, %v3316_v58, 0 }
 0x9d1   :  { %5329 = vmatmul.mubr.msk.bf16.vlgmr.msra.gmra.mxu1 %vm1518_vm14, %v5901_v23  ;;  %5363 = vmatpush3.bf16.msra.mxu0 %v3318_v27  ;;  %v2988_v28 = vadd.f32 %v2987_v62, %v2978_v20 }
 0x9d2   :  { %v2980_v33 = vpop.f32.mrf.mxu0  ;;  %5347 = vmatpush3.bf16.msra.mxu1 %v5689_v55  ;;  %5350 = vmatprep.mubr.msk.bf16.mxu1 %vm6718_vm0, %v6717_v0 }
 0x9d3   :  { %5348 = vmatprep.subr.bf16.mxu1 %v6717_v0  ;;  %v2990_v22 = vmax.f32 %v2988_v28, 0.0 }
 0x9d4   :  { %v2981_v25 = vpop.f32.mrf.mxu0  ;;  %5365 = vmatmul.mubr.msk.bf16.vlgmr.msra.gmra.mxu0 %vm1868_vm3, %v5902_v14 }
 0x9d5   :  { %v2989_v29 = vadd.f32 %v2987_v62, %v2981_v25  ;;  %5368 = vmatprep.mubr.msk.bf16.mxu0 %vm6718_vm0, %v6717_v0 }
 0x9d6   :  { %v3088_v19 = vpop.f32.mrf.mxu0  ;;  %5349 = vmatpush3.bf16.msra.mxu1 %v5690_v57 }
 0x9d7   :  { %v2991_v38 = vmax.f32 %v2989_v29, 0.0  ;;  %v7553_v36 = vadd.f32 %v3088_v19, %v3047_v35 }
 0x9d8   :  { %v5336_v59 = vpop.f32.mrf.mxu0 }
 0x9d9   :  { %v7555_v39 = vpack.c.bf16 %v2991_v38, %v2990_v22  ;;  %v3117_v32 = vand.u32 2147483647, %v7553_v36 }
 0x9da   :  { %v3091_v17 = vpop.f32.mrf.mxu0 }
 0x9db   :  { %v3123_v8 = vsub.f32 0.0, %v3117_v32  ;;  %v7558_v9 = vadd.f32 %v3091_v17, %v3047_v35  ;;  %5408 = vmatprep.subr.bf16.mxu0 %v7555_v39 }
 0x9dc   :  { %v5337_v15 = vpop.f32.mrf.mxu0  ;;  %5409 = vmatpush3.bf16.msra.mxu0 %v7555_v39 }
 0x9dd   :  { %v3129_v2 = vmul.f32 1.442695, %v3123_v8  ;;  %v3118_v47 = vand.u32 2147483647, %v7558_v9  ;;  %5369 = vmatmul.mubr.msk.bf16.gmra.mxu0 %vm1868_vm3, %v5903_v56 }
 0x9de   :  { %v3096_v5 = vpop.f32.mrf.mxu0  ;;  %5372 = vmatprep.mubr.msk.bf16.mxu0 %vm6718_vm0, %v6717_v0 }
 0x9df   :  { %5813 = vpow2.f32 %v3129_v2  ;;  %v3124_v63 = vsub.f32 0.0, %v3118_v47  ;;  %v7566_v18 = vadd.f32 %v3096_v5, %v3047_v35 }
 0x9e0   :  { %v5340_v26 = vpop.f32.mrf.mxu0 }
 0x9e1   :  { %v3131_v7 = vmul.f32 1.442695, %v3124_v63  ;;  %v3119_v45 = vand.u32 2147483647, %v7566_v18 }
 0x9e2   :  { %v3099_v44 = vpop.f32.mrf.mxu0 }
 0x9e3   :  { %5815 = vpow2.f32 %v3131_v7  ;;  %v3125_v24 = vsub.f32 0.0, %v3119_v45  ;;  %v7569_v3 = vadd.f32 %v3099_v44, %v3047_v35  ;;  %v3112_v45 = vmax.f32 %v7558_v9, 0.0 }
 0x9e4   :  { %v5341_v13 = vpop.f32.mrf.mxu0 }
 0x9e5   :  { %v3133_v37 = vmul.f32 1.442695, %v3125_v24  ;;  %v3120_v58 = vand.u32 2147483647, %v7569_v3  ;;  %5373 = vmatmul.mubr.msk.bf16.gmra.mxu0 %vm1868_vm3, %v5904_v52 }
 0x9e6   :  { %v3104_v55 = vpop.f32.mrf.mxu0  ;;  %5410 = vmatprep.mubr.msk.bf16.mxu0 %vm1452_vm11, %v7436_v4 }
 0x9e7   :  { %5817 = vpow2.f32 %v3133_v37  ;;  %v3126_v62 = vsub.f32 0.0, %v3120_v58  ;;  %v7575_v20 = vadd.f32 %v3104_v55, %v3047_v35 }
 0x9e8   :  { %v5344_v27 = vpop.f32.mrf.mxu0 }
 0x9e9   :  { %v3135_v23 = vmul.f32 1.442695, %v3126_v62  ;;  %v3121_v33 = vand.u32 2147483647, %v7575_v20  ;;  %v3113_v27 = vmax.f32 %v7566_v18, 0.0 }
 0x9ea   :  { %v3107_v57 = vpop.f32.mrf.mxu0 }
 0x9eb   :  { %5819 = vpow2.f32 %v3135_v23  ;;  %v3127_v28 = vsub.f32 0.0, %v3121_v33  ;;  %v3108_v25 = vadd.f32 %v3107_v57, %v3047_v35 }
 0x9ec   :  { %v5814_v14 = vpop.eup %5813  ;;  %v5345_v29 = vpop.f32.mrf.mxu0 }
 0x9ed   :  { %v3141_v19 = vadd.f32 1.0, %v5814_v14  ;;  %v3137_v22 = vmul.f32 1.442695, %v3127_v28  ;;  %v3122_v38 = vand.u32 2147483647, %v3108_v25  ;;  %5411 = vmatmul.mubr.msk.bf16.vlgmr.msra.gmra.mxu0 %vm1452_vm11, %v7438_v54 }
 0x9ee   :  { %5420 = vmatprep.mubr.msk.bf16.mxu0 %vm1956_vm4, %v7444_v16  ;;  %v3111_v16 = vmax.f32 %v7553_v36, 0.0  ;;  %v3114_v36 = vmax.f32 %v7569_v3, 0.0 }
 0x9ef   :  { %5821 = vlog2.f32 %v3141_v19  ;;  %v3128_v4 = vsub.f32 0.0, %v3122_v38  ;;  %v3115_v38 = vmax.f32 %v7575_v20, 0.0  ;;  %v2926_v20 = vrot.slane %v7532_v11, %v7191_v41 }
 0x9f0   :  { %v5816_v59 = vpop.eup %5815  ;;  %5823 = vpow2.f32 %v3137_v22 }
 0x9f1   :  { %v3142_v32 = vadd.f32 1.0, %v5816_v59  ;;  %v3139_v17 = vmul.f32 1.442695, %v3128_v4  ;;  %v3116_v59 = vmax.f32 %v3108_v25, 0.0  ;;  %v2914_v25 = vpop.f32.mrf.mxu1 }
 0x9f3   :  { %5825 = vlog2.f32 %v3142_v32 }
 0x9f4   :  { %v5818_v8 = vpop.eup %5817  ;;  %5827 = vpow2.f32 %v3139_v17 }
 0x9f5   :  { %v3143_v35 = vadd.f32 1.0, %v5818_v8 }
 0x9f7   :  { %5829 = vlog2.f32 %v3143_v35 }
 0x9f8   :  { %v5820_v15 = vpop.eup %5819 }
 0x9f9   :  { %v3144_v2 = vadd.f32 1.0, %v5820_v15  ;;  %v5905_v15 = vld [vmem:[#allocation15] sm:$0xff]  }
 0x9fb   :  { %5831 = vlog2.f32 %v3144_v2  ;;  %v2997_v2 = vrot.slane %v7532_v11, %v7180_v21 }
 0x9fc   :  { %v5822_v47 = vpop.eup %5821 }
 0x9fd   :  { %v5824_v56 = vpop.eup %5823  ;;  %v3148_v54 = vmul.f32 0.6931472, %v5822_v47 }
 0x9fe   :  { %v3145_v5 = vadd.f32 1.0, %v5824_v56  ;;  %v2927_v56 = vadd.f32 %v2926_v20, %v7537_v43 }
 0x9ff   :  { %v3159_v7 = vadd.f32 %v3148_v54, %v3111_v16 }
 0xa00   :  { %v5826_v63 = vpop.eup %5825  ;;  %5833 = vlog2.f32 %v3145_v5 }
 0xa01   :  { %v5828_v26 = vpop.eup %5827  ;;  %v3150_v44 = vmul.f32 0.6931472, %v5826_v63  ;;  %v4885_v58 = vadd.f32 -0.6931472, %v3159_v7  ;;  %v2928_v7 = vadd.f32 %v2926_v20, %v2914_v25 }
 0xa02   :  { %v3146_v24 = vadd.f32 1.0, %v5828_v26 }
 0xa03   :  { %v3160_v13 = vadd.f32 %v3150_v44, %v3112_v45 }
 0xa04   :  { %v5830_v37 = vpop.eup %5829  ;;  %5835 = vlog2.f32 %v3146_v24 }
 0xa05   :  { %v4886_v52 = vadd.f32 -0.6931472, %v3160_v13  ;;  %v3152_v55 = vmul.f32 0.6931472, %v5830_v37 }
 0xa07   :  { %v3171_v62 = vpack.c.bf16 %v4886_v52, %v4885_v58  ;;  %v3161_v33 = vadd.f32 %v3152_v55, %v3113_v27 }
 0xa08   :  { %v5832_v23 = vpop.eup %5831 }
 0xa09   :  { %v3154_v57 = vmul.f32 0.6931472, %v5832_v23  ;;  %5351 = vmatmul.mubr.msk.bf16.vlgmr.msra.gmra.mxu1 %vm1256_vm7, %v3171_v62  ;;  %v4887_v14 = vadd.f32 -0.6931472, %v3161_v33 }
 0xa0a   :  { %5354 = vmatprep.mubr.msk.bf16.mxu1 %vm6718_vm0, %v6717_v0 }
 0xa0b   :  { %v3162_v9 = vadd.f32 %v3154_v57, %v3114_v36 }
 0xa0d   :  { %v5834_v28 = vpop.eup %5833  ;;  %v4888_v29 = vadd.f32 -0.6931472, %v3162_v9 }
 0xa0e   :  { %v3156_v19 = vmul.f32 0.6931472, %v5834_v28 }
 0xa0f   :  { %v3172_v22 = vpack.c.bf16 %v4888_v29, %v4887_v14 }
 0xa10   :  { %v3163_v18 = vadd.f32 %v3156_v19, %v3115_v38  ;;  %v3177_v38 = vrot.slane %v7532_v11, %v7391_v12 }
 0xa11   :  { %v5836_v4 = vpop.eup %5835  ;;  %5355 = vmatmul.mubr.msk.bf16.gmra.mxu1 %vm1256_vm7, %v3172_v22 }
 0xa12   :  { %v3158_v3 = vmul.f32 0.6931472, %v5836_v4  ;;  %5358 = vmatprep.mubr.msk.bf16.mxu1 %vm6718_vm0, %v6717_v0  ;;  %v4889_v17 = vadd.f32 -0.6931472, %v3163_v18 }
 0xa14   :  { %v3164_v32 = vadd.f32 %v3158_v3, %v3116_v59 }
 0xa16   :  { %v4890_v8 = vadd.f32 -0.6931472, %v3164_v32 }
 0xa18   :  { %v3173_v35 = vpack.c.bf16 %v4890_v8, %v4889_v17 }
 0xa1a   :  { %5359 = vmatmul.mubr.msk.bf16.gmra.mxu1 %vm1256_vm7, %v3173_v35 }
 0xa1b   :  { %5382 = vmatprep.mubr.msk.bf16.mxu1 %vm1956_vm4, %v5905_v15 }
 0xa91   :  { %v3035_v47 = vpop.f32.mrf.mxu1 }
 0xa92   :  { %v3036_v54 = vadd.f32 %v3035_v47, %v2997_v2 }
 0xa93   :  { %v5330_v5 = vpop.f32.mrf.mxu1 }
 0xa94   :  { %v3042_v16 = vadd.f32 %v3036_v54, %v2927_v56  ;;  %v7600_v63 = vpop.f32.mrf.mxu0 }
 0xa95   :  { %v3038_v26 = vpop.f32.mrf.mxu1 }
 0xa96   :  { %v3039_v45 = vadd.f32 %v3038_v26, %v2997_v2  ;;  %v5366_v44 = vpop.f32.mrf.mxu0  ;;  %v3951_v13 = vmul.f32 0.01, %v3042_v16  ;;  %vm3949_vm12 = vcmp.gt.f32.partialorder %v3042_v16, 0.0 }
 0xa97   :  { %v5331_v24 = vpop.f32.mrf.mxu1 }
 0xa98   :  { %v3043_v37 = vadd.f32 %v3039_v45, %v2928_v7  ;;  %v7602_v58 = vpop.f32.mrf.mxu0  ;;  %v7604_v62 = vsel %vm3949_vm12, %v3042_v16, %v3951_v13 }
 0xa9a   :  { %vm3950_vm13 = vcmp.gt.f32.partialorder %v3043_v37, 0.0  ;;  %v3952_v52 = vmul.f32 0.01, %v3043_v37  ;;  %v5367_v55 = vpop.f32.mrf.mxu0 }
 0xa9c   :  { %v7606_v43 = vsel %vm3950_vm13, %v3043_v37, %v3952_v52 }
 0xa9d   :  { %v4246_v27 = vpack.c.bf16 %v7606_v43, %v7604_v62  ;;  %v7610_v23 = vpop.f32.mrf.mxu0 }
 0xa9f   :  { %v5370_v33 = vpop.f32.mrf.mxu0 }
 0xaa1   :  { %v7612_v36 = vpop.f32.mrf.mxu0 }
 0xaa3   :  { %v5371_v57 = vpop.f32.mrf.mxu0 }
 0xaa5   :  { %v7614_v9 = vpop.f32.mrf.mxu0 }
 0xaa7   :  { %v5374_v28 = vpop.f32.mrf.mxu0 }
 0xaa9   :  { %v7616_v14 = vpop.f32.mrf.mxu0 }
 0xaab   :  { %v5375_v29 = vpop.f32.mrf.mxu0 }
 0xac9   :  { %v3233_v19 = vpop.f32.mrf.mxu1 }
 0xaca   :  { %v7623_v32 = vadd.f32 %v3233_v19, %v3177_v38 }
 0xacb   :  { %v5352_v22 = vpop.f32.mrf.mxu1 }
 0xacc   :  { %v3262_v2 = vand.u32 2147483647, %v7623_v32 }
 0xacd   :  { %v3236_v4 = vpop.f32.mrf.mxu1 }
 0xace   :  { %v7620_v18 = vadd.f32 %v3236_v4, %v3177_v38  ;;  %v3268_v16 = vsub.f32 0.0, %v3262_v2 }
 0xacf   :  { %v5353_v59 = vpop.f32.mrf.mxu1 }
 0xad0   :  { %v3263_v3 = vand.u32 2147483647, %v7620_v18  ;;  %v3274_v37 = vmul.f32 1.442695, %v3268_v16 }
 0xad1   :  { %v3241_v17 = vpop.f32.mrf.mxu1 }
 0xad2   :  { %v7625_v8 = vadd.f32 %v3241_v17, %v3177_v38  ;;  %v3269_v15 = vsub.f32 0.0, %v3263_v3 }
 0xad3   :  { %v5356_v35 = vpop.f32.mrf.mxu1 }
 0xad4   :  { %v3264_v20 = vand.u32 2147483647, %v7625_v8  ;;  %v3276_v54 = vmul.f32 1.442695, %v3269_v15 }
 0xad5   :  { %v3244_v25 = vpop.f32.mrf.mxu1 }
 0xad6   :  { %v3270_v47 = vsub.f32 0.0, %v3264_v20  ;;  %v3245_v11 = vadd.f32 %v3244_v25, %v3177_v38  ;;  %5837 = vpow2.f32 %v3276_v54 }
 0xad7   :  { %v5357_v56 = vpop.f32.mrf.mxu1 }
 0xad8   :  { %v3265_v5 = vand.u32 2147483647, %v3245_v11  ;;  %v3278_v26 = vmul.f32 1.442695, %v3270_v47 }
 0xada   :  { %v3271_v7 = vsub.f32 0.0, %v3265_v5  ;;  %v3249_v45 = vpop.f32.mrf.mxu1  ;;  %5839 = vpow2.f32 %v3278_v26 }
 0xadb   :  { %v3250_v44 = vadd.f32 %v3249_v45, %v3177_v38 }
 0xadc   :  { %v3280_v24 = vmul.f32 1.442695, %v3271_v7  ;;  %v5360_v13 = vpop.f32.mrf.mxu1 }
 0xadd   :  { %v3266_v52 = vand.u32 2147483647, %v3250_v44  ;;  %v3260_v13 = vmax.f32 %v3250_v44, 0.0 }
 0xade   :  { %5841 = vpow2.f32 %v3280_v24  ;;  %v3252_v55 = vpop.f32.mrf.mxu1  ;;  %v3259_v24 = vmax.f32 %v3245_v11, 0.0 }
 0xadf   :  { %v3272_v33 = vsub.f32 0.0, %v3266_v52  ;;  %v3253_v57 = vadd.f32 %v3252_v55, %v3177_v38  ;;  %5843 = vpow2.f32 %v3274_v37 }
 0xae0   :  { %v5361_v28 = vpop.f32.mrf.mxu1 }
 0xae1   :  { %v3282_v29 = vmul.f32 1.442695, %v3272_v33  ;;  %v3267_v19 = vand.u32 2147483647, %v3253_v57  ;;  %v3258_v33 = vmax.f32 %v7625_v8, 0.0 }
 0xae3   :  { %5845 = vpow2.f32 %v3282_v29  ;;  %v3273_v22 = vsub.f32 0.0, %v3267_v19  ;;  %v5838_v59 = vpop.eup %5837 }
 0xae4   :  { %v3287_v2 = vadd.f32 1.0, %v5838_v59  ;;  %v3261_v59 = vmax.f32 %v3253_v57, 0.0 }
 0xae5   :  { %v3284_v4 = vmul.f32 1.442695, %v3273_v22 }
 0xae7   :  { %5847 = vpow2.f32 %v3284_v4  ;;  %v5840_v3 = vpop.eup %5839  ;;  %v3257_v4 = vmax.f32 %v7620_v18, 0.0 }
 0xae8   :  { %v3288_v15 = vadd.f32 1.0, %v5840_v3 }
 0xaeb   :  { %v5842_v17 = vpop.eup %5841 }
 0xaec   :  { %v3289_v35 = vadd.f32 1.0, %v5842_v17  ;;  %v5844_v20 = vpop.eup %5843 }
 0xaed   :  { %v3286_v47 = vadd.f32 1.0, %v5844_v20 }
 0xaee   :  { %5849 = vlog2.f32 %v3289_v35 }
 0xaef   :  { %5851 = vlog2.f32 %v3288_v15  ;;  %v3256_v15 = vmax.f32 %v7623_v32, 0.0 }
 0xaf0   :  { %v5846_v25 = vpop.eup %5845  ;;  %5853 = vlog2.f32 %v3287_v2 }
 0xaf1   :  { %v3290_v38 = vadd.f32 1.0, %v5846_v25 }
 0xaf3   :  { %5855 = vlog2.f32 %v3290_v38 }
 0xaf4   :  { %v5848_v56 = vpop.eup %5847  ;;  %5857 = vlog2.f32 %v3286_v47 }
 0xaf5   :  { %v3291_v54 = vadd.f32 1.0, %v5848_v56 }
 0xaf7   :  { %5859 = vlog2.f32 %v3291_v54 }
 0xafb   :  { %v5850_v5 = vpop.eup %5849 }
 0xafc   :  { %v5852_v16 = vpop.eup %5851  ;;  %v3299_v7 = vmul.f32 0.6931472, %v5850_v5 }
 0xafd   :  { %v5854_v26 = vpop.eup %5853  ;;  %v3297_v37 = vmul.f32 0.6931472, %v5852_v16 }
 0xafe   :  { %v3295_v28 = vmul.f32 0.6931472, %v5854_v26  ;;  %v3307_v29 = vadd.f32 %v3299_v7, %v3259_v24 }
 0xaff   :  { %v3306_v17 = vadd.f32 %v3297_v37, %v3258_v33  ;;  %v5693_v37 = vld [vmem:[#allocation42] sm:$0xff]   ;;  %v7655_v33 = vpop.f32.mrf.mxu0 }
 0xb00   :  { %v5856_v45 = vpop.eup %5855  ;;  %v3305_v20 = vadd.f32 %v3295_v28, %v3257_v4  ;;  %v4899_v11 = vadd.f32 -0.6931472, %v3307_v29 }
 0xb01   :  { %v3301_v52 = vmul.f32 0.6931472, %v5856_v45  ;;  %v5858_v55 = vpop.eup %5857  ;;  %v4898_v47 = vadd.f32 -0.6931472, %v3306_v17  ;;  %v7657_v28 = vpop.f32.mrf.mxu0 }
 0xb02   :  { %v3293_v3 = vmul.f32 0.6931472, %v5858_v55  ;;  %v4897_v8 = vadd.f32 -0.6931472, %v3305_v20  ;;  %v3380_v56 = vmul.f32 %v4899_v11, %v7612_v36  ;;  %v5906_v36 = vld [vmem:[#allocation15 + $0x8] ss:$0 sps:$4 sm:$0xff]  }
 0xb03   :  { %v3308_v19 = vadd.f32 %v3301_v52, %v3260_v13  ;;  %v3379_v5 = vmul.f32 %v4898_v47, %v7610_v23  ;;  %v5692_v23 = vld [vmem:[#allocation40] sm:$0xff]  }
 0xb04   :  { %v5860_v22 = vpop.eup %5859  ;;  %v3304_v25 = vadd.f32 %v3293_v3, %v3256_v15  ;;  %v3378_v32 = vmul.f32 %v4897_v8, %v7602_v58  ;;  %v5907_v55 = vld [vmem:[#allocation13] sm:$0xff]  }
 0xb05   :  { %v3303_v35 = vmul.f32 0.6931472, %v5860_v22  ;;  %v4900_v44 = vadd.f32 -0.6931472, %v3308_v19  ;;  %v3384_v26 = vpack.c.bf16 %v3380_v56, %v3379_v5 }
 0xb06   :  { %v4896_v57 = vadd.f32 -0.6931472, %v3304_v25 }
 0xb07   :  { %v3309_v2 = vadd.f32 %v3303_v35, %v3261_v59  ;;  %v3381_v54 = vmul.f32 %v4900_v44, %v7614_v9  ;;  %v5691_v9 = vld [vmem:[#allocation40 + $0x8] sm:$0xff]   ;;  %v7665_v35 = vld [vmem:[#allocation36 + $0x8] sm:$0xff] }
 0xb08   :  { %v3377_v7 = vmul.f32 %v4896_v57, %v7600_v63  ;;  %v3539_v20 = vrot.slane %v7665_v35, %v7191_v41 }
 0xb09   :  { %v4901_v38 = vadd.f32 -0.6931472, %v3309_v2 }
 0xb0a   :  { %v3383_v45 = vpack.c.bf16 %v3378_v32, %v3377_v7 }
 0xb0b   :  { %v3382_v18 = vmul.f32 %v4901_v38, %v7616_v14 }
 0xb0d   :  { %v3385_v16 = vpack.c.bf16 %v3382_v18, %v3381_v54 }
 0xb0f   :  { %5376 = vmatprep.subr.bf16.mxu1 %v3385_v16 }
 0xb10   :  { %5377 = vmatpush3.bf16.msra.mxu1 %v3385_v16 }
 0xb11   :  { %5378 = vmatprep.subr.bf16.mxu1 %v3384_v26 }
 0xb14   :  { %5379 = vmatpush3.bf16.msra.mxu1 %v3384_v26 }
 0xb15   :  { %5380 = vmatprep.subr.bf16.mxu1 %v3383_v45 }
 0xb18   :  { %5381 = vmatpush3.bf16.msra.mxu1 %v3383_v45 }
 0xb19   :  { %5386 = vmatprep.subr.bf16.mxu1 %v5691_v9 }
 0xb1b   :  { %5383 = vmatmul.mubr.msk.bf16.vlgmr.msra.gmra.mxu1 %vm1956_vm4, %v5906_v36 }
 0xb1c   :  { %5387 = vmatpush3.bf16.msra.mxu1 %v5691_v9 }
 0xb1d   :  { %5388 = vmatprep.subr.bf16.mxu1 %v5692_v23 }
 0xb20   :  { %5389 = vmatpush3.bf16.msra.mxu1 %v5692_v23 }
 0xb21   :  { %5394 = vmatprep.subr.bf16.mxu1 %v6717_v0 }
 0xbdb   :  { %v5384_v58 = vpop.f32.mrf.mxu1 }
 0xbdc   :  { %v3435_v52 = vpack.c.bf16 %v5384_v58, %v5384_v58 }
 0xbdd   :  { %v3420_v14 = vpop.f32.mrf.mxu1 }
 0xbdf   :  { %v5385_v24 = vpop.f32.mrf.mxu1 }
 0xbe1   :  { %v3423_v63 = vpop.f32.mrf.mxu1 }
 0xbe2   :  { %v3434_v13 = vpack.c.bf16 %v3423_v63, %v3420_v14 }
 0xbe4   :  { %5390 = vmatprep.mubr.msk.bf16.mxu1 %vm1256_vm7, %v3434_v13 }
 0xbe5   :  { %5391 = vmatmul.mubr.msk.bf16.vlgmr.msra.gmra.mxu1 %vm1256_vm7, %v3435_v52 }
 0xbe6   :  { %5395 = vmatpush3.bf16.msra.mxu1 %v5693_v37  ;;  %5396 = vmatprep.mubr.msk.bf16.mxu1 %vm6718_vm0, %v6717_v0 }
 0xbed   :  { %5397 = vmatmul.mubr.msk.bf16.vlgmr.msra.gmra.mxu1 %vm1452_vm11, %v7223_v40  ;;  %v5413_v40 = vpop.f32.mrf.mxu0 }
 0xbee   :  { %5400 = vmatprep.mubr.msk.bf16.mxu1 %vm6718_vm0, %v6717_v0 }
 0xbf5   :  { %5401 = vmatmul.mubr.msk.bf16.gmra.mxu1 %vm1452_vm11, %v7242_v6 }
 0xbf6   :  { %5404 = vmatprep.mubr.msk.bf16.mxu1 %vm6718_vm0, %v6717_v0 }
 0xbfd   :  { %5405 = vmatmul.mubr.msk.bf16.gmra.mxu1 %vm1452_vm11, %v7266_v30 }
 0xbfe   :  { %5436 = vmatprep.mubr.msk.bf16.mxu1 %vm1956_vm4, %v5907_v55 }
 0xca5   :  { %v7659_v29 = vpop.f32.mrf.mxu1 }
 0xca7   :  { %v7661_v19 = vpop.f32.mrf.mxu1 }
 0xca9   :  { %v5393_v22 = vpop.f32.mrf.mxu1 }
 0xcab   :  { %v7663_v6 = vpop.f32.mrf.mxu1 }
 0xcad   :  { %v3580_v4 = vpop.f32.mrf.mxu1 }
 0xcae   :  { %v3581_v54 = vadd.f32 %v3580_v4, %v3539_v20 }
 0xcaf   :  { %v5398_v59 = vpop.f32.mrf.mxu1 }
 0xcb0   :  { %v3603_v36 = vsub.f32 0.0, %v3581_v54  ;;  %v5908_v54 = vld [vmem:[#allocation12 + $0x8] ss:$0 sps:$4 sm:$0xff]  }
 0xcb1   :  { %v3583_v3 = vpop.f32.mrf.mxu1 }
 0xcb2   :  { %v3584_v47 = vadd.f32 %v3583_v3, %v3539_v20  ;;  %v3609_v63 = vmul.f32 1.442695, %v3603_v36 }
 0xcb3   :  { %v5399_v17 = vpop.f32.mrf.mxu1 }
 0xcb4   :  { %v3604_v16 = vsub.f32 0.0, %v3584_v47 }
 0xcb5   :  { %v3588_v30 = vpop.f32.mrf.mxu1 }
 0xcb6   :  { %v3589_v2 = vadd.f32 %v3588_v30, %v3539_v20  ;;  %v3611_v58 = vmul.f32 1.442695, %v3604_v16  ;;  %v3671_v16 = vpop.f32.mrf.mxu0 }
 0xcb7   :  { %v5402_v15 = vpop.f32.mrf.mxu1 }
 0xcb8   :  { %v3605_v18 = vsub.f32 0.0, %v3589_v2 }
 0xcb9   :  { %v3591_v11 = vpop.f32.mrf.mxu1 }
 0xcba   :  { %v3592_v44 = vadd.f32 %v3591_v11, %v3539_v20  ;;  %v3613_v9 = vmul.f32 1.442695, %v3605_v18  ;;  %v5909_v18 = vld [vmem:[#allocation13 + $0x8] ss:$0 sps:$4 sm:$0xff]  }
 0xcbb   :  { %v5403_v25 = vpop.f32.mrf.mxu1 }
 0xcbc   :  { %v3606_v38 = vsub.f32 0.0, %v3592_v44 }
 0xcbd   :  { %v3596_v8 = vpop.f32.mrf.mxu1 }
 0xcbe   :  { %v3597_v56 = vadd.f32 %v3596_v8, %v3539_v20  ;;  %v3615_v57 = vmul.f32 1.442695, %v3606_v38 }
 0xcbf   :  { %v5406_v5 = vpop.f32.mrf.mxu1 }
 0xcc0   :  { %v3607_v32 = vsub.f32 0.0, %v3597_v56  ;;  %5861 = vpow2.f32 %v3615_v57  ;;  %v5910_v57 = vld [vmem:[#allocation9] sm:$0xff]   ;;  %v5911_v5 = vld [vmem:[#allocation9 + $0x8] ss:$0 sps:$4 sm:$0xff]  }
 0xcc1   :  { %v3599_v26 = vpop.f32.mrf.mxu1 }
 0xcc2   :  { %v3617_v7 = vmul.f32 1.442695, %v3607_v32  ;;  %v3600_v45 = vadd.f32 %v3599_v26, %v3539_v20 }
 0xcc3   :  { %v5407_v23 = vpop.f32.mrf.mxu1 }
 0xcc4   :  { %v3608_v14 = vsub.f32 0.0, %v3600_v45  ;;  %5863 = vpow2.f32 %v3617_v7 }
 0xcc5   :  { %5865 = vpow2.f32 %v3613_v9 }
 0xcc6   :  { %v3619_v24 = vmul.f32 1.442695, %v3608_v14  ;;  %5867 = vpow2.f32 %v3611_v58 }
 0xcc8   :  { %5869 = vpow2.f32 %v3619_v24 }
 0xcc9   :  { %5871 = vpow2.f32 %v3609_v63  ;;  %v5694_v63 = vld [vmem:[#allocation43] sm:$0xff]  }
 0xccd   :  { %v5862_v13 = vpop.eup %5861 }
 0xcce   :  { %v3624_v52 = vadd.f32 1.0, %v5862_v13 }
 0xcd0   :  { %5873 = vrcp.f32 %v3624_v52 }
 0xcd1   :  { %v5864_v37 = vpop.eup %5863 }
 0xcd2   :  { %v5866_v55 = vpop.eup %5865  ;;  %v3625_v40 = vadd.f32 1.0, %v5864_v37 }
 0xcd3   :  { %v5868_v22 = vpop.eup %5867  ;;  %v3623_v59 = vadd.f32 1.0, %v5866_v55 }
 0xcd4   :  { %5875 = vrcp.f32 %v3625_v40  ;;  %v3622_v30 = vadd.f32 1.0, %v5868_v22 }
 0xcd5   :  { %v5870_v4 = vpop.eup %5869 }
 0xcd6   :  { %v3626_v3 = vadd.f32 1.0, %v5870_v4  ;;  %v5872_v17 = vpop.eup %5871 }
 0xcd7   :  { %v3621_v15 = vadd.f32 1.0, %v5872_v17 }
 0xcd8   :  { %5877 = vrcp.f32 %v3626_v3 }
 0xcd9   :  { %5879 = vrcp.f32 %v3623_v59 }
 0xcda   :  { %5881 = vrcp.f32 %v3622_v30 }
 0xcdb   :  { %5883 = vrcp.f32 %v3621_v15 }
 0xcdd   :  { %v5874_v20 = vpop.eup %5873 }
 0xce1   :  { %v5876_v11 = vpop.eup %5875 }
 0xce5   :  { %v5878_v44 = vpop.eup %5877 }
 0xce6   :  { %v3684_v2 = vpack.c.bf16 %v5878_v44, %v5876_v11  ;;  %v5880_v25 = vpop.eup %5879 }
 0xce7   :  { %v3683_v47 = vpack.c.bf16 %v5874_v20, %v5880_v25  ;;  %v5882_v38 = vpop.eup %5881 }
 0xce8   :  { %5414 = vmatprep.subr.bf16.mxu0 %v3684_v2  ;;  %5430 = vmatprep.subr.bf16.mxu1 %v3684_v2  ;;  %v5884_v8 = vpop.eup %5883 }
 0xce9   :  { %5415 = vmatpush3.bf16.msra.mxu0 %v3684_v2  ;;  %5431 = vmatpush3.bf16.msra.mxu1 %v3684_v2  ;;  %v3682_v56 = vpack.c.bf16 %v5882_v38, %v5884_v8  ;;  %v5695_v38 = vld [vmem:[#allocation52 + $0x8] sm:$0xff]  }
 0xcea   :  { %5416 = vmatprep.subr.bf16.mxu0 %v3683_v47  ;;  %5432 = vmatprep.subr.bf16.mxu1 %v3683_v47 }
 0xced   :  { %5417 = vmatpush3.bf16.msra.mxu0 %v3683_v47  ;;  %5433 = vmatpush3.bf16.msra.mxu1 %v3683_v47 }
 0xcee   :  { %5418 = vmatprep.subr.bf16.mxu0 %v3682_v56  ;;  %5434 = vmatprep.subr.bf16.mxu1 %v3682_v56 }
 0xcf1   :  { %5419 = vmatpush3.bf16.msra.mxu0 %v3682_v56  ;;  %5435 = vmatpush3.bf16.msra.mxu1 %v3682_v56  ;;  %v3439_v56 = vrot.slane %v7665_v35, %v7180_v21 }
 0xcf2   :  { %5424 = vmatprep.subr.bf16.mxu0 %v7555_v39  ;;  %5446 = vmatprep.subr.bf16.mxu1 %v5695_v38 }
 0xcf4   :  { %5421 = vmatmul.mubr.msk.bf16.vlgmr.msra.gmra.mxu0 %vm1956_vm4, %v5908_v54  ;;  %5437 = vmatmul.mubr.msk.bf16.vlgmr.msra.gmra.mxu1 %vm1956_vm4, %v5909_v18  ;;  %v3493_v54 = vadd.f32 %v7661_v19, %v3439_v56 }
 0xcf5   :  { %5425 = vmatpush3.bf16.msra.mxu0 %v7555_v39  ;;  %5426 = vmatprep.mubr.msk.bf16.mxu0 %vm1452_vm11, %v5910_v57 }
 0xcf6   :  { %5440 = vmatprep.subr.bf16.mxu0 %v5694_v63  ;;  %5447 = vmatpush3.bf16.msra.mxu1 %v5695_v38  ;;  %v3509_v57 = vand.u32 2147483647, %v3493_v54 }
 0xcfc   :  { %5427 = vmatmul.mubr.msk.bf16.vlgmr.msra.gmra.mxu0 %vm1452_vm11, %v5911_v5  ;;  %v3496_v5 = vadd.f32 %v7663_v6, %v3439_v56 }
 0xcfd   :  { %5441 = vmatpush3.bf16.msra.mxu0 %v5694_v63 }
 0xdb4   :  { %v5422_v32 = vpop.f32.mrf.mxu0  ;;  %v5438_v26 = vpop.f32.mrf.mxu1 }
 0xdb6   :  { %v3719_v7 = vpop.f32.mrf.mxu0  ;;  %v3833_v45 = vpop.f32.mrf.mxu1 }
 0xdb7   :  { %3735 = vperm.xlu0 %5629, %v3719_v7  }
 0xdb8   :  { %v5423_v36 = vpop.f32.mrf.mxu0  ;;  %v5439_v9 = vpop.f32.mrf.mxu1 }
 0xdba   :  { %v3722_v23 = vpop.f32.mrf.mxu0  ;;  %v3836_v14 = vpop.f32.mrf.mxu1 }
 0xdbb   :  { %3849 = vperm.xlu0 %5629, %v3833_v45   ;;  %3740 = vperm.xlu1 %5630, %v3722_v23  }
 0xdbc   :  { %v5428_v58 = vpop.f32.mrf.mxu0 }
 0xdbe   :  { %v3785_v39 = vpop.f32.mrf.mxu0 }
 0xdbf   :  { %3745 = vperm.xlu0 %5629, %v5422_v32   ;;  %3854 = vperm.xlu1 %5630, %v3836_v14   ;;  %v3512_v32 = vsub.f32 0.0, %v3509_v57 }
 0xdc0   :  { %v5429_v24 = vpop.f32.mrf.mxu0 }
 0xdc1   :  { %v3515_v45 = vmul.f32 1.442695, %v3512_v32 }
 0xdc2   :  { %v3788_v22 = vpop.f32.mrf.mxu0 }
 0xdc3   :  { %3859 = vperm.xlu1 %5630, %v5438_v26   ;;  %v3510_v26 = vand.u32 2147483647, %v3496_v5 }
 0xdc5   :  { %v3513_v36 = vsub.f32 0.0, %v3510_v26 }
 0xe32   :  { %v3736_v13 = vpop.permute.xlu0 %3735 }
 0xe33   :  { %v3748_v4 = vmul.f32 %v3736_v13, %v7657_v28  ;;  %v761_v28 = vld [vmem:[%s7865_s18] sm:$0xf] }
 0xe34   :  { %5537 = vmatprep.subr.msk.bf16.mxu0 %vm857_vm1, %v761_v28  ;;  %v4024_v8 = vsel %vm857_vm1, %v761_v28, 0 }
 0xe36   :  { %v3850_v37 = vpop.permute.xlu0 %3849  ;;  %v3741_v52 = vpop.permute.xlu1 %3740 }
 0xe37   :  { %v3862_v55 = vmul.f32 %v3850_v37, %v3785_v39  ;;  %v3749_v59 = vmul.f32 %v3741_v52, %v3671_v16  ;;  %v3506_v52 = vmax.f32 %v3493_v54, 0.0 }
 0xe39   :  { %v3865_v30 = vmax.f32 %v3748_v4, %v3862_v55  ;;  %v3933_v55 = vrot.slane %v7665_v35, %v7194_v46 }
 0xe3a   :  { %v3855_v40 = vpop.permute.xlu1 %3854  ;;  %v3746_v17 = vpop.permute.xlu0 %3745 }
 0xe3b   :  { %v3863_v3 = vmul.f32 %v3855_v40, %v3788_v22  ;;  %v3750_v11 = vmul.f32 %v7655_v33, %v3746_v17  ;;  %v5696_v33 = vld [vmem:[#allocation52] sm:$0xff]  }
 0xe3c   :  { %5448 = vmatprep.subr.bf16.mxu1 %v5696_v33 }
 0xe3d   :  { %v3866_v15 = vmax.f32 %v3749_v59, %v3863_v3  ;;  %5449 = vmatpush3.bf16.msra.mxu1 %v5696_v33 }
 0xe3e   :  { %v3860_v20 = vpop.permute.xlu1 %3859 }
 0xe3f   :  { %v3868_v44 = vpack.c.bf16 %v3866_v15, %v3865_v30  ;;  %v3864_v2 = vmul.f32 %v5428_v58, %v3860_v20  ;;  %v3507_v30 = vmax.f32 %v3496_v5, 0.0 }
 0xe41   :  { %v3867_v25 = vmax.f32 %v3750_v11, %v3864_v2  ;;  %5442 = vmatprep.mubr.msk.bf16.mxu0 %vm1452_vm11, %v3868_v44 }
 0xe43   :  { %v3869_v47 = vpack.c.bf16 %v3867_v25, %v3867_v25 }
 0xe45   :  { %5443 = vmatmul.mubr.msk.bf16.vlgmr.msra.gmra.mxu0 %vm1452_vm11, %v3869_v47 }
 0xe46   :  { %5456 = vmatprep.mubr.msk.bf16.mxu0 %vm850_vm2, %v7124_v51  ;;  %5455 = vmatpush3.bf16.msra.mxu0 %v4024_v8  ;;  %v3501_v51 = vadd.f32 %v7659_v29, %v3439_v56 }
 0xe48   :  { %v3511_v18 = vand.u32 2147483647, %v3501_v51  ;;  %v3508_v37 = vmax.f32 %v3501_v51, 0.0 }
 0xe4a   :  { %v3514_v16 = vsub.f32 0.0, %v3511_v18 }
 0xe4c   :  { %v3519_v7 = vmul.f32 1.442695, %v3514_v16 }
 0xe4d   :  { %5457 = vmatmul.mubr.msk.bf16.vlgmr.msra.gmra.mxu0 %vm850_vm2, %v7128_v53  ;;  %v3517_v53 = vmul.f32 1.442695, %v3513_v36  ;;  %v5698_v36 = vld [vmem:[%s7866_s20] sm:$0xff]  }
 0xe4e   :  { %5885 = vpow2.f32 %v3519_v7 }
 0xe4f   :  { %5887 = vpow2.f32 %v3515_v45  ;;  %v5697_v45 = vld [vmem:[%s7866_s20 + $0x8] sm:$0xff]  }
 0xe50   :  { %5889 = vpow2.f32 %v3517_v53  ;;  %5460 = vmatprep.subr.bf16.mxu1 %v5697_v45 }
 0xe5b   :  { %v5886_v9 = vpop.eup %5885 }
 0xe5c   :  { %v5888_v23 = vpop.eup %5887  ;;  %v3523_v58 = vadd.f32 1.0, %v5886_v9  ;;  %v7701_v9 = vld [vmem:[#allocation16] sm:$0xff] }
 0xe5d   :  { %v3521_v29 = vadd.f32 1.0, %v5888_v23  ;;  %v5890_v14 = vpop.eup %5889  ;;  %v4077_v23 = vrot.slane %v7701_v9, %v7304_v10 }
 0xe5e   :  { %5891 = vlog2.f32 %v3523_v58  ;;  %v3522_v19 = vadd.f32 1.0, %v5890_v14 }
 0xe5f   :  { %5893 = vlog2.f32 %v3521_v29 }
 0xe60   :  { %5895 = vlog2.f32 %v3522_v19 }
 0xe6b   :  { %v5892_v6 = vpop.eup %5891 }
 0xe6c   :  { %v5894_v39 = vpop.eup %5893  ;;  %v3529_v24 = vmul.f32 0.6931472, %v5892_v6 }
 0xe6d   :  { %v3525_v63 = vmul.f32 0.6931472, %v5894_v39  ;;  %v5896_v13 = vpop.eup %5895 }
 0xe6e   :  { %v3532_v40 = vadd.f32 %v3529_v24, %v3508_v37  ;;  %v3527_v59 = vmul.f32 0.6931472, %v5896_v13 }
 0xe6f   :  { %v3530_v4 = vadd.f32 %v3525_v63, %v3506_v52 }
 0xe70   :  { %v4913_v11 = vadd.f32 -0.6931472, %v3532_v40  ;;  %v3531_v25 = vadd.f32 %v3527_v59, %v3507_v30 }
 0xe71   :  { %v4911_v2 = vadd.f32 -0.6931472, %v3530_v4 }
 0xe72   :  { %v4912_v33 = vadd.f32 -0.6931472, %v3531_v25 }
 0xf05   :  { %v5444_v22 = vpop.f32.mrf.mxu0 }
 0xf06   :  { %v3925_v3 = vadd.f32 %v5444_v22, %v7526_v60 }
 0xf07   :  { %v3916_v17 = vpop.f32.mrf.mxu0 }
 0xf08   :  { %v3936_v15 = vadd.f32 %v3933_v55, %v3925_v3  ;;  %v3917_v20 = vadd.f32 %v3916_v17, %v7528_v1  ;;  %v5699_v17 = vld [vmem:[#allocation48 + $0x8] sm:$0xff]  }
 0xf09   :  { %v5445_v44 = vpop.f32.mrf.mxu0 }
 0xf0a   :  { %v3934_v47 = vadd.f32 %v3933_v55, %v3917_v20  ;;  %v3939_v28 = vmax.f32 %v4913_v11, %v3936_v15  ;;  %v5700_v15 = vld [vmem:[#allocation48] sm:$0xff]   ;;  %v4095_v44 = vrot.slane %v7701_v9, %v7281_v50 }
 0xf0b   :  { %v3919_v38 = vpop.f32.mrf.mxu0  ;;  %v5701_v20 = vld [vmem:[%s7867_s4 + $0x8] sm:$0xff]   ;;  %v5702_v11 = vld [vmem:[%s7867_s4] sm:$0xff]  }
 0xf0c   :  { %v3937_v8 = vmax.f32 %v4911_v2, %v3934_v47  ;;  %v3920_v35 = vadd.f32 %v3919_v38, %v7530_v61  ;;  %v3945_v51 = vmul.f32 0.01, %v3939_v28  ;;  %vm3942_vm11 = vcmp.gt.f32.partialorder %v3939_v28, 0.0  ;;  %5468 = vmatprep.subr.bf16.mxu0 %v5701_v20 }
 0xf0d   :  { %v5458_v61 = vpop.f32.mrf.mxu0  ;;  %5469 = vmatpush3.bf16.msra.mxu0 %v5701_v20 }
 0xf0e   :  { %v3935_v56 = vadd.f32 %v3933_v55, %v3920_v35  ;;  %v3943_v60 = vmul.f32 0.01, %v3937_v8  ;;  %vm3940_vm14 = vcmp.gt.f32.partialorder %v3937_v8, 0.0  ;;  %v3948_v18 = vsel %vm3942_vm11, %v3939_v28, %v3945_v51  ;;  %5470 = vmatprep.subr.bf16.mxu0 %v5702_v11 }
 0xf0f   :  { %v3956_v32 = vpack.c.bf16 %v3948_v18, %v3948_v18  ;;  %v4060_v26 = vpop.f32.mrf.mxu0 }
 0xf10   :  { %v3938_v54 = vmax.f32 %v4912_v33, %v3935_v56  ;;  %v3946_v57 = vsel %vm3940_vm14, %v3937_v8, %v3943_v60  ;;  %v748_v60 = vld [vmem:[#allocation46] sm:$0xf] }
 0xf11   :  { %v5459_v7 = vpop.f32.mrf.mxu0  ;;  %5471 = vmatpush3.bf16.msra.mxu0 %v5702_v11 }
 0xf12   :  { %vm3941_vm15 = vcmp.gt.f32.partialorder %v3938_v54, 0.0  ;;  %v3944_v1 = vmul.f32 0.01, %v3938_v54  ;;  %5484 = vmatprep.subr.bf16.mxu0 %v6717_v0 }
 0xf13   :  { %v4063_v63 = vpop.f32.mrf.mxu0 }
 0xf14   :  { %v3947_v5 = vsel %vm3941_vm15, %v3938_v54, %v3944_v1 }
 0xf15   :  { %v3955_v16 = vpack.c.bf16 %v3947_v5, %v3946_v57  ;;  %v4304_v5 = vsel %vm857_vm1, %v748_v60, 0 }
 0xf17   :  { %5450 = vmatprep.mubr.msk.bf16.mxu1 %vm1256_vm7, %v3955_v16 }
 0xf18   :  { %5451 = vmatmul.mubr.msk.bf16.vlgmr.msra.gmra.mxu1 %vm1256_vm7, %v3956_v32  ;;  %v5703_v32 = vld [vmem:[#allocation49 + $0x8] sm:$0xff]  }
 0xf19   :  { %5461 = vmatpush3.bf16.msra.mxu1 %v5697_v45 }
 0xf1a   :  { %5462 = vmatprep.subr.bf16.mxu1 %v5698_v36 }
 0xf1d   :  { %5463 = vmatpush3.bf16.msra.mxu1 %v5698_v36 }
 0xf1e   :  { %5476 = vmatprep.subr.bf16.mxu1 %v6717_v0 }
 0xfd8   :  { %v5452_v53 = vpop.f32.mrf.mxu1 }
 0xfd9   :  { %v4069_v58 = vadd.f32 %v5458_v61, %v5452_v53  ;;  %v5704_v61 = vld [vmem:[#allocation49] sm:$0xff]  }
 0xfda   :  { %v4009_v29 = vpop.f32.mrf.mxu1 }
 0xfdb   :  { %v4061_v14 = vadd.f32 %v4060_v26, %v4009_v29  ;;  %v4080_v19 = vadd.f32 %v4077_v23, %v4069_v58  ;;  %v4176_v26 = vrot.slane %v7701_v9, %v7391_v12  ;;  %v7736_v29 = vld [vmem:[#allocation16 + $0x8] sm:$0xff] }
 0xfdc   :  { %v5453_v6 = vpop.f32.mrf.mxu1 }
 0xfdd   :  { %v4078_v39 = vadd.f32 %v4077_v23, %v4061_v14  ;;  %v4086_v37 = vmul.f32 0.01, %v4080_v19  ;;  %vm4083_vm3 = vcmp.gt.f32.partialorder %v4080_v19, 0.0 }
 0xfde   :  { %v4012_v24 = vpop.f32.mrf.mxu1 }
 0xfdf   :  { %v4064_v13 = vadd.f32 %v4063_v63, %v4012_v24  ;;  %v4084_v52 = vmul.f32 0.01, %v4078_v39  ;;  %vm4081_vm4 = vcmp.gt.f32.partialorder %v4078_v39, 0.0  ;;  %v4089_v22 = vsel %vm4083_vm3, %v4080_v19, %v4086_v37 }
 0xfe0   :  { %v4091_v30 = vpack.c.bf16 %v4089_v22, %v4089_v22 }
 0xfe1   :  { %v4079_v55 = vadd.f32 %v4077_v23, %v4064_v13  ;;  %v4087_v4 = vsel %vm4081_vm4, %v4078_v39, %v4084_v52  ;;  %v4350_v39 = vrot.slane %v7736_v29, %v7180_v21 }
 0xfe3   :  { %vm4082_vm5 = vcmp.gt.f32.partialorder %v4079_v55, 0.0  ;;  %v4085_v40 = vmul.f32 0.01, %v4079_v55 }
 0xfe5   :  { %v4088_v59 = vsel %vm4082_vm5, %v4079_v55, %v4085_v40 }
 0xfe6   :  { %v4090_v3 = vpack.c.bf16 %v4088_v59, %v4087_v4  ;;  %v774_v59 = vld [vmem:[%s7868_s22] sm:$0xf] }
 0xfe7   :  { %v4490_v21 = vsel %vm857_vm1, %v774_v59, 0 }
 0xfe8   :  { %5464 = vmatprep.mubr.msk.bf16.mxu1 %vm1256_vm7, %v4090_v3 }
 0xfe9   :  { %5465 = vmatmul.mubr.msk.bf16.vlgmr.msra.gmra.mxu1 %vm1256_vm7, %v4091_v30 }
 0xfea   :  { %5477 = vmatpush3.bf16.msra.mxu1 %v5699_v17  ;;  %5480 = vmatprep.mubr.msk.bf16.mxu1 %vm6718_vm0, %v6717_v0 }
 0xfeb   :  { %5478 = vmatprep.subr.bf16.mxu1 %v6717_v0 }
 0xfee   :  { %5479 = vmatpush3.bf16.msra.mxu1 %v5700_v15  ;;  %v4361_v15 = vrot.slane %v7736_v29, %v7191_v41 }
 0xfef   :  { %5490 = vmatprep.subr.bf16.mxu1 %v6717_v0 }
 0xff1   :  { %5481 = vmatmul.mubr.msk.bf16.vlgmr.msra.gmra.mxu1 %vm1256_vm7, %v4246_v27 }
 0xff2   :  { %5494 = vmatprep.mubr.msk.bf16.mxu1 %vm6718_vm0, %v6717_v0  ;;  %5491 = vmatpush3.bf16.msra.mxu1 %v5703_v32  ;;  %v5713_v32 = vld [vmem:[%s7870_s3 + $0x8] sm:$0xff]  }
 0xff3   :  { %5492 = vmatprep.subr.bf16.mxu1 %v6717_v0 }
 0xff6   :  { %5493 = vmatpush3.bf16.msra.mxu1 %v5704_v61  ;;  %v5714_v61 = vld [vmem:[%s7870_s3] sm:$0xff]  }
 0xff7   :  { %5506 = vmatprep.subr.bf16.mxu1 %v6717_v0 }
0x10a9   :  { %v5466_v2 = vpop.f32.mrf.mxu1 }
0x10aa   :  { %v4157_v25 = vadd.f32 %v5466_v2, %v4095_v44 }
0x10ab   :  { %v4148_v47 = vpop.f32.mrf.mxu1 }
0x10ac   :  { %v4149_v62 = vadd.f32 %v4148_v47, %v4095_v44  ;;  %v4167_v27 = vmul.f32 0.01, %v4157_v25  ;;  %vm4164_vm6 = vcmp.gt.f32.partialorder %v4157_v25, 0.0 }
0x10ad   :  { %v5467_v43 = vpop.f32.mrf.mxu1 }
0x10ae   :  { %v4165_v38 = vmul.f32 0.01, %v4149_v62  ;;  %vm4162_vm8 = vcmp.gt.f32.partialorder %v4149_v62, 0.0  ;;  %v4170_v56 = vsel %vm4164_vm6, %v4157_v25, %v4167_v27 }
0x10af   :  { %v4151_v28 = vpop.f32.mrf.mxu1  ;;  %v4172_v57 = vpack.c.bf16 %v4170_v56, %v4170_v56 }
0x10b0   :  { %v4152_v8 = vadd.f32 %v4151_v28, %v4095_v44  ;;  %v4168_v54 = vsel %vm4162_vm8, %v4149_v62, %v4165_v38 }
0x10b1   :  { %v4296_v35 = vpop.f32.mrf.mxu1 }
0x10b2   :  { %vm4163_vm9 = vcmp.gt.f32.partialorder %v4152_v8, 0.0  ;;  %v4166_v33 = vmul.f32 0.01, %v4152_v8 }
0x10b3   :  { %v5482_v51 = vpop.f32.mrf.mxu1 }
0x10b4   :  { %v4169_v1 = vsel %vm4163_vm9, %v4152_v8, %v4166_v33  ;;  %v4488_v51 = vrot.slane %v7736_v29, %v7184_v31  ;;  %v5711_v31 = vld [vmem:[%s7870_s3 + $0x18] sm:$0xff]  }
0x10b5   :  { %v4171_v50 = vpack.c.bf16 %v4169_v1, %v4168_v54  ;;  %v4299_v18 = vpop.f32.mrf.mxu1 }
0x10b7   :  { %5472 = vmatprep.mubr.msk.bf16.mxu0 %vm1256_vm7, %v4171_v50  ;;  %v5483_v16 = vpop.f32.mrf.mxu1 }
0x10b8   :  { %5473 = vmatmul.mubr.msk.bf16.vlgmr.msra.gmra.mxu0 %vm1256_vm7, %v4172_v57  ;;  %v5712_v16 = vld [vmem:[%s7870_s3 + $0x10] sm:$0xff]  }
0x10b9   :  { %5485 = vmatpush3.bf16.msra.mxu0 %v4304_v5  ;;  %5486 = vmatprep.mubr.msk.bf16.mxu0 %vm6718_vm0, %v6717_v0 }
0x10ba   :  { %5498 = vmatprep.subr.bf16.mxu0 %v6717_v0 }
0x10c0   :  { %5487 = vmatmul.mubr.msk.bf16.vlgmr.msra.gmra.mxu0 %vm850_vm2, %v7117_v42 }
0x10c1   :  { %5502 = vmatprep.mubr.msk.bf16.mxu0 %vm6718_vm0, %v6717_v0 }
0x1178   :  { %v5474_v7 = vpop.f32.mrf.mxu0 }
0x1179   :  { %v4238_v45 = vadd.f32 %v5474_v7, %v4176_v26 }
0x117a   :  { %v4229_v36 = vpop.f32.mrf.mxu0 }
0x117b   :  { %v4245_v53 = vmax.f32 %v4238_v45, 0.0  ;;  %v4230_v23 = vadd.f32 %v4229_v36, %v4176_v26 }
0x117c   :  { %v5475_v58 = vpop.f32.mrf.mxu0 }
0x117d   :  { %4688 = vst [vmem:[%s6973_s5 + $0x10] sm:$0xff] %v4245_v53  ;;  %v4243_v14 = vmax.f32 %v4230_v23, 0.0  ;;  %v4539_v53 = vrot.slane %v7736_v29, %v7187_v34  ;;  %v4615_v34 = vrot.slane %v7736_v29, %v7304_v10 }
0x117e   :  { %v4232_v19 = vpop.f32.mrf.mxu0 }
0x117f   :  { %4686 = vst [vmem:[%s6973_s5] sm:$0xff] %v4243_v14  ;;  %v4233_v6 = vadd.f32 %v4232_v19, %v4176_v26 }
0x1180   :  { %v4340_v24 = vpop.f32.mrf.mxu0 }
0x1181   :  { %v4244_v12 = vmax.f32 %v4233_v6, 0.0  ;;  %v4341_v9 = vadd.f32 %v4340_v24, %v4296_v35 }
0x1182   :  { %v5488_v63 = vpop.f32.mrf.mxu0 }
0x1183   :  { %4687 = vst [vmem:[%s6973_s5 + $0x8] sm:$0xff] %v4244_v12  ;;  %v4351_v13 = vadd.f32 %v4350_v39, %v4341_v9  ;;  %s7869_s5 = sld [smem:[#allocation100_spill]] }
0x1184   :  { %v4343_v37 = vpop.f32.mrf.mxu0 }
0x1185   :  { %v4344_v52 = vadd.f32 %v4343_v37, %v4299_v18  ;;  %v4353_v40 = vmax.f32 %v4351_v13, 0.0 }
0x1186   :  { %v5489_v55 = vpop.f32.mrf.mxu0 }
0x1187   :  { %v4352_v22 = vadd.f32 %v4350_v39, %v4344_v52  ;;  %v4355_v3 = vadd.f32 %v4353_v40, %v7228_v48  ;;  %v5705_v48 = vld [vmem:[#allocation51 + $0x8] sm:$0xff]  }
0x1188   :  { %5499 = vmatpush3.bf16.msra.mxu0 %v5705_v48 }
0x1189   :  { %v4354_v4 = vmax.f32 %v4352_v22, 0.0  ;;  %5500 = vmatprep.subr.bf16.mxu0 %v6717_v0  ;;  %v5707_v38 = vld [vmem:[%s7869_s5 + $0x18] sm:$0xff]   ;;  %v5708_v41 = vld [vmem:[%s7869_s5 + $0x10] sm:$0xff]   ;;  %v5709_v60 = vld [vmem:[%s7869_s5 + $0x8] sm:$0xff]  }
0x118a   :  { %v5710_v50 = vld [vmem:[%s7869_s5] sm:$0xff]  }
0x118b   :  { %v4356_v17 = vadd.f32 %v4354_v4, %v7231_v49  ;;  %v5706_v49 = vld [vmem:[#allocation51] sm:$0xff]  }
0x118c   :  { %5501 = vmatpush3.bf16.msra.mxu0 %v5706_v49 }
0x118d   :  { %v4357_v30 = vpack.c.bf16 %v4356_v17, %v4355_v3  ;;  %5512 = vmatprep.subr.bf16.mxu0 %v6717_v0 }
0x118f   :  { %5495 = vmatmul.mubr.msk.bf16.vlgmr.msra.gmra.mxu1 %vm1256_vm7, %v4357_v30 }
0x1190   :  { %5507 = vmatpush3.bf16.msra.mxu1 %v4490_v21  ;;  %5508 = vmatprep.mubr.msk.bf16.mxu1 %vm6718_vm0, %v6717_v0 }
0x1191   :  { %5524 = vmatprep.subr.bf16.mxu1 %v6717_v0 }
0x1197   :  { %5509 = vmatmul.mubr.msk.bf16.vlgmr.msra.gmra.mxu1 %vm850_vm2, %v7117_v42 }
0x1198   :  { %5532 = vmatprep.mubr.msk.bf16.mxu1 %vm6718_vm0, %v6717_v0  ;;  %5525 = vmatpush3.bf16.msra.mxu1 %v5711_v31 }
0x1199   :  { %5526 = vmatprep.subr.bf16.mxu1 %v6717_v0 }
0x119c   :  { %5527 = vmatpush3.bf16.msra.mxu1 %v5712_v16 }
0x119d   :  { %5528 = vmatprep.subr.bf16.mxu1 %v6717_v0 }
0x11a0   :  { %5529 = vmatpush3.bf16.msra.mxu1 %v5713_v32 }
0x11a1   :  { %5530 = vmatprep.subr.bf16.mxu1 %v6717_v0 }
0x11a4   :  { %5531 = vmatpush3.bf16.msra.mxu1 %v5714_v61 }
0x124f   :  { %v4411_v20 = vpop.f32.mrf.mxu1 }
0x1250   :  { %v4412_v11 = vadd.f32 %v4411_v20, %v4361_v15 }
0x1251   :  { %v5496_v44 = vpop.f32.mrf.mxu1 }
0x1252   :  { %v4418_v2 = vmax.f32 %v4412_v11, 0.0 }
0x1253   :  { %v4414_v42 = vpop.f32.mrf.mxu1 }
0x1254   :  { %v4415_v25 = vadd.f32 %v4414_v42, %v4361_v15  ;;  %v4420_v27 = vadd.f32 %v4418_v2, %v4355_v3 }
0x1255   :  { %v5497_v47 = vpop.f32.mrf.mxu1 }
0x1256   :  { %v4419_v62 = vmax.f32 %v4415_v25, 0.0 }
0x1257   :  { %v4526_v43 = vpop.f32.mrf.mxu1 }
0x1258   :  { %v4421_v28 = vadd.f32 %v4419_v62, %v4356_v17  ;;  %v4527_v54 = vadd.f32 %v4526_v43, %v4488_v51 }
0x1259   :  { %v5510_v8 = vpop.f32.mrf.mxu1 }
0x125a   :  { %v4422_v35 = vpack.c.bf16 %v4421_v28, %v4420_v27  ;;  %v4533_v18 = vmax.f32 %v4527_v54, 0.0 }
0x125b   :  { %v4529_v33 = vpop.f32.mrf.mxu1 }
0x125c   :  { %5503 = vmatmul.mubr.msk.bf16.vlgmr.msra.gmra.mxu0 %vm1256_vm7, %v4422_v35  ;;  %v4530_v1 = vadd.f32 %v4529_v33, %v4488_v51 }
0x125d   :  { %5513 = vmatpush3.bf16.msra.mxu0 %v5707_v38  ;;  %5520 = vmatprep.mubr.msk.bf16.mxu0 %vm6718_vm0, %v6717_v0  ;;  %v5511_v56 = vpop.f32.mrf.mxu1  ;;  %vm4564_vm0 = vcmask 523264  }
0x125e   :  { %5514 = vmatprep.subr.bf16.mxu0 %v6717_v0  ;;  %v4534_v57 = vmax.f32 %v4530_v1, 0.0 }
0x1260   :  { %v4535_v5 = vpack.c.bf16 %v4534_v57, %v4533_v18 }
0x1261   :  { %5515 = vmatpush3.bf16.msra.mxu0 %v5708_v41 }
0x1262   :  { %5516 = vmatprep.subr.bf16.mxu0 %v6717_v0 }
0x1265   :  { %5517 = vmatpush3.bf16.msra.mxu0 %v5709_v60 }
0x1266   :  { %5518 = vmatprep.subr.bf16.mxu0 %v6717_v0  ;;  %v4426_v0 = vrot.slane %v7736_v29, %v7194_v46 }
0x1269   :  { %5519 = vmatpush3.bf16.msra.mxu0 %v5710_v50 }
0x126c   :  { %5521 = vmatmul.mubr.msk.bf16.vlgmr.msra.gmra.mxu0 %vm4564_vm0, %v4535_v5 }
0x131c   :  { %v4476_v26 = vpop.f32.mrf.mxu0 }
0x131d   :  { %v4477_v63 = vadd.f32 %v4476_v26, %v4426_v0 }
0x131e   :  { %v5504_v7 = vpop.f32.mrf.mxu0 }
0x131f   :  { %5897 = vtanh.f32 %v4477_v63 }
0x1320   :  { %v4479_v45 = vpop.f32.mrf.mxu0 }
0x1321   :  { %v4480_v13 = vadd.f32 %v4479_v45, %v4426_v0 }
0x1322   :  { %v5505_v36 = vpop.f32.mrf.mxu0 }
0x1323   :  { %5899 = vtanh.f32 %v4480_v13 }
0x132c   :  { %v4602_v23 = vpop.f32.mrf.mxu0  ;;  %v5898_v55 = vpop.eup %5897 }
0x132d   :  { %v4603_v14 = vadd.f32 %v4602_v23, %v4539_v53 }
0x132e   :  { %v5522_v58 = vpop.f32.mrf.mxu0 }
0x132f   :  { %v4609_v24 = vmax.f32 %v4603_v14, 0.0 }
0x1330   :  { %v4605_v19 = vpop.f32.mrf.mxu0  ;;  %v5900_v3 = vpop.eup %5899 }
0x1331   :  { %v4606_v6 = vadd.f32 %v4605_v19, %v4539_v53 }
0x1332   :  { %v5523_v39 = vpop.f32.mrf.mxu0 }
0x1333   :  { %v4610_v12 = vmax.f32 %v4606_v6, 0.0 }
0x1335   :  { %v4611_v9 = vpack.c.bf16 %v4610_v12, %v4609_v24 }
0x1337   :  { %5533 = vmatmul.mubr.msk.bf16.vlgmr.msra.gmra.mxu1 %vm4564_vm0, %v4611_v9 }
0x13f7   :  { %v4677_v37 = vpop.f32.mrf.mxu1 }
0x13f8   :  { %v4678_v52 = vadd.f32 %v4677_v37, %v4615_v34 }
0x13f9   :  { %v5534_v40 = vpop.f32.mrf.mxu1 }
0x13fa   :  { %v4684_v22 = vadd.f32 %v5898_v55, %v4678_v52 }
0x13fb   :  { %v4680_v4 = vpop.f32.mrf.mxu1 }
0x13fc   :  { %4689 = vst [vmem:[%s6978_s12] sm:$0xff] %v4684_v22  ;;  %v4681_v59 = vadd.f32 %v4680_v4, %v4615_v34 }
0x13fd   :  { %v5535_v17 = vpop.f32.mrf.mxu1 }
0x13fe   :  { %v4685_v30 = vadd.f32 %v5900_v3, %v4681_v59 }
0x1400   :  { %4690 = vst [vmem:[%s6978_s12 + $0x8] sm:$0xf] %v4685_v30 }
0x1401   :  { %4699 = vsyncpa [#allocation3], 1 }
0x1402   :  { %4700 = vsyncpa [#allocation5], 1 }
0x1403   :  { %4701 = vsyncpa [#allocation8], 1 }
0x1404   :  { %4702 = vsyncpa [#allocation11], 1 }
0x1405   :  { %4703 = vsyncpa [#allocation14], 1 }
0x1406   :  { %4704 = vsyncpa [#allocation17], 1 }
0x1407   :  { %4705 = vsyncpa [#allocation20], 1 }
0x1408   :  { %4706 = vsyncpa [#allocation23], 1 }
0x1409   :  { %4707 = vsyncpa [#allocation26], 1 }
0x140a   :  { %4708 = vsyncpa [#allocation29], 1 }
0x140b   :  { %4709 = vsyncpa [#allocation32], 1 }
0x140c   :  { %4710 = vsyncpa [#allocation35], 1 }
0x140d   :  { %4711 = vsyncpa [#allocation38], 1 }
0x140e   :  { %4712 = vsyncpa [#allocation41], 1 }
0x140f   :  { %4713 = vsyncpa [#allocation44], 1 }
0x1410   :  { %4714 = vsyncpa [#allocation47], 1 }
0x1411   :  { %4715 = vsyncpa [#allocation50], 1 }
0x1412   :  { %4716 = vsyncpa [#allocation53], 1 }

</bundles_post_ra>
